<compile_context>
chip_gen: v6e
topology: v6e:2x2x1
jax: 0.10.0
libtpu: 0.0.40
codegen_flags: <defaults>
</compile_context>

<pallas_src>
import math
import functools

import jax
import jax.numpy as jnp
from jax.experimental import pallas as pl
from jax.experimental.pallas import tpu as pltpu

F32 = jnp.float32
BF16 = jnp.bfloat16
_VMEM_LIMIT = 64 * 1024 * 1024  # re-derive per generation / per T for production


# ------------------------------ small helpers -------------------------------

def _ln(x, g, b, eps=1e-12):           # espnet LayerNorm uses eps=1e-12
    mean = jnp.mean(x, axis=-1, keepdims=True)
    xc = x - mean
    var = jnp.mean(xc * xc, axis=-1, keepdims=True)
    return xc * jax.lax.rsqrt(var + eps) * g + b


def _conv3(x_bf16, w_ref, bias):
    """Conv1d(k=3, same padding) = 3 tap matmuls + sublane-shifted adds."""
    T = x_bf16.shape[0]
    cout = w_ref.shape[-1]
    z0 = jnp.dot(x_bf16, w_ref[0], preferred_element_type=F32)   # tap x[t-1]
    z1 = jnp.dot(x_bf16, w_ref[1], preferred_element_type=F32)   # tap x[t]
    z2 = jnp.dot(x_bf16, w_ref[2], preferred_element_type=F32)   # tap x[t+1]
    zero = jnp.zeros((1, cout), F32)
    y = (z1
         + jnp.concatenate([zero, z0[:T - 1]], axis=0)
         + jnp.concatenate([z2[1:], zero], axis=0))
    return y + bias


# ------------------------------ Pallas kernels -------------------------------

def _prenet_kernel(x_ref, m_ref, w_ref, b_ref, o_ref, *, scale):
    # fused: Conv1d(k=3) + bias + mask + RelPositionalEncoding x*sqrt(D)
    xb = x_ref[0].astype(BF16)                        # (T, Cin)
    y = _conv3(xb, w_ref, b_ref[...])                 # (T, D) f32
    o_ref[0] = y * m_ref[0] * scale


def prenet_conv(x_btc, mask_col, w_bf16, b, *, scale):
    B, T, Cin = x_btc.shape
    D = w_bf16.shape[-1]
    kern = functools.partial(_prenet_kernel, scale=scale)
    return pl.pallas_call(
        kern,
        out_shape=jax.ShapeDtypeStruct((B, T, D), F32),
        grid=(B,),
        in_specs=[pl.BlockSpec((1, T, Cin), lambda i: (i, 0, 0)),
                  pl.BlockSpec((1, T, 1), lambda i: (i, 0, 0)),
                  pl.BlockSpec((3, Cin, D), lambda i: (0, 0, 0)),
                  pl.BlockSpec((1, D), lambda i: (0, 0))],
        out_specs=pl.BlockSpec((1, T, D), lambda i: (i, 0, 0)),
        compiler_params=pltpu.CompilerParams(
            dimension_semantics=("parallel",),
            vmem_limit_bytes=_VMEM_LIMIT),
    )(x_btc, mask_col, w_bf16, b.reshape(1, D))


def _layer_kernel(h_ref, msk_ref, ln_ref, wqkv_ref, bqkv_ref, bu_ref, bv_ref,
                  wp1_ref, wp2_ref, qs_ref, qc_ref, kt_ref, wo_ref, bo_ref,
                  w1_ref, b1_ref, w2_ref, b2_ref, o_ref, *, H, dk):
    # One fused conformer block (pre-norm, no macaron / no conv module):
    #   LN -> fused QKV matmul -> rel-pos attention (AC + trig-factorised BD,
    #   masked softmax, AV, per-head output projection accumulated) -> residual
    #   -> LN -> conv1d(k=3) -> ReLU -> conv1d(k=3) -> residual.
    D = H * dk
    x = h_ref[0]                                      # (T, D) f32
    kmask = msk_ref[0]                                # (1, T)
    masked = kmask == 0.0
    neg = jnp.finfo(F32).min

    # ---------------- self-attention (rel_selfattn) ----------------
    hn = _ln(x, ln_ref[0:1, :], ln_ref[1:2, :])
    qkv = jnp.dot(hn.astype(BF16), wqkv_ref[...],
                  preferred_element_type=F32) + bqkv_ref[...]        # (T, 3D)

    qs = qs_ref[...]                                  # (T, D) f32
    qc = qc_ref[...]                                  # (T, D) f32
    kt = kt_ref[...]                                  # (T, D) bf16

    att_out = bo_ref[...]                             # (1, D) -> broadcasts
    for hh in range(H):                               # H is small / static
        q = qkv[:, hh * dk:(hh + 1) * dk]                            # (T, dk)
        k = qkv[:, D + hh * dk:D + (hh + 1) * dk]
        v = qkv[:, 2 * D + hh * dk:2 * D + (hh + 1) * dk]

        # 1/sqrt(dk) is already folded into wq / bq / pos_bias_{u,v}.
        q_u = (q + bu_ref[hh:hh + 1, :]).astype(BF16)
        q_v = (q + bv_ref[hh:hh + 1, :]).astype(BF16)

        # AC term
        ac = jax.lax.dot_general(q_u, k.astype(BF16),
                                 (((1,), (1,)), ((), ())),
                                 preferred_element_type=F32)         # (T, T)

        # BD term: bd[i,j] = q_v[i] . (pe(i-j) @ Wpos_h), computed exactly via
        # angle-sum factorisation -> two dense matmuls, no rel-shift needed.
        r1 = jnp.dot(q_v, wp1_ref[hh], preferred_element_type=F32)   # (T, D)
        r2 = jnp.dot(q_v, wp2_ref[hh], preferred_element_type=F32)   # (T, D)
        a = r1 * qs + r2 * qc                                        # (T, D)
        bd = jax.lax.dot_general(a.astype(BF16), kt,
                                 (((1,), (1,)), ((), ())),
                                 preferred_element_type=F32)         # (T, T)

        s = ac + bd
        s = jnp.where(masked, neg, s)
        mx = jnp.max(s, axis=-1, keepdims=True)
        e = jnp.exp(s - mx)
        den = jnp.sum(e, axis=-1, keepdims=True)
        attn = e * pl.reciprocal(den, approx=True)
        attn = jnp.where(masked, 0.0, attn)

        ctx = jnp.dot(attn.astype(BF16), v.astype(BF16),
                      preferred_element_type=F32)                    # (T, dk)
        # fold head context straight into the output projection (no concat)
        att_out = att_out + jnp.dot(ctx.astype(BF16), wo_ref[hh],
                                    preferred_element_type=F32)      # (T, D)

    h_mid = x + att_out                               # residual

    # -------- position-wise MultiLayeredConv1d (k=3, ReLU) --------
    hn2 = _ln(h_mid, ln_ref[2:3, :], ln_ref[3:4, :])
    h1 = jnp.maximum(_conv3(hn2.astype(BF16), w1_ref, b1_ref[...]), 0.0)
    ff = _conv3(h1.astype(BF16), w2_ref, b2_ref[...])
    o_ref[0] = h_mid + ff                             # residual


def layer_block(h, mask_row, ln4, wqkv, bqkv, bias_u, bias_v, wp1, wp2,
                qs, qc, kt, wo_h, bo, w1, b1, w2, b2, *, H, dk):
    B, T, D = h.shape
    L = w1.shape[-1]
    kern = functools.partial(_layer_kernel, H=H, dk=dk)
    return pl.pallas_call(
        kern,
        out_shape=jax.ShapeDtypeStruct((B, T, D), F32),
        grid=(B,),
        in_specs=[
            pl.BlockSpec((1, T, D), lambda i: (i, 0, 0)),      # h
            pl.BlockSpec((1, 1, T), lambda i: (i, 0, 0)),      # key mask
            pl.BlockSpec((4, D), lambda i: (0, 0)),            # LN params
            pl.BlockSpec((D, 3 * D), lambda i: (0, 0)),        # wqkv
            pl.BlockSpec((1, 3 * D), lambda i: (0, 0)),        # bqkv
            pl.BlockSpec((H, dk), lambda i: (0, 0)),           # pos_bias_u
            pl.BlockSpec((H, dk), lambda i: (0, 0)),           # pos_bias_v
            pl.BlockSpec((H, dk, D), lambda i: (0, 0, 0)),     # Wpos^T
            pl.BlockSpec((H, dk, D), lambda i: (0, 0, 0)),     # pair-swapped
            pl.BlockSpec((T, D), lambda i: (0, 0)),            # QS table
            pl.BlockSpec((T, D), lambda i: (0, 0)),            # QC table
            pl.BlockSpec((T, D), lambda i: (0, 0)),            # KT table
            pl.BlockSpec((H, dk, D), lambda i: (0, 0, 0)),     # Wo (head-major)
            pl.BlockSpec((1, D), lambda i: (0, 0)),            # bo
            pl.BlockSpec((3, D, L), lambda i: (0, 0, 0)),      # ff w1
            pl.BlockSpec((1, L), lambda i: (0, 0)),            # ff b1
            pl.BlockSpec((3, L, D), lambda i: (0, 0, 0)),      # ff w2
            pl.BlockSpec((1, D), lambda i: (0, 0)),            # ff b2
        ],
        out_specs=pl.BlockSpec((1, T, D), lambda i: (i, 0, 0)),
        compiler_params=pltpu.CompilerParams(
            dimension_semantics=("parallel",),
            vmem_limit_bytes=_VMEM_LIMIT),
    )(h, mask_row, ln4, wqkv, bqkv, bias_u, bias_v, wp1, wp2, qs, qc, kt,
      wo_h, bo, w1, b1, w2, b2)


def _proj_kernel(h_ref, m_ref, g_ref, b_ref, w_ref, bias_ref, o_ref):
    # fused: after_norm LayerNorm + Conv1d(k=1) projection + output mask
    hn = _ln(h_ref[0], g_ref[...], b_ref[...])
    y = jnp.dot(hn.astype(BF16), w_ref[...],
                preferred_element_type=F32) + bias_ref[...]
    o_ref[0] = y * m_ref[0]


def proj_block(h, mask_col, g, b, w_bf16, bias):
    B, T, D = h.shape
    Cout = w_bf16.shape[-1]
    return pl.pallas_call(
        _proj_kernel,
        out_shape=jax.ShapeDtypeStruct((B, T, Cout), F32),
        grid=(B,),
        in_specs=[pl.BlockSpec((1, T, D), lambda i: (i, 0, 0)),
                  pl.BlockSpec((1, T, 1), lambda i: (i, 0, 0)),
                  pl.BlockSpec((1, D), lambda i: (0, 0)),
                  pl.BlockSpec((1, D), lambda i: (0, 0)),
                  pl.BlockSpec((D, Cout), lambda i: (0, 0)),
                  pl.BlockSpec((1, Cout), lambda i: (0, 0))],
        out_specs=pl.BlockSpec((1, T, Cout), lambda i: (i, 0, 0)),
        compiler_params=pltpu.CompilerParams(
            dimension_semantics=("parallel",),
            vmem_limit_bytes=_VMEM_LIMIT),
    )(h, mask_col, g.reshape(1, D), b.reshape(1, D), w_bf16,
      bias.reshape(1, Cout))


# --------------------------- parameters (synthetic) --------------------------

def init_params(key, *, in_dim, attention_dim, attention_heads, linear_units,
                blocks, out_channels, pw_kernel=3):
    D, H = attention_dim, attention_heads
    dk = D // H
    keys = iter(jax.random.split(key, 8 + blocks * 16))

    def nrm(shape, scale=0.05):
        return scale * jax.random.normal(next(keys), shape, F32)

    params = {
        "prenet_w": nrm((3, in_dim, D)),          # Conv1d(D+2 -> D, k=3)
        "prenet_b": nrm((D,)),
        "layers": [],
        "after_norm_g": jnp.ones((D,), F32),
        "after_norm_b": jnp.zeros((D,), F32),
        "proj_w": nrm((1, D, out_channels)),      # Conv1d(D -> out, k=1)
        "proj_b": nrm((out_channels,)),
    }
    for _ in range(blocks):
        params["layers"].append({
            "norm_mha_g": jnp.ones((D,), F32), "norm_mha_b": jnp.zeros((D,), F32),
            "wq": nrm((D, D)), "bq": nrm((D,)),
            "wk": nrm((D, D)), "bk": nrm((D,)),
            "wv": nrm((D, D)), "bv": nrm((D,)),
            "wo": nrm((D, D)), "bo": nrm((D,)),
            "wpos": nrm((D, D)),                  # linear_pos (no bias)
            "pos_bias_u": nrm((H, dk)),
            "pos_bias_v": nrm((H, dk)),
            "norm_ff_g": jnp.ones((D,), F32), "norm_ff_b": jnp.zeros((D,), F32),
            "ff_w1": nrm((pw_kernel, D, linear_units)), "ff_b1": nrm((linear_units,)),
            "ff_w2": nrm((pw_kernel, linear_units, D)), "ff_b2": nrm((D,)),
        })
    return params


# ---------------------------------- forward ----------------------------------

def decoder_forward(params, x, x_lengths):
    # x: (B, 2+attention_dim, T) NCT, x_lengths: (B,)
    B, Cin, T = x.shape
    D = params["prenet_w"].shape[2]
    H = params["layers"][0]["pos_bias_u"].shape[0]
    dk = D // H
    L = params["layers"][0]["ff_w1"].shape[2]
    scale = 1.0 / math.sqrt(dk)

    mask = (jnp.arange(T)[None, :] < x_lengths[:, None]).astype(x.dtype)  # (B,T)
    mask_col = mask[:, :, None]
    mask_row = mask[:, None, :]

    # ----- prenet conv3 + mask, fused with RelPositionalEncoding x*sqrt(D) ---
    x_btc = jnp.transpose(x, (0, 2, 1))                                   # (B,T,Cin)
    h = prenet_conv(x_btc, mask_col, params["prenet_w"].astype(BF16),
                    params["prenet_b"], scale=math.sqrt(D))               # (B,T,D)

    # ----- trig tables for the exact rel-pos factorisation (shared) ----------
    pos = jnp.arange(T, dtype=F32)
    inv = jnp.exp(jnp.arange(0, D, 2, dtype=F32) * (-math.log(10000.0) / D))
    ang = pos[:, None] * inv[None, :]                                     # (T, D/2)
    sin_t, cos_t = jnp.sin(ang), jnp.cos(ang)
    qs = jnp.repeat(sin_t, 2, axis=1)                                     # (T, D)
    sgn = jnp.tile(jnp.array([1.0, -1.0], F32), D // 2)
    qc = jnp.repeat(cos_t, 2, axis=1) * sgn                               # (T, D)
    kt = jnp.stack([cos_t, sin_t], axis=2).reshape(T, D).astype(BF16)     # (T, D)

    # ----- conformer encoder blocks (one fused Pallas kernel per block) ------
    for lyr in params["layers"]:
        # fold 1/sqrt(dk) into the q projection and the positional biases
        wqkv = jnp.concatenate([lyr["wq"] * scale, lyr["wk"], lyr["wv"]],
                               axis=1).astype(BF16)                       # (D, 3D)
        bqkv = jnp.concatenate([lyr["bq"] * scale, lyr["bk"],
                                lyr["bv"]]).reshape(1, 3 * D)
        bu = lyr["pos_bias_u"] * scale
        bv = lyr["pos_bias_v"] * scale
        # per-head linear_pos^T and its within-pair-swapped copy
        wp1 = lyr["wpos"].T.reshape(H, dk, D)
        wp2 = wp1.reshape(H, dk, D // 2, 2)[..., ::-1].reshape(H, dk, D)
        wo_h = lyr["wo"].reshape(H, dk, D)                                # head-major
        ln4 = jnp.stack([lyr["norm_mha_g"], lyr["norm_mha_b"],
                         lyr["norm_ff_g"], lyr["norm_ff_b"]], axis=0)

        h = layer_block(h, mask_row, ln4, wqkv, bqkv, bu, bv,
                        wp1.astype(BF16), wp2.astype(BF16), qs, qc, kt,
                        wo_h.astype(BF16), lyr["bo"].reshape(1, D),
                        lyr["ff_w1"].astype(BF16), lyr["ff_b1"].reshape(1, L),
                        lyr["ff_w2"].astype(BF16), lyr["ff_b2"].reshape(1, D),
                        H=H, dk=dk)

    # ----- after_norm + proj (Conv1d k=1) + mask, fused ----------------------
    out = proj_block(h, mask_col, params["after_norm_g"], params["after_norm_b"],
                     params["proj_w"][0].astype(BF16), params["proj_b"])
    return jnp.transpose(out, (0, 2, 1)), mask_row                        # (B,out,T),(B,1,T)


# ------------------------- pure-JAX reference (check) ------------------------

def decoder_forward_ref(params, x, x_lengths):
    """XLA reference with matching bf16 matmul casts; uses the espnet
    rel-shift (gather) formulation as an independent check of the in-kernel
    trigonometric factorisation."""
    B, Cin, T = x.shape
    D = params["prenet_w"].shape[2]
    H = params["layers"][0]["pos_bias_u"].shape[0]
    dk = D // H
    scale = 1.0 / math.sqrt(dk)
    mask = (jnp.arange(T)[None, :] < x_lengths[:, None]).astype(F32)

    def ln(v, g, b, eps=1e-12):
        mu = jnp.mean(v, -1, keepdims=True)
        vc = v - mu
        return vc * jax.lax.rsqrt(jnp.mean(vc * vc, -1, keepdims=True) + eps) * g + b

    def mm(a, w):
        return jnp.einsum('btc,cd->btd', a.astype(BF16), w.astype(BF16),
                          preferred_element_type=F32)

    def conv3(v, w, b):
        z0, z1, z2 = mm(v, w[0]), mm(v, w[1]), mm(v, w[2])
        zero = jnp.zeros_like(z1[:, :1])
        return (z1 + jnp.concatenate([zero, z0[:, :-1]], 1)
                + jnp.concatenate([z2[:, 1:], zero], 1) + b)

    h = conv3(jnp.transpose(x, (0, 2, 1)), params["prenet_w"],
              params["prenet_b"]) * mask[:, :, None]
    h = h * math.sqrt(D)

    rel = (T - 1) - jnp.arange(2 * T - 1, dtype=F32)
    inv = jnp.exp(jnp.arange(0, D, 2, dtype=F32) * (-math.log(10000.0) / D))
    ang = rel[:, None] * inv[None, :]
    pe = jnp.zeros((2 * T - 1, D), F32)
    pe = pe.at[:, 0::2].set(jnp.sin(ang))
    pe = pe.at[:, 1::2].set(jnp.cos(ang))
    shift_idx = (T - 1) - jnp.arange(T)[:, None] + jnp.arange(T)[None, :]  # (T,T)
    neg = jnp.finfo(F32).min

    for lyr in params["layers"]:
        hn = ln(h, lyr["norm_mha_g"], lyr["norm_mha_b"])
        q = mm(hn, lyr["wq"]) + lyr["bq"]
        k = mm(hn, lyr["wk"]) + lyr["bk"]
        v = mm(hn, lyr["wv"]) + lyr["bv"]
        p = jnp.einsum('mc,cd->md', pe.astype(BF16), lyr["wpos"].astype(BF16),
                       preferred_element_type=F32)                         # (2T-1, D)
        ctxs = []
        for hh in range(H):
            sl = slice(hh * dk, (hh + 1) * dk)
            qh, kh, vh, ph = q[..., sl], k[..., sl], v[..., sl], p[:, sl]
            qu = (qh + lyr["pos_bias_u"][hh]) * scale
            qv = (qh + lyr["pos_bias_v"][hh]) * scale
            ac = jnp.einsum('btd,bsd->bts', qu.astype(BF16), kh.astype(BF16),
                            preferred_element_type=F32)
            bd_full = jnp.einsum('btd,md->btm', qv.astype(BF16), ph.astype(BF16),
                                 preferred_element_type=F32)               # (B,T,2T-1)
            bd = jnp.take_along_axis(
                bd_full, jnp.broadcast_to(shift_idx[None], (B, T, T)), axis=2)
            s = jnp.where(mask[:, None, :] == 0.0, neg, ac + bd)
            a = jax.nn.softmax(s, axis=-1)
            a = jnp.where(mask[:, None, :] == 0.0, 0.0, a)
            ctxs.append(jnp.einsum('bts,bsd->btd', a.astype(BF16),
                                   vh.astype(BF16), preferred_element_type=F32))
        att = jnp.concatenate(ctxs, axis=-1)
        h = h + mm(att, lyr["wo"]) + lyr["bo"]
        hn2 = ln(h, lyr["norm_ff_g"], lyr["norm_ff_b"])
        h1 = jax.nn.relu(conv3(hn2, lyr["ff_w1"], lyr["ff_b1"]))
        h = h + conv3(h1, lyr["ff_w2"], lyr["ff_b2"])

    h = ln(h, params["after_norm_g"], params["after_norm_b"])
    out = (mm(h, params["proj_w"][0]) + params["proj_b"]) * mask[:, :, None]
    return jnp.transpose(out, (0, 2, 1)), mask[:, None, :]


# ------------------------------------ main ------------------------------------

if __name__ == "__main__":
    # small, module-consistent shapes
    B, T = 2, 64
    attention_dim, heads, linear_units, blocks, out_channels = 32, 2, 64, 2, 16
    in_dim = attention_dim + 2

    key = jax.random.PRNGKey(0)
    kp, kx = jax.random.split(key)
    params = init_params(kp, in_dim=in_dim, attention_dim=attention_dim,
                         attention_heads=heads, linear_units=linear_units,
                         blocks=blocks, out_channels=out_channels, pw_kernel=3)

    x = jax.random.normal(kx, (B, in_dim, T), F32)   # (B, 2+D, T)
    x_lengths = jnp.array([T, T - 15], jnp.int32)

    y, y_mask = jax.jit(decoder_forward)(params, x, x_lengths)
    jax.block_until_ready((y, y_mask))

    assert y.shape == (B, out_channels, T)
    assert y_mask.shape == (B, 1, T)
    assert bool(jnp.all(jnp.isfinite(y)))

    # parity check against an XLA reference with matching bf16 matmul casts
    y_ref, _ = jax.jit(decoder_forward_ref)(params, x, x_lengths)
    assert bool(jnp.allclose(y, y_ref, atol=5e-2, rtol=5e-2)), \
        float(jnp.max(jnp.abs(y - y_ref)))

    print("KERNEL_OK")
</pallas_src>

<mosaic_0001>
module attributes {stable_mosaic.version = 11 : i64} {
  func.func @_prenet_kernel(%arg0: i32, %arg1: memref<1x64x34xf32, #tpu.memory_space<vmem>>, %arg2: memref<1x64x1xf32, #tpu.memory_space<vmem>>, %arg3: memref<3x34x32xbf16, #tpu.memory_space<vmem>>, %arg4: memref<1x32xf32, #tpu.memory_space<vmem>>, %arg5: memref<1x64x32xf32, #tpu.memory_space<vmem>>) attributes {dimension_semantics = [#tpu.dimension_semantics<parallel>], iteration_bounds = array<i64: 2>, scalar_prefetch = 0 : i64, scratch_operands = 0 : i64, tpu.core_type = #tpu.core_type<tc>, window_params = [{transform_indices = @transform_0, window_bounds = array<i64: 1, 64, 34>}, {transform_indices = @transform_1, window_bounds = array<i64: 1, 64, 1>}, {pipeline_mode = #tpu.pipeline_mode<synchronous>, transform_indices = @transform_2, window_bounds = array<i64: 3, 34, 32>}, {pipeline_mode = #tpu.pipeline_mode<synchronous>, transform_indices = @transform_3, window_bounds = array<i64: 1, 32>}, {transform_indices = @transform_4, window_bounds = array<i64: 1, 64, 32>}]} {
    %c0 = arith.constant 0 : index
    %c0_0 = arith.constant 0 : index
    %c0_1 = arith.constant 0 : index
    %0 = vector.load %arg1[%c0, %c0_0, %c0_1] : memref<1x64x34xf32, #tpu.memory_space<vmem>>, vector<1x64x34xf32>
    %1 = vector.shape_cast %0 : vector<1x64x34xf32> to vector<64x34xf32>
    %2 = arith.truncf %1 : vector<64x34xf32> to vector<64x34xbf16>
    %c0_2 = arith.constant 0 : index
    %c0_3 = arith.constant 0 : index
    %3 = vector.load %arg4[%c0_2, %c0_3] : memref<1x32xf32, #tpu.memory_space<vmem>>, vector<1x32xf32>
    %c0_4 = arith.constant 0 : index
    %c0_5 = arith.constant 0 : index
    %c0_6 = arith.constant 0 : index
    %4 = vector.load %arg3[%c0_4, %c0_5, %c0_6] : memref<3x34x32xbf16, #tpu.memory_space<vmem>>, vector<1x34x32xbf16>
    %5 = vector.shape_cast %4 : vector<1x34x32xbf16> to vector<34x32xbf16>
    %cst = arith.constant dense<0.000000e+00> : vector<64x32xf32>
    %6 = tpu.matmul %2, %5, %cst {dimension_numbers = #tpu.dot_dimension_numbers<[1], [0], [0], [1], [0, 0, 1, 1], [], []>} : vector<64x34xbf16>, vector<34x32xbf16>, vector<64x32xf32> -> vector<64x32xf32>
    %c1 = arith.constant 1 : index
    %c0_7 = arith.constant 0 : index
    %c0_8 = arith.constant 0 : index
    %7 = vector.load %arg3[%c1, %c0_7, %c0_8] : memref<3x34x32xbf16, #tpu.memory_space<vmem>>, vector<1x34x32xbf16>
    %8 = vector.shape_cast %7 : vector<1x34x32xbf16> to vector<34x32xbf16>
    %cst_9 = arith.constant dense<0.000000e+00> : vector<64x32xf32>
    %9 = tpu.matmul %2, %8, %cst_9 {dimension_numbers = #tpu.dot_dimension_numbers<[1], [0], [0], [1], [0, 0, 1, 1], [], []>} : vector<64x34xbf16>, vector<34x32xbf16>, vector<64x32xf32> -> vector<64x32xf32>
    %c2 = arith.constant 2 : index
    %c0_10 = arith.constant 0 : index
    %c0_11 = arith.constant 0 : index
    %10 = vector.load %arg3[%c2, %c0_10, %c0_11] : memref<3x34x32xbf16, #tpu.memory_space<vmem>>, vector<1x34x32xbf16>
    %11 = vector.shape_cast %10 : vector<1x34x32xbf16> to vector<34x32xbf16>
    %cst_12 = arith.constant dense<0.000000e+00> : vector<64x32xf32>
    %12 = tpu.matmul %2, %11, %cst_12 {dimension_numbers = #tpu.dot_dimension_numbers<[1], [0], [0], [1], [0, 0, 1, 1], [], []>} : vector<64x34xbf16>, vector<34x32xbf16>, vector<64x32xf32> -> vector<64x32xf32>
    %cst_13 = arith.constant 0.000000e+00 : f32
    %13 = vector.broadcast %cst_13 : f32 to vector<1x32xf32>
    %14 = vector.extract_strided_slice %6 {offsets = [0, 0], sizes = [63, 32], strides = [1, 1]} : vector<64x32xf32> to vector<63x32xf32>
    %15 = tpu.concatenate %13, %14 in 0 : vector<1x32xf32>, vector<63x32xf32> -> vector<64x32xf32>
    %16 = arith.addf %9, %15 : vector<64x32xf32>
    %17 = vector.extract_strided_slice %12 {offsets = [1, 0], sizes = [63, 32], strides = [1, 1]} : vector<64x32xf32> to vector<63x32xf32>
    %18 = tpu.concatenate %17, %13 in 0 : vector<63x32xf32>, vector<1x32xf32> -> vector<64x32xf32>
    %19 = arith.addf %16, %18 : vector<64x32xf32>
    %20 = vector.broadcast %3 : vector<1x32xf32> to vector<64x32xf32>
    %21 = arith.addf %19, %20 : vector<64x32xf32>
    %c0_14 = arith.constant 0 : index
    %c0_15 = arith.constant 0 : index
    %c0_16 = arith.constant 0 : index
    %22 = vector.load %arg2[%c0_14, %c0_15, %c0_16] : memref<1x64x1xf32, #tpu.memory_space<vmem>>, vector<1x64x1xf32>
    %23 = vector.shape_cast %22 : vector<1x64x1xf32> to vector<64x1xf32>
    %24 = vector.broadcast %23 : vector<64x1xf32> to vector<64x32xf32>
    %25 = arith.mulf %21, %24 : vector<64x32xf32>
    %cst_17 = arith.constant 5.65685415 : f32
    %26 = vector.broadcast %cst_17 : f32 to vector<64x32xf32>
    %27 = arith.mulf %25, %26 : vector<64x32xf32>
    %c0_18 = arith.constant 0 : index
    %c0_19 = arith.constant 0 : index
    %c0_20 = arith.constant 0 : index
    %28 = vector.load %arg5[%c0_18, %c0_19, %c0_20] : memref<1x64x32xf32, #tpu.memory_space<vmem>>, vector<1x64x32xf32>
    %29 = vector.shape_cast %28 : vector<1x64x32xf32> to vector<64x32xf32>
    %30 = vector.shape_cast %27 : vector<64x32xf32> to vector<1x64x32xf32>
    tpu.vector_store %arg5[%c0_18, %c0_19, %c0_20], %30 {strides = array<i32>} : memref<1x64x32xf32, #tpu.memory_space<vmem>>, vector<1x64x32xf32>,
    return
  }
  func.func @transform_0(%arg0: i32) -> (i32, i32, i32) {
    %c0_i32 = arith.constant 0 : i32
    %c0_i32_0 = arith.constant 0 : i32
    %c0_i32_1 = arith.constant 0 : i32
    return %arg0, %c0_i32, %c0_i32_0 : i32, i32, i32
  }
  func.func @transform_1(%arg0: i32) -> (i32, i32, i32) {
    %c0_i32 = arith.constant 0 : i32
    %c0_i32_0 = arith.constant 0 : i32
    %c0_i32_1 = arith.constant 0 : i32
    return %arg0, %c0_i32, %c0_i32_0 : i32, i32, i32
  }
  func.func @transform_2(%arg0: i32) -> (i32, i32, i32) {
    %c0_i32 = arith.constant 0 : i32
    %c0_i32_0 = arith.constant 0 : i32
    %c0_i32_1 = arith.constant 0 : i32
    %c0_i32_2 = arith.constant 0 : i32
    return %c0_i32, %c0_i32_0, %c0_i32_1 : i32, i32, i32
  }
  func.func @transform_3(%arg0: i32) -> (i32, i32) {
    %c0_i32 = arith.constant 0 : i32
    %c0_i32_0 = arith.constant 0 : i32
    %c0_i32_1 = arith.constant 0 : i32
    return %c0_i32, %c0_i32_0 : i32, i32
  }
  func.func @transform_4(%arg0: i32) -> (i32, i32, i32) {
    %c0_i32 = arith.constant 0 : i32
    %c0_i32_0 = arith.constant 0 : i32
    %c0_i32_1 = arith.constant 0 : i32
    return %arg0, %c0_i32, %c0_i32_0 : i32, i32, i32
  }
}

module attributes {stable_mosaic.version = 11 : i64} {
  func.func @_proj_kernel(%arg0: i32, %arg1: memref<1x64x32xf32, #tpu.memory_space<vmem>>, %arg2: memref<1x64x1xf32, #tpu.memory_space<vmem>>, %arg3: memref<1x32xf32, #tpu.memory_space<vmem>>, %arg4: memref<1x32xf32, #tpu.memory_space<vmem>>, %arg5: memref<32x16xbf16, #tpu.memory_space<vmem>>, %arg6: memref<1x16xf32, #tpu.memory_space<vmem>>, %arg7: memref<1x64x16xf32, #tpu.memory_space<vmem>>) attributes {dimension_semantics = [#tpu.dimension_semantics<parallel>], iteration_bounds = array<i64: 2>, scalar_prefetch = 0 : i64, scratch_operands = 0 : i64, tpu.core_type = #tpu.core_type<tc>, window_params = [{transform_indices = @transform_0, window_bounds = array<i64: 1, 64, 32>}, {transform_indices = @transform_1, window_bounds = array<i64: 1, 64, 1>}, {pipeline_mode = #tpu.pipeline_mode<synchronous>, transform_indices = @transform_2, window_bounds = array<i64: 1, 32>}, {pipeline_mode = #tpu.pipeline_mode<synchronous>, transform_indices = @transform_3, window_bounds = array<i64: 1, 32>}, {pipeline_mode = #tpu.pipeline_mode<synchronous>, transform_indices = @transform_4, window_bounds = array<i64: 32, 16>}, {pipeline_mode = #tpu.pipeline_mode<synchronous>, transform_indices = @transform_5, window_bounds = array<i64: 1, 16>}, {transform_indices = @transform_6, window_bounds = array<i64: 1, 64, 16>}]} {
    %c0 = arith.constant 0 : index
    %c0_0 = arith.constant 0 : index
    %c0_1 = arith.constant 0 : index
    %0 = vector.load %arg1[%c0, %c0_0, %c0_1] : memref<1x64x32xf32, #tpu.memory_space<vmem>>, vector<1x64x32xf32>
    %1 = vector.shape_cast %0 : vector<1x64x32xf32> to vector<64x32xf32>
    %c0_2 = arith.constant 0 : index
    %c0_3 = arith.constant 0 : index
    %2 = vector.load %arg3[%c0_2, %c0_3] : memref<1x32xf32, #tpu.memory_space<vmem>>, vector<1x32xf32>
    %c0_4 = arith.constant 0 : index
    %c0_5 = arith.constant 0 : index
    %3 = vector.load %arg4[%c0_4, %c0_5] : memref<1x32xf32, #tpu.memory_space<vmem>>, vector<1x32xf32>
    %cst = arith.constant dense<0.000000e+00> : vector<64xf32>
    %4 = vector.multi_reduction <add>, %1, %cst [1] : vector<64x32xf32> to vector<64xf32>
    %5 = vector.shape_cast %4 : vector<64xf32> to vector<64x1xf32>
    %cst_6 = arith.constant 3.200000e+01 : f32
    %6 = vector.broadcast %cst_6 : f32 to vector<64x1xf32>
    %7 = arith.divf %5, %6 : vector<64x1xf32>
    %8 = vector.broadcast %7 : vector<64x1xf32> to vector<64x32xf32>
    %9 = arith.subf %1, %8 : vector<64x32xf32>
    %10 = arith.mulf %9, %9 : vector<64x32xf32>
    %cst_7 = arith.constant dense<0.000000e+00> : vector<64xf32>
    %11 = vector.multi_reduction <add>, %10, %cst_7 [1] : vector<64x32xf32> to vector<64xf32>
    %12 = vector.shape_cast %11 : vector<64xf32> to vector<64x1xf32>
    %cst_8 = arith.constant 3.200000e+01 : f32
    %13 = vector.broadcast %cst_8 : f32 to vector<64x1xf32>
    %14 = arith.divf %12, %13 : vector<64x1xf32>
    %cst_9 = arith.constant 9.99999996E-13 : f32
    %15 = vector.broadcast %cst_9 : f32 to vector<64x1xf32>
    %16 = arith.addf %14, %15 : vector<64x1xf32>
    %17 = math.rsqrt %16 : vector<64x1xf32>
    %18 = vector.broadcast %17 : vector<64x1xf32> to vector<64x32xf32>
    %19 = arith.mulf %9, %18 : vector<64x32xf32>
    %20 = vector.broadcast %2 : vector<1x32xf32> to vector<64x32xf32>
    %21 = arith.mulf %19, %20 : vector<64x32xf32>
    %22 = vector.broadcast %3 : vector<1x32xf32> to vector<64x32xf32>
    %23 = arith.addf %21, %22 : vector<64x32xf32>
    %24 = arith.truncf %23 : vector<64x32xf32> to vector<64x32xbf16>
    %c0_10 = arith.constant 0 : index
    %c0_11 = arith.constant 0 : index
    %25 = vector.load %arg5[%c0_10, %c0_11] : memref<32x16xbf16, #tpu.memory_space<vmem>>, vector<32x16xbf16>
    %cst_12 = arith.constant dense<0.000000e+00> : vector<64x16xf32>
    %26 = tpu.matmul %24, %25, %cst_12 {dimension_numbers = #tpu.dot_dimension_numbers<[1], [0], [0], [1], [0, 0, 1, 1], [], []>} : vector<64x32xbf16>, vector<32x16xbf16>, vector<64x16xf32> -> vector<64x16xf32>
    %c0_13 = arith.constant 0 : index
    %c0_14 = arith.constant 0 : index
    %27 = vector.load %arg6[%c0_13, %c0_14] : memref<1x16xf32, #tpu.memory_space<vmem>>, vector<1x16xf32>
    %28 = vector.broadcast %27 : vector<1x16xf32> to vector<64x16xf32>
    %29 = arith.addf %26, %28 : vector<64x16xf32>
    %c0_15 = arith.constant 0 : index
    %c0_16 = arith.constant 0 : index
    %c0_17 = arith.constant 0 : index
    %30 = vector.load %arg2[%c0_15, %c0_16, %c0_17] : memref<1x64x1xf32, #tpu.memory_space<vmem>>, vector<1x64x1xf32>
    %31 = vector.shape_cast %30 : vector<1x64x1xf32> to vector<64x1xf32>
    %32 = vector.broadcast %31 : vector<64x1xf32> to vector<64x16xf32>
    %33 = arith.mulf %29, %32 : vector<64x16xf32>
    %c0_18 = arith.constant 0 : index
    %c0_19 = arith.constant 0 : index
    %c0_20 = arith.constant 0 : index
    %34 = vector.load %arg7[%c0_18, %c0_19, %c0_20] : memref<1x64x16xf32, #tpu.memory_space<vmem>>, vector<1x64x16xf32>
    %35 = vector.shape_cast %34 : vector<1x64x16xf32> to vector<64x16xf32>
    %36 = vector.shape_cast %33 : vector<64x16xf32> to vector<1x64x16xf32>
    tpu.vector_store %arg7[%c0_18, %c0_19, %c0_20], %36 {strides = array<i32>} : memref<1x64x16xf32, #tpu.memory_space<vmem>>, vector<1x64x16xf32>,
    return
  }
  func.func @transform_0(%arg0: i32) -> (i32, i32, i32) {
    %c0_i32 = arith.constant 0 : i32
    %c0_i32_0 = arith.constant 0 : i32
    %c0_i32_1 = arith.constant 0 : i32
    return %arg0, %c0_i32, %c0_i32_0 : i32, i32, i32
  }
  func.func @transform_1(%arg0: i32) -> (i32, i32, i32) {
    %c0_i32 = arith.constant 0 : i32
    %c0_i32_0 = arith.constant 0 : i32
    %c0_i32_1 = arith.constant 0 : i32
    return %arg0, %c0_i32, %c0_i32_0 : i32, i32, i32
  }
  func.func @transform_2(%arg0: i32) -> (i32, i32) {
    %c0_i32 = arith.constant 0 : i32
    %c0_i32_0 = arith.constant 0 : i32
    %c0_i32_1 = arith.constant 0 : i32
    return %c0_i32, %c0_i32_0 : i32, i32
  }
  func.func @transform_3(%arg0: i32) -> (i32, i32) {
    %c0_i32 = arith.constant 0 : i32
    %c0_i32_0 = arith.constant 0 : i32
    %c0_i32_1 = arith.constant 0 : i32
    return %c0_i32, %c0_i32_0 : i32, i32
  }
  func.func @transform_4(%arg0: i32) -> (i32, i32) {
    %c0_i32 = arith.constant 0 : i32
    %c0_i32_0 = arith.constant 0 : i32
    %c0_i32_1 = arith.constant 0 : i32
    return %c0_i32, %c0_i32_0 : i32, i32
  }
  func.func @transform_5(%arg0: i32) -> (i32, i32) {
    %c0_i32 = arith.constant 0 : i32
    %c0_i32_0 = arith.constant 0 : i32
    %c0_i32_1 = arith.constant 0 : i32
    return %c0_i32, %c0_i32_0 : i32, i32
  }
  func.func @transform_6(%arg0: i32) -> (i32, i32, i32) {
    %c0_i32 = arith.constant 0 : i32
    %c0_i32_0 = arith.constant 0 : i32
    %c0_i32_1 = arith.constant 0 : i32
    return %arg0, %c0_i32, %c0_i32_0 : i32, i32, i32
  }
}

module attributes {stable_mosaic.version = 11 : i64} {
  func.func @_layer_kernel(%arg0: i32, %arg1: memref<1x64x32xf32, #tpu.memory_space<vmem>>, %arg2: memref<1x1x64xf32, #tpu.memory_space<vmem>>, %arg3: memref<4x32xf32, #tpu.memory_space<vmem>>, %arg4: memref<32x96xbf16, #tpu.memory_space<vmem>>, %arg5: memref<1x96xf32, #tpu.memory_space<vmem>>, %arg6: memref<2x16xf32, #tpu.memory_space<vmem>>, %arg7: memref<2x16xf32, #tpu.memory_space<vmem>>, %arg8: memref<2x16x32xbf16, #tpu.memory_space<vmem>>, %arg9: memref<2x16x32xbf16, #tpu.memory_space<vmem>>, %arg10: memref<64x32xf32, #tpu.memory_space<vmem>>, %arg11: memref<64x32xf32, #tpu.memory_space<vmem>>, %arg12: memref<64x32xbf16, #tpu.memory_space<vmem>>, %arg13: memref<2x16x32xbf16, #tpu.memory_space<vmem>>, %arg14: memref<1x32xf32, #tpu.memory_space<vmem>>, %arg15: memref<3x32x64xbf16, #tpu.memory_space<vmem>>, %arg16: memref<1x64xf32, #tpu.memory_space<vmem>>, %arg17: memref<3x64x32xbf16, #tpu.memory_space<vmem>>, %arg18: memref<1x32xf32, #tpu.memory_space<vmem>>, %arg19: memref<1x64x32xf32, #tpu.memory_space<vmem>>) attributes {dimension_semantics = [#tpu.dimension_semantics<parallel>], iteration_bounds = array<i64: 2>, scalar_prefetch = 0 : i64, scratch_operands = 0 : i64, tpu.core_type = #tpu.core_type<tc>, window_params = [{transform_indices = @transform_0, window_bounds = array<i64: 1, 64, 32>}, {transform_indices = @transform_1, window_bounds = array<i64: 1, 1, 64>}, {pipeline_mode = #tpu.pipeline_mode<synchronous>, transform_indices = @transform_2, window_bounds = array<i64: 4, 32>}, {pipeline_mode = #tpu.pipeline_mode<synchronous>, transform_indices = @transform_3, window_bounds = array<i64: 32, 96>}, {pipeline_mode = #tpu.pipeline_mode<synchronous>, transform_indices = @transform_4, window_bounds = array<i64: 1, 96>}, {pipeline_mode = #tpu.pipeline_mode<synchronous>, transform_indices = @transform_5, window_bounds = array<i64: 2, 16>}, {pipeline_mode = #tpu.pipeline_mode<synchronous>, transform_indices = @transform_6, window_bounds = array<i64: 2, 16>}, {pipeline_mode = #tpu.pipeline_mode<synchronous>, transform_indices = @transform_7, window_bounds = array<i64: 2, 16, 32>}, {pipeline_mode = #tpu.pipeline_mode<synchronous>, transform_indices = @transform_8, window_bounds = array<i64: 2, 16, 32>}, {pipeline_mode = #tpu.pipeline_mode<synchronous>, transform_indices = @transform_9, window_bounds = array<i64: 64, 32>}, {pipeline_mode = #tpu.pipeline_mode<synchronous>, transform_indices = @transform_10, window_bounds = array<i64: 64, 32>}, {pipeline_mode = #tpu.pipeline_mode<synchronous>, transform_indices = @transform_11, window_bounds = array<i64: 64, 32>}, {pipeline_mode = #tpu.pipeline_mode<synchronous>, transform_indices = @transform_12, window_bounds = array<i64: 2, 16, 32>}, {pipeline_mode = #tpu.pipeline_mode<synchronous>, transform_indices = @transform_13, window_bounds = array<i64: 1, 32>}, {pipeline_mode = #tpu.pipeline_mode<synchronous>, transform_indices = @transform_14, window_bounds = array<i64: 3, 32, 64>}, {pipeline_mode = #tpu.pipeline_mode<synchronous>, transform_indices = @transform_15, window_bounds = array<i64: 1, 64>}, {pipeline_mode = #tpu.pipeline_mode<synchronous>, transform_indices = @transform_16, window_bounds = array<i64: 3, 64, 32>}, {pipeline_mode = #tpu.pipeline_mode<synchronous>, transform_indices = @transform_17, window_bounds = array<i64: 1, 32>}, {transform_indices = @transform_18, window_bounds = array<i64: 1, 64, 32>}]} {
    %c0 = arith.constant 0 : index
    %c0_0 = arith.constant 0 : index
    %c0_1 = arith.constant 0 : index
    %0 = vector.load %arg1[%c0, %c0_0, %c0_1] : memref<1x64x32xf32, #tpu.memory_space<vmem>>, vector<1x64x32xf32>
    %1 = vector.shape_cast %0 : vector<1x64x32xf32> to vector<64x32xf32>
    %c0_2 = arith.constant 0 : index
    %c0_3 = arith.constant 0 : index
    %c0_4 = arith.constant 0 : index
    %2 = vector.load %arg2[%c0_2, %c0_3, %c0_4] : memref<1x1x64xf32, #tpu.memory_space<vmem>>, vector<1x1x64xf32>
    %3 = vector.shape_cast %2 : vector<1x1x64xf32> to vector<1x64xf32>
    %cst = arith.constant 0.000000e+00 : f32
    %4 = vector.broadcast %cst : f32 to vector<1x64xf32>
    %5 = arith.cmpf oeq, %3, %4 : vector<1x64xf32>
    %c0_5 = arith.constant 0 : index
    %c0_6 = arith.constant 0 : index
    %6 = vector.load %arg3[%c0_5, %c0_6] : memref<4x32xf32, #tpu.memory_space<vmem>>, vector<1x32xf32>
    %c1 = arith.constant 1 : index
    %c0_7 = arith.constant 0 : index
    %7 = vector.load %arg3[%c1, %c0_7] : memref<4x32xf32, #tpu.memory_space<vmem>>, vector<1x32xf32>
    %cst_8 = arith.constant dense<0.000000e+00> : vector<64xf32>
    %8 = vector.multi_reduction <add>, %1, %cst_8 [1] : vector<64x32xf32> to vector<64xf32>
    %9 = vector.shape_cast %8 : vector<64xf32> to vector<64x1xf32>
    %cst_9 = arith.constant 3.200000e+01 : f32
    %10 = vector.broadcast %cst_9 : f32 to vector<64x1xf32>
    %11 = arith.divf %9, %10 : vector<64x1xf32>
    %12 = vector.broadcast %11 : vector<64x1xf32> to vector<64x32xf32>
    %13 = arith.subf %1, %12 : vector<64x32xf32>
    %14 = arith.mulf %13, %13 : vector<64x32xf32>
    %cst_10 = arith.constant dense<0.000000e+00> : vector<64xf32>
    %15 = vector.multi_reduction <add>, %14, %cst_10 [1] : vector<64x32xf32> to vector<64xf32>
    %16 = vector.shape_cast %15 : vector<64xf32> to vector<64x1xf32>
    %cst_11 = arith.constant 3.200000e+01 : f32
    %17 = vector.broadcast %cst_11 : f32 to vector<64x1xf32>
    %18 = arith.divf %16, %17 : vector<64x1xf32>
    %cst_12 = arith.constant 9.99999996E-13 : f32
    %19 = vector.broadcast %cst_12 : f32 to vector<64x1xf32>
    %20 = arith.addf %18, %19 : vector<64x1xf32>
    %21 = math.rsqrt %20 : vector<64x1xf32>
    %22 = vector.broadcast %21 : vector<64x1xf32> to vector<64x32xf32>
    %23 = arith.mulf %13, %22 : vector<64x32xf32>
    %24 = vector.broadcast %6 : vector<1x32xf32> to vector<64x32xf32>
    %25 = arith.mulf %23, %24 : vector<64x32xf32>
    %26 = vector.broadcast %7 : vector<1x32xf32> to vector<64x32xf32>
    %27 = arith.addf %25, %26 : vector<64x32xf32>
    %28 = arith.truncf %27 : vector<64x32xf32> to vector<64x32xbf16>
    %c0_13 = arith.constant 0 : index
    %c0_14 = arith.constant 0 : index
    %29 = vector.load %arg4[%c0_13, %c0_14] : memref<32x96xbf16, #tpu.memory_space<vmem>>, vector<32x96xbf16>
    %cst_15 = arith.constant dense<0.000000e+00> : vector<64x96xf32>
    %30 = tpu.matmul %28, %29, %cst_15 {dimension_numbers = #tpu.dot_dimension_numbers<[1], [0], [0], [1], [0, 0, 1, 1], [], []>} : vector<64x32xbf16>, vector<32x96xbf16>, vector<64x96xf32> -> vector<64x96xf32>
    %c0_16 = arith.constant 0 : index
    %c0_17 = arith.constant 0 : index
    %31 = vector.load %arg5[%c0_16, %c0_17] : memref<1x96xf32, #tpu.memory_space<vmem>>, vector<1x96xf32>
    %32 = vector.broadcast %31 : vector<1x96xf32> to vector<64x96xf32>
    %33 = arith.addf %30, %32 : vector<64x96xf32>
    %c0_18 = arith.constant 0 : index
    %c0_19 = arith.constant 0 : index
    %34 = vector.load %arg10[%c0_18, %c0_19] : memref<64x32xf32, #tpu.memory_space<vmem>>, vector<64x32xf32>
    %c0_20 = arith.constant 0 : index
    %c0_21 = arith.constant 0 : index
    %35 = vector.load %arg11[%c0_20, %c0_21] : memref<64x32xf32, #tpu.memory_space<vmem>>, vector<64x32xf32>
    %c0_22 = arith.constant 0 : index
    %c0_23 = arith.constant 0 : index
    %36 = vector.load %arg12[%c0_22, %c0_23] : memref<64x32xbf16, #tpu.memory_space<vmem>>, vector<64x32xbf16>
    %c0_24 = arith.constant 0 : index
    %c0_25 = arith.constant 0 : index
    %37 = vector.load %arg14[%c0_24, %c0_25] : memref<1x32xf32, #tpu.memory_space<vmem>>, vector<1x32xf32>
    %38 = vector.extract_strided_slice %33 {offsets = [0, 0], sizes = [64, 16], strides = [1, 1]} : vector<64x96xf32> to vector<64x16xf32>
    %39 = vector.extract_strided_slice %33 {offsets = [0, 32], sizes = [64, 16], strides = [1, 1]} : vector<64x96xf32> to vector<64x16xf32>
    %40 = vector.extract_strided_slice %33 {offsets = [0, 64], sizes = [64, 16], strides = [1, 1]} : vector<64x96xf32> to vector<64x16xf32>
    %c0_26 = arith.constant 0 : index
    %c0_27 = arith.constant 0 : index
    %41 = vector.load %arg6[%c0_26, %c0_27] : memref<2x16xf32, #tpu.memory_space<vmem>>, vector<1x16xf32>
    %42 = vector.broadcast %41 : vector<1x16xf32> to vector<64x16xf32>
    %43 = arith.addf %38, %42 : vector<64x16xf32>
    %44 = arith.truncf %43 : vector<64x16xf32> to vector<64x16xbf16>
    %c0_28 = arith.constant 0 : index
    %c0_29 = arith.constant 0 : index
    %45 = vector.load %arg7[%c0_28, %c0_29] : memref<2x16xf32, #tpu.memory_space<vmem>>, vector<1x16xf32>
    %46 = vector.broadcast %45 : vector<1x16xf32> to vector<64x16xf32>
    %47 = arith.addf %38, %46 : vector<64x16xf32>
    %48 = arith.truncf %47 : vector<64x16xf32> to vector<64x16xbf16>
    %49 = arith.truncf %39 : vector<64x16xf32> to vector<64x16xbf16>
    %cst_30 = arith.constant dense<0.000000e+00> : vector<64x64xf32>
    %50 = tpu.matmul %44, %49, %cst_30 {dimension_numbers = #tpu.dot_dimension_numbers<[1], [1], [0], [0], [0, 0, 1, 0], [], []>} : vector<64x16xbf16>, vector<64x16xbf16>, vector<64x64xf32> -> vector<64x64xf32>
    %c0_31 = arith.constant 0 : index
    %c0_32 = arith.constant 0 : index
    %c0_33 = arith.constant 0 : index
    %51 = vector.load %arg8[%c0_31, %c0_32, %c0_33] : memref<2x16x32xbf16, #tpu.memory_space<vmem>>, vector<1x16x32xbf16>
    %52 = vector.shape_cast %51 : vector<1x16x32xbf16> to vector<16x32xbf16>
    %cst_34 = arith.constant dense<0.000000e+00> : vector<64x32xf32>
    %53 = tpu.matmul %48, %52, %cst_34 {dimension_numbers = #tpu.dot_dimension_numbers<[1], [0], [0], [1], [0, 0, 1, 1], [], []>} : vector<64x16xbf16>, vector<16x32xbf16>, vector<64x32xf32> -> vector<64x32xf32>
    %c0_35 = arith.constant 0 : index
    %c0_36 = arith.constant 0 : index
    %c0_37 = arith.constant 0 : index
    %54 = vector.load %arg9[%c0_35, %c0_36, %c0_37] : memref<2x16x32xbf16, #tpu.memory_space<vmem>>, vector<1x16x32xbf16>
    %55 = vector.shape_cast %54 : vector<1x16x32xbf16> to vector<16x32xbf16>
    %cst_38 = arith.constant dense<0.000000e+00> : vector<64x32xf32>
    %56 = tpu.matmul %48, %55, %cst_38 {dimension_numbers = #tpu.dot_dimension_numbers<[1], [0], [0], [1], [0, 0, 1, 1], [], []>} : vector<64x16xbf16>, vector<16x32xbf16>, vector<64x32xf32> -> vector<64x32xf32>
    %57 = arith.mulf %53, %34 : vector<64x32xf32>
    %58 = arith.mulf %56, %35 : vector<64x32xf32>
    %59 = arith.addf %57, %58 : vector<64x32xf32>
    %60 = arith.truncf %59 : vector<64x32xf32> to vector<64x32xbf16>
    %cst_39 = arith.constant dense<0.000000e+00> : vector<64x64xf32>
    %61 = tpu.matmul %60, %36, %cst_39 {dimension_numbers = #tpu.dot_dimension_numbers<[1], [1], [0], [0], [0, 0, 1, 0], [], []>} : vector<64x32xbf16>, vector<64x32xbf16>, vector<64x64xf32> -> vector<64x64xf32>
    %62 = arith.addf %50, %61 : vector<64x64xf32>
    %cst_40 = arith.constant -3.40282347E+38 : f32
    %63 = vector.shape_cast %5 : vector<1x64xi1> to vector<1x64xi1>
    %64 = vector.broadcast %63 : vector<1x64xi1> to vector<64x64xi1>
    %65 = vector.broadcast %cst_40 : f32 to vector<64x64xf32>
    %66 = arith.select %64, %65, %62 : vector<64x64xi1>, vector<64x64xf32>
    %cst_41 = arith.constant dense<0xFF800000> : vector<64xf32>
    %67 = vector.multi_reduction <maximumf>, %66, %cst_41 [1] : vector<64x64xf32> to vector<64xf32>
    %68 = vector.shape_cast %67 : vector<64xf32> to vector<64x1xf32>
    %69 = vector.broadcast %68 : vector<64x1xf32> to vector<64x64xf32>
    %70 = arith.subf %66, %69 : vector<64x64xf32>
    %71 = math.exp %70 : vector<64x64xf32>
    %cst_42 = arith.constant dense<0.000000e+00> : vector<64xf32>
    %72 = vector.multi_reduction <add>, %71, %cst_42 [1] : vector<64x64xf32> to vector<64xf32>
    %73 = vector.shape_cast %72 : vector<64xf32> to vector<64x1xf32>
    %74 = tpu.reciprocal %73 {approx = true} : vector<64x1xf32> -> vector<64x1xf32>
    %75 = vector.broadcast %74 : vector<64x1xf32> to vector<64x64xf32>
    %76 = arith.mulf %71, %75 : vector<64x64xf32>
    %cst_43 = arith.constant 0.000000e+00 : f32
    %77 = vector.shape_cast %5 : vector<1x64xi1> to vector<1x64xi1>
    %78 = vector.broadcast %77 : vector<1x64xi1> to vector<64x64xi1>
    %79 = vector.broadcast %cst_43 : f32 to vector<64x64xf32>
    %80 = arith.select %78, %79, %76 : vector<64x64xi1>, vector<64x64xf32>
    %81 = arith.truncf %80 : vector<64x64xf32> to vector<64x64xbf16>
    %82 = arith.truncf %40 : vector<64x16xf32> to vector<64x16xbf16>
    %cst_44 = arith.constant dense<0.000000e+00> : vector<64x16xf32>
    %83 = tpu.matmul %81, %82, %cst_44 {dimension_numbers = #tpu.dot_dimension_numbers<[1], [0], [0], [1], [0, 0, 1, 1], [], []>} : vector<64x64xbf16>, vector<64x16xbf16>, vector<64x16xf32> -> vector<64x16xf32>
    %84 = arith.truncf %83 : vector<64x16xf32> to vector<64x16xbf16>
    %c0_45 = arith.constant 0 : index
    %c0_46 = arith.constant 0 : index
    %c0_47 = arith.constant 0 : index
    %85 = vector.load %arg13[%c0_45, %c0_46, %c0_47] : memref<2x16x32xbf16, #tpu.memory_space<vmem>>, vector<1x16x32xbf16>
    %86 = vector.shape_cast %85 : vector<1x16x32xbf16> to vector<16x32xbf16>
    %cst_48 = arith.constant dense<0.000000e+00> : vector<64x32xf32>
    %87 = tpu.matmul %84, %86, %cst_48 {dimension_numbers = #tpu.dot_dimension_numbers<[1], [0], [0], [1], [0, 0, 1, 1], [], []>} : vector<64x16xbf16>, vector<16x32xbf16>, vector<64x32xf32> -> vector<64x32xf32>
    %88 = vector.broadcast %37 : vector<1x32xf32> to vector<64x32xf32>
    %89 = arith.addf %88, %87 : vector<64x32xf32>
    %90 = vector.extract_strided_slice %33 {offsets = [0, 16], sizes = [64, 16], strides = [1, 1]} : vector<64x96xf32> to vector<64x16xf32>
    %91 = vector.extract_strided_slice %33 {offsets = [0, 48], sizes = [64, 16], strides = [1, 1]} : vector<64x96xf32> to vector<64x16xf32>
    %92 = vector.extract_strided_slice %33 {offsets = [0, 80], sizes = [64, 16], strides = [1, 1]} : vector<64x96xf32> to vector<64x16xf32>
    %c1_49 = arith.constant 1 : index
    %c0_50 = arith.constant 0 : index
    %93 = vector.load %arg6[%c1_49, %c0_50] : memref<2x16xf32, #tpu.memory_space<vmem>>, vector<1x16xf32>
    %94 = vector.broadcast %93 : vector<1x16xf32> to vector<64x16xf32>
    %95 = arith.addf %90, %94 : vector<64x16xf32>
    %96 = arith.truncf %95 : vector<64x16xf32> to vector<64x16xbf16>
    %c1_51 = arith.constant 1 : index
    %c0_52 = arith.constant 0 : index
    %97 = vector.load %arg7[%c1_51, %c0_52] : memref<2x16xf32, #tpu.memory_space<vmem>>, vector<1x16xf32>
    %98 = vector.broadcast %97 : vector<1x16xf32> to vector<64x16xf32>
    %99 = arith.addf %90, %98 : vector<64x16xf32>
    %100 = arith.truncf %99 : vector<64x16xf32> to vector<64x16xbf16>
    %101 = arith.truncf %91 : vector<64x16xf32> to vector<64x16xbf16>
    %cst_53 = arith.constant dense<0.000000e+00> : vector<64x64xf32>
    %102 = tpu.matmul %96, %101, %cst_53 {dimension_numbers = #tpu.dot_dimension_numbers<[1], [1], [0], [0], [0, 0, 1, 0], [], []>} : vector<64x16xbf16>, vector<64x16xbf16>, vector<64x64xf32> -> vector<64x64xf32>
    %c1_54 = arith.constant 1 : index
    %c0_55 = arith.constant 0 : index
    %c0_56 = arith.constant 0 : index
    %103 = vector.load %arg8[%c1_54, %c0_55, %c0_56] : memref<2x16x32xbf16, #tpu.memory_space<vmem>>, vector<1x16x32xbf16>
    %104 = vector.shape_cast %103 : vector<1x16x32xbf16> to vector<16x32xbf16>
    %cst_57 = arith.constant dense<0.000000e+00> : vector<64x32xf32>
    %105 = tpu.matmul %100, %104, %cst_57 {dimension_numbers = #tpu.dot_dimension_numbers<[1], [0], [0], [1], [0, 0, 1, 1], [], []>} : vector<64x16xbf16>, vector<16x32xbf16>, vector<64x32xf32> -> vector<64x32xf32>
    %c1_58 = arith.constant 1 : index
    %c0_59 = arith.constant 0 : index
    %c0_60 = arith.constant 0 : index
    %106 = vector.load %arg9[%c1_58, %c0_59, %c0_60] : memref<2x16x32xbf16, #tpu.memory_space<vmem>>, vector<1x16x32xbf16>
    %107 = vector.shape_cast %106 : vector<1x16x32xbf16> to vector<16x32xbf16>
    %cst_61 = arith.constant dense<0.000000e+00> : vector<64x32xf32>
    %108 = tpu.matmul %100, %107, %cst_61 {dimension_numbers = #tpu.dot_dimension_numbers<[1], [0], [0], [1], [0, 0, 1, 1], [], []>} : vector<64x16xbf16>, vector<16x32xbf16>, vector<64x32xf32> -> vector<64x32xf32>
    %109 = arith.mulf %105, %34 : vector<64x32xf32>
    %110 = arith.mulf %108, %35 : vector<64x32xf32>
    %111 = arith.addf %109, %110 : vector<64x32xf32>
    %112 = arith.truncf %111 : vector<64x32xf32> to vector<64x32xbf16>
    %cst_62 = arith.constant dense<0.000000e+00> : vector<64x64xf32>
    %113 = tpu.matmul %112, %36, %cst_62 {dimension_numbers = #tpu.dot_dimension_numbers<[1], [1], [0], [0], [0, 0, 1, 0], [], []>} : vector<64x32xbf16>, vector<64x32xbf16>, vector<64x64xf32> -> vector<64x64xf32>
    %114 = arith.addf %102, %113 : vector<64x64xf32>
    %cst_63 = arith.constant -3.40282347E+38 : f32
    %115 = vector.shape_cast %5 : vector<1x64xi1> to vector<1x64xi1>
    %116 = vector.broadcast %115 : vector<1x64xi1> to vector<64x64xi1>
    %117 = vector.broadcast %cst_63 : f32 to vector<64x64xf32>
    %118 = arith.select %116, %117, %114 : vector<64x64xi1>, vector<64x64xf32>
    %cst_64 = arith.constant dense<0xFF800000> : vector<64xf32>
    %119 = vector.multi_reduction <maximumf>, %118, %cst_64 [1] : vector<64x64xf32> to vector<64xf32>
    %120 = vector.shape_cast %119 : vector<64xf32> to vector<64x1xf32>
    %121 = vector.broadcast %120 : vector<64x1xf32> to vector<64x64xf32>
    %122 = arith.subf %118, %121 : vector<64x64xf32>
    %123 = math.exp %122 : vector<64x64xf32>
    %cst_65 = arith.constant dense<0.000000e+00> : vector<64xf32>
    %124 = vector.multi_reduction <add>, %123, %cst_65 [1] : vector<64x64xf32> to vector<64xf32>
    %125 = vector.shape_cast %124 : vector<64xf32> to vector<64x1xf32>
    %126 = tpu.reciprocal %125 {approx = true} : vector<64x1xf32> -> vector<64x1xf32>
    %127 = vector.broadcast %126 : vector<64x1xf32> to vector<64x64xf32>
    %128 = arith.mulf %123, %127 : vector<64x64xf32>
    %cst_66 = arith.constant 0.000000e+00 : f32
    %129 = vector.shape_cast %5 : vector<1x64xi1> to vector<1x64xi1>
    %130 = vector.broadcast %129 : vector<1x64xi1> to vector<64x64xi1>
    %131 = vector.broadcast %cst_66 : f32 to vector<64x64xf32>
    %132 = arith.select %130, %131, %128 : vector<64x64xi1>, vector<64x64xf32>
    %133 = arith.truncf %132 : vector<64x64xf32> to vector<64x64xbf16>
    %134 = arith.truncf %92 : vector<64x16xf32> to vector<64x16xbf16>
    %cst_67 = arith.constant dense<0.000000e+00> : vector<64x16xf32>
    %135 = tpu.matmul %133, %134, %cst_67 {dimension_numbers = #tpu.dot_dimension_numbers<[1], [0], [0], [1], [0, 0, 1, 1], [], []>} : vector<64x64xbf16>, vector<64x16xbf16>, vector<64x16xf32> -> vector<64x16xf32>
    %136 = arith.truncf %135 : vector<64x16xf32> to vector<64x16xbf16>
    %c1_68 = arith.constant 1 : index
    %c0_69 = arith.constant 0 : index
    %c0_70 = arith.constant 0 : index
    %137 = vector.load %arg13[%c1_68, %c0_69, %c0_70] : memref<2x16x32xbf16, #tpu.memory_space<vmem>>, vector<1x16x32xbf16>
    %138 = vector.shape_cast %137 : vector<1x16x32xbf16> to vector<16x32xbf16>
    %cst_71 = arith.constant dense<0.000000e+00> : vector<64x32xf32>
    %139 = tpu.matmul %136, %138, %cst_71 {dimension_numbers = #tpu.dot_dimension_numbers<[1], [0], [0], [1], [0, 0, 1, 1], [], []>} : vector<64x16xbf16>, vector<16x32xbf16>, vector<64x32xf32> -> vector<64x32xf32>
    %140 = arith.addf %89, %139 : vector<64x32xf32>
    %141 = arith.addf %1, %140 : vector<64x32xf32>
    %c2 = arith.constant 2 : index
    %c0_72 = arith.constant 0 : index
    %142 = vector.load %arg3[%c2, %c0_72] : memref<4x32xf32, #tpu.memory_space<vmem>>, vector<1x32xf32>
    %c3 = arith.constant 3 : index
    %c0_73 = arith.constant 0 : index
    %143 = vector.load %arg3[%c3, %c0_73] : memref<4x32xf32, #tpu.memory_space<vmem>>, vector<1x32xf32>
    %cst_74 = arith.constant dense<0.000000e+00> : vector<64xf32>
    %144 = vector.multi_reduction <add>, %141, %cst_74 [1] : vector<64x32xf32> to vector<64xf32>
    %145 = vector.shape_cast %144 : vector<64xf32> to vector<64x1xf32>
    %cst_75 = arith.constant 3.200000e+01 : f32
    %146 = vector.broadcast %cst_75 : f32 to vector<64x1xf32>
    %147 = arith.divf %145, %146 : vector<64x1xf32>
    %148 = vector.broadcast %147 : vector<64x1xf32> to vector<64x32xf32>
    %149 = arith.subf %141, %148 : vector<64x32xf32>
    %150 = arith.mulf %149, %149 : vector<64x32xf32>
    %cst_76 = arith.constant dense<0.000000e+00> : vector<64xf32>
    %151 = vector.multi_reduction <add>, %150, %cst_76 [1] : vector<64x32xf32> to vector<64xf32>
    %152 = vector.shape_cast %151 : vector<64xf32> to vector<64x1xf32>
    %cst_77 = arith.constant 3.200000e+01 : f32
    %153 = vector.broadcast %cst_77 : f32 to vector<64x1xf32>
    %154 = arith.divf %152, %153 : vector<64x1xf32>
    %cst_78 = arith.constant 9.99999996E-13 : f32
    %155 = vector.broadcast %cst_78 : f32 to vector<64x1xf32>
    %156 = arith.addf %154, %155 : vector<64x1xf32>
    %157 = math.rsqrt %156 : vector<64x1xf32>
    %158 = vector.broadcast %157 : vector<64x1xf32> to vector<64x32xf32>
    %159 = arith.mulf %149, %158 : vector<64x32xf32>
    %160 = vector.broadcast %142 : vector<1x32xf32> to vector<64x32xf32>
    %161 = arith.mulf %159, %160 : vector<64x32xf32>
    %162 = vector.broadcast %143 : vector<1x32xf32> to vector<64x32xf32>
    %163 = arith.addf %161, %162 : vector<64x32xf32>
    %164 = arith.truncf %163 : vector<64x32xf32> to vector<64x32xbf16>
    %c0_79 = arith.constant 0 : index
    %c0_80 = arith.constant 0 : index
    %165 = vector.load %arg16[%c0_79, %c0_80] : memref<1x64xf32, #tpu.memory_space<vmem>>, vector<1x64xf32>
    %c0_81 = arith.constant 0 : index
    %c0_82 = arith.constant 0 : index
    %c0_83 = arith.constant 0 : index
    %166 = vector.load %arg15[%c0_81, %c0_82, %c0_83] : memref<3x32x64xbf16, #tpu.memory_space<vmem>>, vector<1x32x64xbf16>
    %167 = vector.shape_cast %166 : vector<1x32x64xbf16> to vector<32x64xbf16>
    %cst_84 = arith.constant dense<0.000000e+00> : vector<64x64xf32>
    %168 = tpu.matmul %164, %167, %cst_84 {dimension_numbers = #tpu.dot_dimension_numbers<[1], [0], [0], [1], [0, 0, 1, 1], [], []>} : vector<64x32xbf16>, vector<32x64xbf16>, vector<64x64xf32> -> vector<64x64xf32>
    %c1_85 = arith.constant 1 : index
    %c0_86 = arith.constant 0 : index
    %c0_87 = arith.constant 0 : index
    %169 = vector.load %arg15[%c1_85, %c0_86, %c0_87] : memref<3x32x64xbf16, #tpu.memory_space<vmem>>, vector<1x32x64xbf16>
    %170 = vector.shape_cast %169 : vector<1x32x64xbf16> to vector<32x64xbf16>
    %cst_88 = arith.constant dense<0.000000e+00> : vector<64x64xf32>
    %171 = tpu.matmul %164, %170, %cst_88 {dimension_numbers = #tpu.dot_dimension_numbers<[1], [0], [0], [1], [0, 0, 1, 1], [], []>} : vector<64x32xbf16>, vector<32x64xbf16>, vector<64x64xf32> -> vector<64x64xf32>
    %c2_89 = arith.constant 2 : index
    %c0_90 = arith.constant 0 : index
    %c0_91 = arith.constant 0 : index
    %172 = vector.load %arg15[%c2_89, %c0_90, %c0_91] : memref<3x32x64xbf16, #tpu.memory_space<vmem>>, vector<1x32x64xbf16>
    %173 = vector.shape_cast %172 : vector<1x32x64xbf16> to vector<32x64xbf16>
    %cst_92 = arith.constant dense<0.000000e+00> : vector<64x64xf32>
    %174 = tpu.matmul %164, %173, %cst_92 {dimension_numbers = #tpu.dot_dimension_numbers<[1], [0], [0], [1], [0, 0, 1, 1], [], []>} : vector<64x32xbf16>, vector<32x64xbf16>, vector<64x64xf32> -> vector<64x64xf32>
    %cst_93 = arith.constant 0.000000e+00 : f32
    %175 = vector.broadcast %cst_93 : f32 to vector<1x64xf32>
    %176 = vector.extract_strided_slice %168 {offsets = [0, 0], sizes = [63, 64], strides = [1, 1]} : vector<64x64xf32> to vector<63x64xf32>
    %177 = tpu.concatenate %175, %176 in 0 : vector<1x64xf32>, vector<63x64xf32> -> vector<64x64xf32>
    %178 = arith.addf %171, %177 : vector<64x64xf32>
    %179 = vector.extract_strided_slice %174 {offsets = [1, 0], sizes = [63, 64], strides = [1, 1]} : vector<64x64xf32> to vector<63x64xf32>
    %180 = tpu.concatenate %179, %175 in 0 : vector<63x64xf32>, vector<1x64xf32> -> vector<64x64xf32>
    %181 = arith.addf %178, %180 : vector<64x64xf32>
    %182 = vector.broadcast %165 : vector<1x64xf32> to vector<64x64xf32>
    %183 = arith.addf %181, %182 : vector<64x64xf32>
    %cst_94 = arith.constant 0.000000e+00 : f32
    %184 = vector.broadcast %cst_94 : f32 to vector<64x64xf32>
    %185 = arith.maximumf %183, %184 : vector<64x64xf32>
    %186 = arith.truncf %185 : vector<64x64xf32> to vector<64x64xbf16>
    %c0_95 = arith.constant 0 : index
    %c0_96 = arith.constant 0 : index
    %187 = vector.load %arg18[%c0_95, %c0_96] : memref<1x32xf32, #tpu.memory_space<vmem>>, vector<1x32xf32>
    %c0_97 = arith.constant 0 : index
    %c0_98 = arith.constant 0 : index
    %c0_99 = arith.constant 0 : index
    %188 = vector.load %arg17[%c0_97, %c0_98, %c0_99] : memref<3x64x32xbf16, #tpu.memory_space<vmem>>, vector<1x64x32xbf16>
    %189 = vector.shape_cast %188 : vector<1x64x32xbf16> to vector<64x32xbf16>
    %cst_100 = arith.constant dense<0.000000e+00> : vector<64x32xf32>
    %190 = tpu.matmul %186, %189, %cst_100 {dimension_numbers = #tpu.dot_dimension_numbers<[1], [0], [0], [1], [0, 0, 1, 1], [], []>} : vector<64x64xbf16>, vector<64x32xbf16>, vector<64x32xf32> -> vector<64x32xf32>
    %c1_101 = arith.constant 1 : index
    %c0_102 = arith.constant 0 : index
    %c0_103 = arith.constant 0 : index
    %191 = vector.load %arg17[%c1_101, %c0_102, %c0_103] : memref<3x64x32xbf16, #tpu.memory_space<vmem>>, vector<1x64x32xbf16>
    %192 = vector.shape_cast %191 : vector<1x64x32xbf16> to vector<64x32xbf16>
    %cst_104 = arith.constant dense<0.000000e+00> : vector<64x32xf32>
    %193 = tpu.matmul %186, %192, %cst_104 {dimension_numbers = #tpu.dot_dimension_numbers<[1], [0], [0], [1], [0, 0, 1, 1], [], []>} : vector<64x64xbf16>, vector<64x32xbf16>, vector<64x32xf32> -> vector<64x32xf32>
    %c2_105 = arith.constant 2 : index
    %c0_106 = arith.constant 0 : index
    %c0_107 = arith.constant 0 : index
    %194 = vector.load %arg17[%c2_105, %c0_106, %c0_107] : memref<3x64x32xbf16, #tpu.memory_space<vmem>>, vector<1x64x32xbf16>
    %195 = vector.shape_cast %194 : vector<1x64x32xbf16> to vector<64x32xbf16>
    %cst_108 = arith.constant dense<0.000000e+00> : vector<64x32xf32>
    %196 = tpu.matmul %186, %195, %cst_108 {dimension_numbers = #tpu.dot_dimension_numbers<[1], [0], [0], [1], [0, 0, 1, 1], [], []>} : vector<64x64xbf16>, vector<64x32xbf16>, vector<64x32xf32> -> vector<64x32xf32>
    %cst_109 = arith.constant 0.000000e+00 : f32
    %197 = vector.broadcast %cst_109 : f32 to vector<1x32xf32>
    %198 = vector.extract_strided_slice %190 {offsets = [0, 0], sizes = [63, 32], strides = [1, 1]} : vector<64x32xf32> to vector<63x32xf32>
    %199 = tpu.concatenate %197, %198 in 0 : vector<1x32xf32>, vector<63x32xf32> -> vector<64x32xf32>
    %200 = arith.addf %193, %199 : vector<64x32xf32>
    %201 = vector.extract_strided_slice %196 {offsets = [1, 0], sizes = [63, 32], strides = [1, 1]} : vector<64x32xf32> to vector<63x32xf32>
    %202 = tpu.concatenate %201, %197 in 0 : vector<63x32xf32>, vector<1x32xf32> -> vector<64x32xf32>
    %203 = arith.addf %200, %202 : vector<64x32xf32>
    %204 = vector.broadcast %187 : vector<1x32xf32> to vector<64x32xf32>
    %205 = arith.addf %203, %204 : vector<64x32xf32>
    %206 = arith.addf %141, %205 : vector<64x32xf32>
    %c0_110 = arith.constant 0 : index
    %c0_111 = arith.constant 0 : index
    %c0_112 = arith.constant 0 : index
    %207 = vector.load %arg19[%c0_110, %c0_111, %c0_112] : memref<1x64x32xf32, #tpu.memory_space<vmem>>, vector<1x64x32xf32>
    %208 = vector.shape_cast %207 : vector<1x64x32xf32> to vector<64x32xf32>
    %209 = vector.shape_cast %206 : vector<64x32xf32> to vector<1x64x32xf32>
    tpu.vector_store %arg19[%c0_110, %c0_111, %c0_112], %209 {strides = array<i32>} : memref<1x64x32xf32, #tpu.memory_space<vmem>>, vector<1x64x32xf32>,
    return
  }
  func.func @transform_0(%arg0: i32) -> (i32, i32, i32) {
    %c0_i32 = arith.constant 0 : i32
    %c0_i32_0 = arith.constant 0 : i32
    %c0_i32_1 = arith.constant 0 : i32
    return %arg0, %c0_i32, %c0_i32_0 : i32, i32, i32
  }
  func.func @transform_1(%arg0: i32) -> (i32, i32, i32) {
    %c0_i32 = arith.constant 0 : i32
    %c0_i32_0 = arith.constant 0 : i32
    %c0_i32_1 = arith.constant 0 : i32
    return %arg0, %c0_i32, %c0_i32_0 : i32, i32, i32
  }
  func.func @transform_2(%arg0: i32) -> (i32, i32) {
    %c0_i32 = arith.constant 0 : i32
    %c0_i32_0 = arith.constant 0 : i32
    %c0_i32_1 = arith.constant 0 : i32
    return %c0_i32, %c0_i32_0 : i32, i32
  }
  func.func @transform_3(%arg0: i32) -> (i32, i32) {
    %c0_i32 = arith.constant 0 : i32
    %c0_i32_0 = arith.constant 0 : i32
    %c0_i32_1 = arith.constant 0 : i32
    return %c0_i32, %c0_i32_0 : i32, i32
  }
  func.func @transform_4(%arg0: i32) -> (i32, i32) {
    %c0_i32 = arith.constant 0 : i32
    %c0_i32_0 = arith.constant 0 : i32
    %c0_i32_1 = arith.constant 0 : i32
    return %c0_i32, %c0_i32_0 : i32, i32
  }
  func.func @transform_5(%arg0: i32) -> (i32, i32) {
    %c0_i32 = arith.constant 0 : i32
    %c0_i32_0 = arith.constant 0 : i32
    %c0_i32_1 = arith.constant 0 : i32
    return %c0_i32, %c0_i32_0 : i32, i32
  }
  func.func @transform_6(%arg0: i32) -> (i32, i32) {
    %c0_i32 = arith.constant 0 : i32
    %c0_i32_0 = arith.constant 0 : i32
    %c0_i32_1 = arith.constant 0 : i32
    return %c0_i32, %c0_i32_0 : i32, i32
  }
  func.func @transform_7(%arg0: i32) -> (i32, i32, i32) {
    %c0_i32 = arith.constant 0 : i32
    %c0_i32_0 = arith.constant 0 : i32
    %c0_i32_1 = arith.constant 0 : i32
    %c0_i32_2 = arith.constant 0 : i32
    return %c0_i32, %c0_i32_0, %c0_i32_1 : i32, i32, i32
  }
  func.func @transform_8(%arg0: i32) -> (i32, i32, i32) {
    %c0_i32 = arith.constant 0 : i32
    %c0_i32_0 = arith.constant 0 : i32
    %c0_i32_1 = arith.constant 0 : i32
    %c0_i32_2 = arith.constant 0 : i32
    return %c0_i32, %c0_i32_0, %c0_i32_1 : i32, i32, i32
  }
  func.func @transform_9(%arg0: i32) -> (i32, i32) {
    %c0_i32 = arith.constant 0 : i32
    %c0_i32_0 = arith.constant 0 : i32
    %c0_i32_1 = arith.constant 0 : i32
    return %c0_i32, %c0_i32_0 : i32, i32
  }
  func.func @transform_10(%arg0: i32) -> (i32, i32) {
    %c0_i32 = arith.constant 0 : i32
    %c0_i32_0 = arith.constant 0 : i32
    %c0_i32_1 = arith.constant 0 : i32
    return %c0_i32, %c0_i32_0 : i32, i32
  }
  func.func @transform_11(%arg0: i32) -> (i32, i32) {
    %c0_i32 = arith.constant 0 : i32
    %c0_i32_0 = arith.constant 0 : i32
    %c0_i32_1 = arith.constant 0 : i32
    return %c0_i32, %c0_i32_0 : i32, i32
  }
  func.func @transform_12(%arg0: i32) -> (i32, i32, i32) {
    %c0_i32 = arith.constant 0 : i32
    %c0_i32_0 = arith.constant 0 : i32
    %c0_i32_1 = arith.constant 0 : i32
    %c0_i32_2 = arith.constant 0 : i32
    return %c0_i32, %c0_i32_0, %c0_i32_1 : i32, i32, i32
  }
  func.func @transform_13(%arg0: i32) -> (i32, i32) {
    %c0_i32 = arith.constant 0 : i32
    %c0_i32_0 = arith.constant 0 : i32
    %c0_i32_1 = arith.constant 0 : i32
    return %c0_i32, %c0_i32_0 : i32, i32
  }
  func.func @transform_14(%arg0: i32) -> (i32, i32, i32) {
    %c0_i32 = arith.constant 0 : i32
    %c0_i32_0 = arith.constant 0 : i32
    %c0_i32_1 = arith.constant 0 : i32
    %c0_i32_2 = arith.constant 0 : i32
    return %c0_i32, %c0_i32_0, %c0_i32_1 : i32, i32, i32
  }
  func.func @transform_15(%arg0: i32) -> (i32, i32) {
    %c0_i32 = arith.constant 0 : i32
    %c0_i32_0 = arith.constant 0 : i32
    %c0_i32_1 = arith.constant 0 : i32
    return %c0_i32, %c0_i32_0 : i32, i32
  }
  func.func @transform_16(%arg0: i32) -> (i32, i32, i32) {
    %c0_i32 = arith.constant 0 : i32
    %c0_i32_0 = arith.constant 0 : i32
    %c0_i32_1 = arith.constant 0 : i32
    %c0_i32_2 = arith.constant 0 : i32
    return %c0_i32, %c0_i32_0, %c0_i32_1 : i32, i32, i32
  }
  func.func @transform_17(%arg0: i32) -> (i32, i32) {
    %c0_i32 = arith.constant 0 : i32
    %c0_i32_0 = arith.constant 0 : i32
    %c0_i32_1 = arith.constant 0 : i32
    return %c0_i32, %c0_i32_0 : i32, i32
  }
  func.func @transform_18(%arg0: i32) -> (i32, i32, i32) {
    %c0_i32 = arith.constant 0 : i32
    %c0_i32_0 = arith.constant 0 : i32
    %c0_i32_1 = arith.constant 0 : i32
    return %arg0, %c0_i32, %c0_i32_0 : i32, i32, i32
  }
}

</mosaic_0001>

<bundles_post_ra>
// kernel: tile.6
= control target key start
LH: loop header
LB: loop body
LE: loop exit
PB: predicated region body
PF: predicated region fallthrough
CT: control target
= control target key end

     0   :  { %s28_s0 = inlined_call_operand.vmem [shape: f32[2], index: 0, kind: input, shape index: {}]   ;;  %s29_s1 = inlined_call_operand.vmem [shape: f32[16,2], index: 1, kind: output, shape index: {}]  }
   0x1   :  { %v4_v0 = vld [vmem:[%s28_s0] ss:$0 sm:$0xff] }
   0x2   :  { %5 = vst [vmem:[%s29_s1] sm:$0xff] %v4_v0  ;;  %8 = vst [vmem:[%s29_s1 + $0x8] sm:$0xff] %v4_v0 }

// kernel: mul.31
= control target key start
LH: loop header
LB: loop body
LE: loop exit
PB: predicated region body
PF: predicated region fallthrough
CT: control target
= control target key end

     0   :  { %s133_s10 = smov 30   ;;  %s134_s11 = smov 26   ;;  %vm3_vm0 = vcmask 15360   ;;  %vm9_vm1 = vcmask 261360   ;;  %vm15_vm2 = vcmask 244960   ;;  %vm21_vm3 = vcmask 228560   ;;  %s209_s0 = inlined_call_operand.vmem [shape: f32[16,2], index: 0, kind: input, shape index: {}]   ;;  %s210_s1 = inlined_call_operand.vmem [shape: f32[32], index: 1, kind: output, shape index: {}]  }
   0x1   :  { %v103_v0 = vld [vmem:[%s209_s0 + $0xf] sm:$0x1]   ;;  %v105_v1 = vld [vmem:[%s209_s0 + $0xd] sm:$0x1]   ;;  %v104_v2 = vld [vmem:[%s209_s0 + $0xe] sm:$0x1]  }
   0x2   :  { %7 = vrot.lane.b32.xlu0 %v103_v0, %s133_s10  ;;  %19 = vrot.lane.b32.xlu1 %v105_v1, %s134_s11  ;;  %v106_v3 = vld [vmem:[%s209_s0 + $0xc] sm:$0x1]   ;;  %s135_s16 = smov 28   ;;  %s136_s17 = smov 24   ;;  %v107_v4 = vld [vmem:[%s209_s0 + $0xb] sm:$0x1]  }
   0x3   :  { %v108_v5 = vld [vmem:[%s209_s0 + $0xa] sm:$0x1]   ;;  %v2_v6 = vld [vmem:[%s209_s0] sm:$0x1]   ;;  %s137_s24 = smov 22   ;;  %s138_s25 = smov 20  }
   0x4   :  { %4 = vst.msk [vmem:[#allocation0] sm:$0x1] %vm3_vm0, %v2_v6   ;;  %v109_v7 = vld [vmem:[%s209_s0 + $0x9] sm:$0x1]   ;;  %v110_v8 = vld [vmem:[%s209_s0 + $0x8] sm:$0x1]  }
   0x5   :  { %s139_s30 = smov 18   ;;  %s140_s2 = smov 16   ;;  %v111_v9 = vld [vmem:[%s209_s0 + $0x7] sm:$0x1]   ;;  %v112_v10 = vld [vmem:[%s209_s0 + $0x6] sm:$0x1]  }
   0x6   :  { %13 = vrot.lane.b32.xlu0 %v104_v2, %s135_s16  ;;  %25 = vrot.lane.b32.xlu1 %v106_v3, %s136_s17  ;;  %s141_s7 = smov 14   ;;  %s142_s8 = smov 12   ;;  %v113_v11 = vld [vmem:[%s209_s0 + $0x5] sm:$0x1]   ;;  %v114_v12 = vld [vmem:[%s209_s0 + $0x4] sm:$0x1]  }
   0x7   :  { %s143_s13 = smov 10   ;;  %s144_s14 = smov 8   ;;  %v115_v13 = vld [vmem:[%s209_s0 + $0x3] sm:$0x1]   ;;  %v116_v14 = vld [vmem:[%s209_s0 + $0x2] sm:$0x1]  }
   0x8   :  { %s145_s19 = smov 6   ;;  %s146_s20 = smov 4   ;;  %v117_v15 = vld [vmem:[%s209_s0 + $0x1] sm:$0x1]   ;;  %vm27_vm4 = vcmask 212160   ;;  %vm33_vm5 = vcmask 195760  }
   0x9   :  { %s147_s0 = smov 2   ;;  %vm39_vm6 = vcmask 179360   ;;  %vm45_vm7 = vcmask 162960   ;;  %vm51_vm8 = vcmask 146560   ;;  %vm57_vm9 = vcmask 130160  }
   0xa   :  { %31 = vrot.lane.b32.xlu0 %v107_v4, %s137_s24  ;;  %37 = vrot.lane.b32.xlu1 %v108_v5, %s138_s25  ;;  %vm63_vm10 = vcmask 113760   ;;  %vm69_vm11 = vcmask 97360   ;;  %vm75_vm12 = vcmask 80960   ;;  %vm81_vm13 = vcmask 64560  }
   0xb   :  { %vm87_vm14 = vcmask 48160   ;;  %vm93_vm15 = vcmask 31760  }
   0xe   :  { %43 = vrot.lane.b32.xlu0 %v109_v7, %s139_s30  ;;  %49 = vrot.lane.b32.xlu1 %v110_v8, %s140_s2 }
  0x12   :  { %55 = vrot.lane.b32.xlu0 %v111_v9, %s141_s7  ;;  %61 = vrot.lane.b32.xlu1 %v112_v10, %s142_s8 }
  0x16   :  { %67 = vrot.lane.b32.xlu0 %v113_v11, %s143_s13  ;;  %73 = vrot.lane.b32.xlu1 %v114_v12, %s144_s14 }
  0x1a   :  { %79 = vrot.lane.b32.xlu0 %v115_v13, %s145_s19  ;;  %85 = vrot.lane.b32.xlu1 %v116_v14, %s146_s20 }
  0x1e   :  { %91 = vrot.lane.b32.xlu0 %v117_v15, %s147_s0 }
  0x74   :  { %v8_v16 = vpop.permute.xlu0 %7   ;;  %v20_v17 = vpop.permute.xlu1 %19  }
  0x75   :  { %10 = vst.msk [vmem:[#allocation0] sm:$0x1] %vm9_vm1, %v8_v16  }
  0x78   :  { %v14_v18 = vpop.permute.xlu0 %13   ;;  %v26_v19 = vpop.permute.xlu1 %25  }
  0x79   :  { %16 = vst.msk [vmem:[#allocation0] sm:$0x1] %vm15_vm2, %v14_v18  }
  0x7a   :  { %22 = vst.msk [vmem:[#allocation0] sm:$0x1] %vm21_vm3, %v20_v17  }
  0x7b   :  { %28 = vst.msk [vmem:[#allocation0] sm:$0x1] %vm27_vm4, %v26_v19  }
  0x7c   :  { %v32_v20 = vpop.permute.xlu0 %31   ;;  %v38_v21 = vpop.permute.xlu1 %37  }
  0x7d   :  { %34 = vst.msk [vmem:[#allocation0] sm:$0x1] %vm33_vm5, %v32_v20  }
  0x7e   :  { %40 = vst.msk [vmem:[#allocation0] sm:$0x1] %vm39_vm6, %v38_v21  }
  0x80   :  { %v44_v22 = vpop.permute.xlu0 %43   ;;  %v50_v23 = vpop.permute.xlu1 %49  }
  0x81   :  { %46 = vst.msk [vmem:[#allocation0] sm:$0x1] %vm45_vm7, %v44_v22  }
  0x82   :  { %52 = vst.msk [vmem:[#allocation0] sm:$0x1] %vm51_vm8, %v50_v23  }
  0x84   :  { %v56_v24 = vpop.permute.xlu0 %55   ;;  %v62_v25 = vpop.permute.xlu1 %61  }
  0x85   :  { %58 = vst.msk [vmem:[#allocation0] sm:$0x1] %vm57_vm9, %v56_v24  }
  0x86   :  { %64 = vst.msk [vmem:[#allocation0] sm:$0x1] %vm63_vm10, %v62_v25  }
  0x88   :  { %v68_v26 = vpop.permute.xlu0 %67   ;;  %v74_v27 = vpop.permute.xlu1 %73  }
  0x89   :  { %70 = vst.msk [vmem:[#allocation0] sm:$0x1] %vm69_vm11, %v68_v26  }
  0x8a   :  { %76 = vst.msk [vmem:[#allocation0] sm:$0x1] %vm75_vm12, %v74_v27  }
  0x8c   :  { %v80_v28 = vpop.permute.xlu0 %79   ;;  %v86_v29 = vpop.permute.xlu1 %85  }
  0x8d   :  { %82 = vst.msk [vmem:[#allocation0] sm:$0x1] %vm81_vm13, %v80_v28  }
  0x8e   :  { %88 = vst.msk [vmem:[#allocation0] sm:$0x1] %vm87_vm14, %v86_v29  }
  0x90   :  { %v92_v30 = vpop.permute.xlu0 %91  }
  0x91   :  { %94 = vst.msk [vmem:[#allocation0] sm:$0x1] %vm93_vm15, %v92_v30  }
  0x98   :  { %v99_v31 = vld [vmem:[#allocation0] sm:$0x1] }
  0x99   :  { %102 = vst [vmem:[%s210_s1] sm:$0x1] %v99_v31 }

// kernel: decoder_forward.7
= control target key start
LH: loop header
LB: loop body
LE: loop exit
PB: predicated region body
PF: predicated region fallthrough
CT: control target
= control target key end

     0   :  { %s773_s21 = smov 0   ;;  %s891_s0 = inlined_call_operand.vmem [shape: f32[2,64,32], index: 0, kind: input, shape index: {}]   ;;  %s892_s1 = inlined_call_operand.vmem [shape: f32[2,64,1], index: 1, kind: input, shape index: {}]   ;;  %s893_s2 = inlined_call_operand.vmem [shape: f32[1,32], index: 2, kind: input, shape index: {}]   ;;  %s894_s3 = inlined_call_operand.vmem [shape: f32[1,32], index: 3, kind: input, shape index: {}]   ;;  %s895_s4 = inlined_call_operand.vmem [shape: bf16[32,16], index: 4, kind: input, shape index: {}]   ;;  %s896_s5 = inlined_call_operand.vmem [shape: f32[1,16], index: 5, kind: input, shape index: {}]   ;;  %s897_s6 = inlined_call_operand.vmem [shape: f32[2,64,16], index: 6, kind: output, shape index: {}]  }
   0x1 LB: > { %s653_s22 = sadd.s32 4294967295, %s735_s21   ;;  %p657_p0 = scmp.ge.s32.totalorder %s735_s21, 1  ;;  %s735_s21 = sphi %s773_s21, %s16_s21  }
   0x2   : > { %p222_p1 = scmp.lt.s32.totalorder %s735_s21, 3 }
   0x4   : > { %p223_p2 = pnand %p657_p0, %p222_p1 }
   0x5   : > { %p257_p3 = scmp.lt.s32.totalorder (!%p223_p2), %s653_s22, 1 }
   0x6   : > { %226 = sbr.rel (%p223_p2) target bundleno = 545 (0x221), region = 44 }
   0xb   : > { %s899_s22 = smov (!%p257_p3, %s653_s22), 1  ;;  %vm283_vm0 = vcmask 261120   ;;  %v711_v56 = vld [vmem:[%s895_s4 + $0x8] sm:$0xff]   ;;  %v712_v57 = vld [vmem:[%s895_s4] sm:$0xff]   ;;  %v737_v58 = vmov 0   ;;  %vm577_vm1 = vcmask 130048  }
   0xc   : > { %s781_s23 = sshll.u32 %s899_s22, 6  ;;  %684 = vmatprep.subr.bf16.mxu0 %v711_v56  ;;  %696 = vmatprep.subr.bf16.mxu1 %v711_v56 }
   0xd   : > { %s261_s26 = scalar_lea.vmem %s891_s0, %s781_s23  ;;  %685 = vmatpush3.bf16.msra.mxu0 %v711_v56  ;;  %698 = vmatpush3.bf16.msra.mxu1 %v711_v56  ;;  %s266_s9 = scalar_lea.vmem %s892_s1, %s781_s23 }
   0xe   : > { %v273_v0 = vld [vmem:[%s261_s26] sm:$0xff]  ;;  %v274_v2 = vld [vmem:[%s261_s26 + $0x8] sm:$0xff]  ;;  %v275_v8 = vld [vmem:[%s261_s26 + $0x10] sm:$0xff]  ;;  %686 = vmatprep.subr.bf16.mxu0 %v712_v57  ;;  %697 = vmatprep.subr.bf16.mxu1 %v712_v57  ;;  %s870_s18 = scalar_lea.vmem %s897_s6, %s781_s23 }
   0xf   : > { %v277_v1 = vld [vmem:[%s261_s26 + $0x20] sm:$0xff]  ;;  %v284_v3 = vsel %vm283_vm0, %v273_v0, 0.0  ;;  %v278_v5 = vld [vmem:[%s261_s26 + $0x28] sm:$0xff]  ;;  %v287_v6 = vsel %vm283_vm0, %v274_v2, 0.0  ;;  %v276_v9 = vld [vmem:[%s261_s26 + $0x18] sm:$0xff]  ;;  %v290_v10 = vsel %vm283_vm0, %v275_v8, 0.0  ;;  %710 = vset.pattern.permute.xlu1 %v737_v58  ;;  %709 = vset.pattern.permute.xlu0 %v737_v58 }
  0x10   : > { %v296_v4 = vsel %vm283_vm0, %v277_v1, 0.0  ;;  %285 = vadd.xlane.f32.xlu0 %v284_v3  ;;  %v299_v7 = vsel %vm283_vm0, %v278_v5, 0.0  ;;  %v293_v11 = vsel %vm283_vm0, %v276_v9, 0.0  ;;  %v279_v12 = vld [vmem:[%s261_s26 + $0x30] sm:$0xff]  ;;  %v280_v13 = vld [vmem:[%s261_s26 + $0x38] sm:$0xff]  ;;  %v522_v59 = vld [vmem:[%s266_s9 + $0x8] sm:$0xff] }
  0x11   : > { %297 = vadd.xlane.f32.xlu1 %v296_v4  ;;  %v302_v14 = vsel %vm283_vm0, %v279_v12, 0.0  ;;  %v305_v15 = vsel %vm283_vm0, %v280_v13, 0.0  ;;  %687 = vmatpush3.bf16.msra.mxu0 %v712_v57  ;;  %v523_v60 = vld [vmem:[%s266_s9 + $0x10] sm:$0xff]  ;;  %v521_v61 = vld [vmem:[%s266_s9] sm:$0xff]  ;;  %v524_v62 = vld [vmem:[%s266_s9 + $0x18] sm:$0xff] }
  0x12   : > { %699 = vmatpush3.bf16.msra.mxu1 %v712_v57  ;;  %v525_v63 = vld [vmem:[%s266_s9 + $0x20] sm:$0xff] }
  0x14   : > { %288 = vadd.xlane.f32.xlu0 %v287_v6 }
  0x15   : > { %300 = vadd.xlane.f32.xlu1 %v299_v7 }
  0x18   : > { %291 = vadd.xlane.f32.xlu0 %v290_v10 }
  0x19   : > { %294 = vadd.xlane.f32.xlu1 %v293_v11 }
  0x1c   : > { %303 = vadd.xlane.f32.xlu0 %v302_v14 }
  0x1d   : > { %306 = vadd.xlane.f32.xlu1 %v305_v15 }
  0x99   : > { %v286_v16 = vpop.xlane.xlu0 %285 }
  0x9a   : > { %v298_v17 = vpop.xlane.xlu1 %297  ;;  %v309_v18 = vmul.f32 0.03125, %v286_v16 }
  0x9b   : > { %v313_v19 = vmul.f32 0.03125, %v298_v17 }
  0x9c   : > { %v795_v20 = vsub.f32 %v273_v0, %v309_v18  ;;  %v526_v0 = vld [vmem:[%s266_s9 + $0x28] sm:$0xff] }
  0x9d   : > { %v797_v21 = vsub.f32 %v277_v1, %v313_v19  ;;  %v289_v22 = vpop.xlane.xlu0 %288  ;;  %v527_v1 = vld [vmem:[%s266_s9 + $0x30] sm:$0xff] }
  0x9e   : > { %v301_v23 = vpop.xlane.xlu1 %300  ;;  %v310_v24 = vmul.f32 0.03125, %v289_v22  ;;  %v325_v26 = vmul.f32 %v795_v20, %v795_v20 }
  0x9f   : > { %v314_v25 = vmul.f32 0.03125, %v301_v23  ;;  %v329_v27 = vmul.f32 %v797_v21, %v797_v21 }
  0xa0   : > { %v803_v28 = vsub.f32 %v274_v2, %v310_v24  ;;  %v333_v30 = vsel %vm283_vm0, %v325_v26, 0.0  ;;  %v528_v2 = vld [vmem:[%s266_s9 + $0x38] sm:$0xff] }
  0xa1   : > { %v805_v29 = vsub.f32 %v278_v5, %v314_v25  ;;  %334 = vadd.xlane.f32.xlu0 %v333_v30  ;;  %v292_v31 = vpop.xlane.xlu0 %291  ;;  %v345_v33 = vsel %vm283_vm0, %v329_v27, 0.0 }
  0xa2   : > { %v295_v32 = vpop.xlane.xlu1 %294  ;;  %v311_v34 = vmul.f32 0.03125, %v292_v31  ;;  %v326_v36 = vmul.f32 %v803_v28, %v803_v28 }
  0xa3   : > { %v312_v35 = vmul.f32 0.03125, %v295_v32  ;;  %v330_v37 = vmul.f32 %v805_v29, %v805_v29 }
  0xa4   : > { %v813_v38 = vsub.f32 %v275_v8, %v311_v34  ;;  %v336_v40 = vsel %vm283_vm0, %v326_v36, 0.0 }
  0xa5   : > { %v815_v39 = vsub.f32 %v276_v9, %v312_v35  ;;  %346 = vadd.xlane.f32.xlu0 %v345_v33  ;;  %337 = vadd.xlane.f32.xlu1 %v336_v40  ;;  %v304_v41 = vpop.xlane.xlu0 %303  ;;  %v348_v43 = vsel %vm283_vm0, %v330_v37, 0.0  ;;  %v664_v33 = vld [vmem:[%s893_s2] ss:$0 sm:$0xff] }
  0xa6   : > { %v307_v42 = vpop.xlane.xlu1 %306  ;;  %v315_v44 = vmul.f32 0.03125, %v304_v41  ;;  %v327_v46 = vmul.f32 %v813_v38, %v813_v38  ;;  %v665_v40 = vld [vmem:[%s894_s3] ss:$0 sm:$0xff] }
  0xa7   : > { %v316_v45 = vmul.f32 0.03125, %v307_v42  ;;  %v328_v47 = vmul.f32 %v815_v39, %v815_v39 }
  0xa8   : > { %v823_v48 = vsub.f32 %v279_v12, %v315_v44  ;;  %v339_v50 = vsel %vm283_vm0, %v327_v46, 0.0 }
  0xa9   : > { %v825_v49 = vsub.f32 %v280_v13, %v316_v45  ;;  %349 = vadd.xlane.f32.xlu1 %v348_v43  ;;  %340 = vadd.xlane.f32.xlu0 %v339_v50  ;;  %v342_v51 = vsel %vm283_vm0, %v328_v47, 0.0 }
  0xaa   : > { %v331_v52 = vmul.f32 %v823_v48, %v823_v48 }
  0xab   : > { %v332_v53 = vmul.f32 %v825_v49, %v825_v49 }
  0xac   : > { %v351_v54 = vsel %vm283_vm0, %v331_v52, 0.0 }
  0xad   : > { %343 = vadd.xlane.f32.xlu1 %v342_v51  ;;  %352 = vadd.xlane.f32.xlu0 %v351_v54  ;;  %v354_v55 = vsel %vm283_vm0, %v332_v53, 0.0 }
  0xb1   : > { %355 = vadd.xlane.f32.xlu1 %v354_v55 }
  0xc2   : > { %536 = vperm.xlu1 %710, %v522_v59  }
  0xc3   : > { %531 = vperm.xlu0 %709, %v521_v61  }
  0xc6   : > { %541 = vperm.xlu1 %710, %v523_v60  }
  0xca   : > { %546 = vperm.xlu1 %710, %v524_v62  }
  0xce   : > { %551 = vperm.xlu1 %710, %v525_v63  }
  0xd2   : > { %556 = vperm.xlu1 %710, %v526_v0  }
  0xd6   : > { %561 = vperm.xlu1 %710, %v527_v1  }
  0xda   : > { %566 = vperm.xlu1 %710, %v528_v2  }
 0x12a   : > { %v335_v3 = vpop.xlane.xlu0 %334 }
 0x12b   : > { %v357_v4 = vmul.f32 0.03125, %v335_v3 }
 0x12d   : > { %v365_v5 = vadd.f32 1e-12, %v357_v4 }
 0x12e   : > { %v338_v6 = vpop.xlane.xlu1 %337  ;;  %v347_v7 = vpop.xlane.xlu0 %346 }
 0x12f   : > { %713 = vrsqrt.f32 %v365_v5  ;;  %v358_v8 = vmul.f32 0.03125, %v338_v6  ;;  %v361_v9 = vmul.f32 0.03125, %v347_v7 }
 0x131   : > { %v366_v10 = vadd.f32 1e-12, %v358_v8  ;;  %v369_v11 = vadd.f32 1e-12, %v361_v9 }
 0x132   : > { %v350_v12 = vpop.xlane.xlu1 %349  ;;  %v341_v13 = vpop.xlane.xlu0 %340 }
 0x133   : > { %715 = vrsqrt.f32 %v366_v10  ;;  %v362_v14 = vmul.f32 0.03125, %v350_v12  ;;  %v359_v15 = vmul.f32 0.03125, %v341_v13 }
 0x134   : > { %717 = vrsqrt.f32 %v369_v11 }
 0x135   : > { %v370_v16 = vadd.f32 1e-12, %v362_v14  ;;  %v367_v17 = vadd.f32 1e-12, %v359_v15 }
 0x136   : > { %v344_v18 = vpop.xlane.xlu1 %343  ;;  %v353_v19 = vpop.xlane.xlu0 %352 }
 0x137   : > { %719 = vrsqrt.f32 %v370_v16  ;;  %v360_v22 = vmul.f32 0.03125, %v344_v18  ;;  %v363_v23 = vmul.f32 0.03125, %v353_v19 }
 0x138   : > { %721 = vrsqrt.f32 %v367_v17 }
 0x139   : > { %v368_v24 = vadd.f32 1e-12, %v360_v22  ;;  %v371_v25 = vadd.f32 1e-12, %v363_v23 }
 0x13a   : > { %v356_v26 = vpop.xlane.xlu1 %355 }
 0x13b   : > { %723 = vrsqrt.f32 %v368_v24  ;;  %v364_v27 = vmul.f32 0.03125, %v356_v26 }
 0x13c   : > { %v714_v30 = vpop.eup %713  ;;  %725 = vrsqrt.f32 %v371_v25 }
 0x13d   : > { %v372_v31 = vadd.f32 1e-12, %v364_v27  ;;  %v381_v32 = vmul.f32 %v714_v30, %v795_v20 }
 0x13e   : > { %v532_v10 = vpop.permute.xlu0 %531 }
 0x13f   : > { %727 = vrsqrt.f32 %v372_v31  ;;  %v395_v37 = vmul.f32 %v664_v33, %v381_v32 }
 0x140   : > { %v716_v34 = vpop.eup %715 }
 0x141   : > { %v718_v35 = vpop.eup %717  ;;  %v382_v36 = vmul.f32 %v716_v34, %v803_v28  ;;  %v409_v20 = vadd.f32 %v665_v40, %v395_v37 }
 0x142   : > { %v385_v41 = vmul.f32 %v718_v35, %v797_v21 }
 0x143   : > { %v396_v42 = vmul.f32 %v664_v33, %v382_v36 }
 0x144   : > { %v720_v43 = vpop.eup %719  ;;  %v399_v47 = vmul.f32 %v664_v33, %v385_v41 }
 0x145   : > { %v722_v44 = vpop.eup %721  ;;  %v410_v45 = vadd.f32 %v665_v40, %v396_v42  ;;  %v386_v46 = vmul.f32 %v720_v43, %v805_v29 }
 0x146   : > { %v383_v50 = vmul.f32 %v722_v44, %v813_v38  ;;  %v413_v54 = vadd.f32 %v665_v40, %v399_v47 }
 0x147   : > { %v417_v51 = vpack.c.bf16 %v410_v45, %v409_v20  ;;  %v400_v52 = vmul.f32 %v664_v33, %v386_v46 }
 0x148   : > { %v724_v28 = vpop.eup %723  ;;  %v397_v56 = vmul.f32 %v664_v33, %v383_v50 }
 0x149   : > { %v726_v53 = vpop.eup %725  ;;  %688 = vmatprep.mubr.msk.bf16.mxu0 %vm283_vm0, %v417_v51  ;;  %v414_v55 = vadd.f32 %v665_v40, %v400_v52  ;;  %v384_v21 = vmul.f32 %v724_v28, %v815_v39 }
 0x14a   : > { %v387_v57 = vmul.f32 %v726_v53, %v823_v48  ;;  %v411_v29 = vadd.f32 %v665_v40, %v397_v56  ;;  %v537_v48 = vpop.permute.xlu1 %536 }
 0x14b   : > { %v419_v58 = vpack.c.bf16 %v414_v55, %v413_v54  ;;  %v398_v59 = vmul.f32 %v664_v33, %v384_v21 }
 0x14c   : > { %v728_v60 = vpop.eup %727  ;;  %v401_v62 = vmul.f32 %v664_v33, %v387_v57 }
 0x14d   : > { %692 = vmatprep.mubr.msk.bf16.mxu1 %vm283_vm0, %v419_v58  ;;  %v412_v38 = vadd.f32 %v665_v40, %v398_v59  ;;  %v388_v61 = vmul.f32 %v728_v60, %v825_v49  ;;  %v666_v49 = vld [vmem:[%s896_s5] ss:$0 sm:$0xff] }
 0x14e   : > { %v415_v1 = vadd.f32 %v665_v40, %v401_v62  ;;  %v542_v3 = vpop.permute.xlu1 %541 }
 0x14f   : > { %v418_v63 = vpack.c.bf16 %v412_v38, %v411_v29  ;;  %v402_v0 = vmul.f32 %v664_v33, %v388_v61 }
 0x151   : > { %689 = vmatmul.mubr.msk.bf16.vlgmr.msra.gmra.mxu0 %vm283_vm0, %v418_v63  ;;  %v416_v39 = vadd.f32 %v665_v40, %v402_v0 }
 0x152   : > { %v547_v4 = vpop.permute.xlu1 %546 }
 0x153   : > { %v420_v2 = vpack.c.bf16 %v416_v39, %v415_v1 }
 0x155   : > { %693 = vmatmul.mubr.msk.bf16.vlgmr.msra.gmra.mxu1 %vm283_vm0, %v420_v2 }
 0x156   : > { %v552_v5 = vpop.permute.xlu1 %551 }
 0x15a   : > { %v557_v6 = vpop.permute.xlu1 %556 }
 0x15e   : > { %v562_v11 = vpop.permute.xlu1 %561 }
 0x162   : > { %v567_v33 = vpop.permute.xlu1 %566 }
 0x211   : > { %v690_v7 = vpop.f32.mrf.mxu0 }
 0x212   : > { %v499_v8 = vadd.f32 %v690_v7, %v666_v49 }
 0x213   : > { %v490_v9 = vpop.f32.mrf.mxu0 }
 0x214   : > { %v571_v12 = vmul.f32 %v542_v3, %v499_v8  ;;  %v491_v13 = vadd.f32 %v666_v49, %v490_v9 }
 0x215   : > { %v691_v14 = vpop.f32.mrf.mxu0  ;;  %v694_v15 = vpop.f32.mrf.mxu1 }
 0x216   : > { %580 = vst.msk [vmem:[%s870_s18 + $0x10] sm:$0xff] %vm577_vm1, %v571_v12  ;;  %v502_v16 = vadd.f32 %v691_v14, %v666_v49  ;;  %v515_v17 = vadd.f32 %v694_v15, %v666_v49  ;;  %v569_v18 = vmul.f32 %v532_v10, %v491_v13 }
 0x217   : > { %v493_v19 = vpop.f32.mrf.mxu0  ;;  %v506_v22 = vpop.f32.mrf.mxu1 }
 0x218   : > { %v572_v23 = vmul.f32 %v547_v4, %v502_v16  ;;  %v575_v24 = vmul.f32 %v562_v11, %v515_v17  ;;  %578 = vst.msk [vmem:[%s870_s18] sm:$0xff] %vm577_vm1, %v569_v18  ;;  %v494_v25 = vadd.f32 %v666_v49, %v493_v19  ;;  %v507_v26 = vadd.f32 %v666_v49, %v506_v22 }
 0x219   : > { %v695_v27 = vpop.f32.mrf.mxu1 }
 0x21a   : > { %581 = vst.msk [vmem:[%s870_s18 + $0x18] sm:$0xff] %vm577_vm1, %v572_v23  ;;  %584 = vst.msk [vmem:[%s870_s18 + $0x30] sm:$0xff] %vm577_vm1, %v575_v24  ;;  %v570_v30 = vmul.f32 %v537_v48, %v494_v25  ;;  %v573_v31 = vmul.f32 %v552_v5, %v507_v26  ;;  %v518_v32 = vadd.f32 %v695_v27, %v666_v49 }
 0x21b   : > { %v509_v34 = vpop.f32.mrf.mxu1 }
 0x21c   : > { %579 = vst.msk [vmem:[%s870_s18 + $0x8] sm:$0xff] %vm577_vm1, %v570_v30  ;;  %582 = vst.msk [vmem:[%s870_s18 + $0x20] sm:$0xff] %vm577_vm1, %v573_v31  ;;  %v576_v35 = vmul.f32 %v567_v33, %v518_v32  ;;  %v510_v36 = vadd.f32 %v666_v49, %v509_v34 }
 0x21e   : > { %585 = vst.msk [vmem:[%s870_s18 + $0x38] sm:$0xff] %vm577_vm1, %v576_v35  ;;  %v574_v37 = vmul.f32 %v557_v6, %v510_v36 }
 0x220   : > { %583 = vst.msk [vmem:[%s870_s18 + $0x28] sm:$0xff] %vm577_vm1, %v574_v37 }
 0x221 PF: > { %s16_s21 = sadd.s32 1, %s735_s21  }
 0x222   : > { %p13_p4 = scmp.ge.s32.totalorder %s16_s21, 4  }
 0x224   :  { %15 = sbr.rel (!%p13_p4) target bundleno = 1 (0x1), region = 77 }

// kernel: decoder_forward.4
= control target key start
LH: loop header
LB: loop body
LE: loop exit
PB: predicated region body
PF: predicated region fallthrough
CT: control target
= control target key end

     0   :  { %s914_s15 = smov 0   ;;  %s1047_s0 = inlined_call_operand.vmem [shape: f32[2,64,34], index: 0, kind: input, shape index: {}]   ;;  %s1048_s1 = inlined_call_operand.vmem [shape: f32[2,64,1], index: 1, kind: input, shape index: {}]   ;;  %s1049_s2 = inlined_call_operand.vmem [shape: bf16[3,34,32], index: 2, kind: input, shape index: {}]   ;;  %s1050_s3 = inlined_call_operand.vmem [shape: f32[1,32], index: 3, kind: input, shape index: {}]   ;;  %s1051_s4 = inlined_call_operand.vmem [shape: f32[2,64,32], index: 4, kind: output, shape index: {}]  }
   0x1 LB: > { %s739_s16 = sadd.s32 4294967295, %s886_s15   ;;  %p743_p0 = scmp.ge.s32.totalorder %s886_s15, 1  ;;  %s886_s15 = sphi %s914_s15, %s14_s15  }
   0x2   : > { %p172_p1 = scmp.lt.s32.totalorder %s886_s15, 3 }
   0x4   : > { %p173_p2 = pnand %p743_p0, %p172_p1 }
   0x5   : > { %p203_p3 = scmp.lt.s32.totalorder (!%p173_p2), %s739_s16, 1 }
   0x6   : > { %176 = sbr.rel (%p173_p2) target bundleno = 251 (0xfb), region = 36 }
   0xb   : > { %v871_v0 = vld [vmem:[%s1049_s2 + $0x10] ss:$0 sps:$4 sm:$0x11]   ;;  %vm265_vm0 = vcmask 1040384   ;;  %v873_v2 = vld [vmem:[%s1049_s2 + $0x8] sm:$0xff]   ;;  %v875_v6 = vld [vmem:[%s1049_s2] sm:$0xff]  }
   0xc   : > { %v872_v1 = vld [vmem:[%s1049_s2 + $0x38] ss:$0 sps:$4 sm:$0x11]   ;;  %856 = vmatprep.subr.msk.bf16.mxu0 %vm265_vm0, %v871_v0  ;;  %v267_v3 = vsel %vm265_vm0, %v871_v0, 0  ;;  %v874_v4 = vld [vmem:[%s1049_s2 + $0x30] sm:$0xff]   ;;  %v876_v7 = vld [vmem:[%s1049_s2 + $0x28] sm:$0xff]  }
   0xd   : > { %857 = vmatprep.subr.msk.bf16.mxu1 %vm265_vm0, %v872_v1  ;;  %809 = vmatpush3.bf16.msra.mxu0 %v267_v3  ;;  %v362_v5 = vsel %vm265_vm0, %v872_v1, 0  ;;  %v877_v8 = vld [vmem:[%s1049_s2 + $0x24] ss:$0 sps:$4 sm:$0x11]   ;;  %s1053_s16 = smov (!%p203_p3, %s739_s16), 1  ;;  %v888_v9 = vmov 0  }
   0xe   : > { %823 = vmatpush3.bf16.msra.mxu1 %v362_v5  ;;  %810 = vmatprep.subr.bf16.mxu0 %v873_v2  ;;  %s947_s5 = sshll.u32 %s1053_s16, 6  ;;  %vm252_vm1 = vcmask 277504   ;;  %v477_v18 = vsel %vm265_vm0, %v877_v8, 0  ;;  %v878_v19 = vld [vmem:[%s1049_s2 + $0x1c] sm:$0xff]   ;;  %v879_v25 = vld [vmem:[%s1049_s2 + $0x14] sm:$0xff]   ;;  %vm552_vm2 = vcmask 1046528  }
   0xf   : > { %824 = vmatprep.subr.bf16.mxu1 %v874_v4  ;;  %870 = vset.pattern.permute.xlu1 %v888_v9  ;;  %s207_s8 = scalar_lea.vmem %s1047_s0, %s947_s5  ;;  %s963_s13 = scalar_lea.vmem %s1048_s1, %s947_s5  ;;  %vm663_vm3 = vcmask 261120  }
  0x10   : > { %869 = vset.pattern.permute.xlu0 %v888_v9  ;;  %v219_v10 = vld [vmem:[%s207_s8] sm:$0xff]  ;;  %v220_v11 = vld [vmem:[%s207_s8 + $0x8] sm:$0xff]  ;;  %v221_v12 = vld [vmem:[%s207_s8 + $0x10] sm:$0xff]  ;;  %s1023_s21 = scalar_lea.vmem %s1051_s4, %s947_s5 }
  0x11   : > { %811 = vmatpush3.bf16.msra.mxu0 %v873_v2  ;;  %v227_v13 = vpack.c.bf16 %v220_v11, %v219_v10  ;;  %v222_v14 = vld [vmem:[%s207_s8 + $0x18] sm:$0xff]  ;;  %v223_v15 = vld [vmem:[%s207_s8 + $0x20] sm:$0xff]  ;;  %v224_v16 = vld [vmem:[%s207_s8 + $0x28] sm:$0xff] }
  0x12   : > { %825 = vmatpush3.bf16.msra.mxu1 %v874_v4  ;;  %812 = vmatprep.subr.bf16.mxu0 %v875_v6  ;;  %v228_v17 = vpack.c.bf16 %v222_v14, %v221_v12  ;;  %v229_v20 = vpack.c.bf16 %v224_v16, %v223_v15  ;;  %v225_v21 = vld [vmem:[%s207_s8 + $0x30] sm:$0xff]  ;;  %v226_v22 = vld [vmem:[%s207_s8 + $0x38] sm:$0xff]  ;;  %v599_v24 = vld [vmem:[%s963_s13] sm:$0xff] }
  0x13   : > { %826 = vmatprep.subr.bf16.mxu1 %v876_v7  ;;  %814 = vmatprep.mubr.msk.bf16.mxu0 %vm252_vm1, %v227_v13  ;;  %v601_v23 = vld [vmem:[%s963_s13 + $0x10] sm:$0xff]  ;;  %v230_v26 = vpack.c.bf16 %v226_v22, %v225_v21  ;;  %v602_v27 = vld [vmem:[%s963_s13 + $0x18] sm:$0xff]  ;;  %v600_v28 = vld [vmem:[%s963_s13 + $0x8] sm:$0xff] }
  0x14   : > { %828 = vmatprep.mubr.msk.bf16.mxu1 %vm252_vm1, %v227_v13  ;;  %619 = vperm.xlu1 %870, %v601_v23   ;;  %v604_v29 = vld [vmem:[%s963_s13 + $0x28] sm:$0xff]  ;;  %v603_v30 = vld [vmem:[%s963_s13 + $0x20] sm:$0xff]  ;;  %v606_v31 = vld [vmem:[%s963_s13 + $0x38] sm:$0xff] }
  0x15   : > { %813 = vmatpush3.bf16.msra.mxu0 %v875_v6  ;;  %609 = vperm.xlu0 %869, %v599_v24   ;;  %v605_v32 = vld [vmem:[%s963_s13 + $0x30] sm:$0xff]  ;;  %v781_v16 = vld [vmem:[%s1050_s3] ss:$0 sm:$0xff] }
  0x16   : > { %827 = vmatpush3.bf16.msra.mxu1 %v876_v7  ;;  %858 = vmatprep.subr.msk.bf16.mxu0 %vm265_vm0, %v877_v8 }
  0x17   : > { %859 = vmatprep.subr.msk.bf16.mxu1 %vm265_vm0, %v877_v8 }
  0x18   : > { %815 = vmatmul.mubr.msk.bf16.vlgmr.msra.gmra.mxu0 %vm252_vm1, %v228_v17  ;;  %624 = vperm.xlu1 %870, %v602_v27  }
  0x19   : > { %829 = vmatmul.mubr.msk.bf16.vlgmr.msra.gmra.mxu1 %vm252_vm1, %v228_v17  ;;  %837 = vmatpush3.bf16.msra.mxu0 %v477_v18 }
  0x1a   : > { %853 = vmatpush3.bf16.msra.mxu1 %v477_v18  ;;  %838 = vmatprep.subr.bf16.mxu0 %v878_v19 }
  0x1b   : > { %851 = vmatprep.subr.bf16.mxu1 %v878_v19  ;;  %818 = vmatprep.mubr.msk.bf16.mxu0 %vm252_vm1, %v229_v20 }
  0x1c   : > { %832 = vmatprep.mubr.msk.bf16.mxu1 %vm252_vm1, %v229_v20  ;;  %614 = vperm.xlu0 %869, %v600_v28  }
  0x1d   : > { %839 = vmatpush3.bf16.msra.mxu0 %v878_v19  ;;  %634 = vperm.xlu1 %870, %v604_v29  }
  0x1e   : > { %854 = vmatpush3.bf16.msra.mxu1 %v878_v19  ;;  %840 = vmatprep.subr.bf16.mxu0 %v879_v25 }
  0x1f   : > { %852 = vmatprep.subr.bf16.mxu1 %v879_v25 }
  0x20   : > { %819 = vmatmul.mubr.msk.bf16.gmra.mxu0 %vm252_vm1, %v230_v26  ;;  %629 = vperm.xlu0 %869, %v603_v30  }
  0x21   : > { %833 = vmatmul.mubr.msk.bf16.gmra.mxu1 %vm252_vm1, %v230_v26  ;;  %841 = vmatpush3.bf16.msra.mxu0 %v879_v25 }
  0x22   : > { %855 = vmatpush3.bf16.msra.mxu1 %v879_v25  ;;  %842 = vmatprep.mubr.msk.bf16.mxu0 %vm252_vm1, %v227_v13 }
  0x23   : > { %846 = vmatprep.mubr.msk.bf16.mxu1 %vm252_vm1, %v229_v20  ;;  %644 = vperm.xlu1 %870, %v606_v31  }
  0x24   : > { %639 = vperm.xlu0 %869, %v605_v32  }
  0x28   : > { %843 = vmatmul.mubr.msk.bf16.vlgmr.msra.gmra.mxu0 %vm252_vm1, %v228_v17 }
  0x29   : > { %847 = vmatmul.mubr.msk.bf16.vlgmr.msra.gmra.mxu1 %vm252_vm1, %v230_v26 }
  0x8f   : > { %v992_v44 = vpop.permute.xlu1 %619 }
  0x90   : > { %v988_v39 = vpop.permute.xlu0 %609 }
  0x93   : > { %v998_v1 = vpop.permute.xlu1 %624 }
  0x97   : > { %v994_v50 = vpop.permute.xlu0 %614 }
  0x9b   : > { %v630_v11 = vpop.permute.xlu0 %629 }
  0xd8   : > { %v816_v33 = vpop.f32.mrf.mxu0 }
  0xd9   : > { %v830_v34 = vpop.f32.mrf.mxu1  ;;  %v440_v55 = vrot.slane %v816_v33, 7  ;;  %v635_v33 = vpop.permute.xlu1 %634 }
  0xda   : > { %v303_v35 = vpop.f32.mrf.mxu0  ;;  %v556_v51 = vrot.slane %v830_v34, 1 }
  0xdb   : > { %v398_v36 = vpop.f32.mrf.mxu1  ;;  %v437_v45 = vrot.slane %v303_v35, 7 }
  0xdc   : > { %v817_v37 = vpop.f32.mrf.mxu0  ;;  %v553_v56 = vrot.slane %v398_v36, 1 }
  0xdd   : > { %v831_v38 = vpop.f32.mrf.mxu1  ;;  %v442_v49 = vrot.slane %v817_v37, 7  ;;  %v460_v63 = vsel %vm265_vm0, 0.0, %v437_v45 }
  0xde   : > { %v306_v40 = vpop.f32.mrf.mxu0  ;;  %v558_v46 = vrot.slane %v831_v38, 1 }
  0xdf   : > { %v401_v41 = vpop.f32.mrf.mxu1  ;;  %v438_v52 = vrot.slane %v306_v40, 7  ;;  %v443_v4 = vsel %vm265_vm0, %v440_v55, %v442_v49 }
  0xe0   : > { %v820_v42 = vpop.f32.mrf.mxu0  ;;  %v554_v57 = vrot.slane %v401_v41, 1  ;;  %v559_v62 = vsel %vm552_vm2, %v556_v51, %v558_v46 }
  0xe1   : > { %v990_v43 = vpop.f32.mrf.mxu1  ;;  %v448_v0 = vrot.slane %v820_v42, 7  ;;  %v441_v8 = vsel %vm265_vm0, %v438_v52, %v440_v55  ;;  %v439_v15 = vsel %vm265_vm0, %v437_v45, %v438_v52 }
  0xe2   : > { %v319_v47 = vpop.f32.mrf.mxu0  ;;  %v564_v5 = vrot.slane %v990_v43, 1  ;;  %v555_v14 = vsel %vm552_vm2, %v553_v56, %v554_v57  ;;  %v557_v22 = vsel %vm552_vm2, %v554_v57, %v556_v51 }
  0xe3   : > { %v414_v48 = vpop.f32.mrf.mxu1  ;;  %v444_v58 = vrot.slane %v319_v47, 7  ;;  %v640_v47 = vpop.permute.xlu0 %639 }
  0xe4   : > { %v821_v53 = vpop.f32.mrf.mxu0  ;;  %v560_v59 = vrot.slane %v414_v48, 1 }
  0xe5   : > { %v835_v54 = vpop.f32.mrf.mxu1  ;;  %v450_v6 = vrot.slane %v821_v53, 7  ;;  %v445_v19 = vsel %vm265_vm0, %v442_v49, %v444_v58 }
  0xe6   : > { %v322_v60 = vpop.f32.mrf.mxu0  ;;  %v566_v2 = vrot.slane %v835_v54, 1  ;;  %v561_v21 = vsel %vm552_vm2, %v558_v46, %v560_v59 }
  0xe7   : > { %v417_v61 = vpop.f32.mrf.mxu1  ;;  %v446_v3 = vrot.slane %v322_v60, 7  ;;  %v451_v31 = vsel %vm265_vm0, %v448_v0, %v450_v6 }
  0xe8   : > { %v562_v7 = vrot.slane %v417_v61, 1  ;;  %v844_v9 = vpop.f32.mrf.mxu0  ;;  %v567_v24 = vsel %vm552_vm2, %v564_v5, %v566_v2  ;;  %v576_v27 = vsel %vm552_vm2, %v566_v2, 0.0 }
  0xe9   : > { %v848_v10 = vpop.f32.mrf.mxu1  ;;  %v522_v12 = vadd.f32 %v844_v9, %v441_v8  ;;  %v449_v13 = vsel %vm265_vm0, %v446_v3, %v448_v0  ;;  %v447_v42 = vsel %vm265_vm0, %v444_v58, %v446_v3 }
  0xea   : > { %v538_v17 = vadd.f32 %v848_v10, %v449_v13  ;;  %v513_v18 = vpop.f32.mrf.mxu0  ;;  %v563_v29 = vsel %vm552_vm2, %v560_v59, %v562_v7  ;;  %v565_v45 = vsel %vm552_vm2, %v562_v7, %v564_v5 }
  0xeb   : > { %v529_v20 = vpop.f32.mrf.mxu1  ;;  %v579_v23 = vadd.f32 %v559_v62, %v522_v12  ;;  %v514_v25 = vadd.f32 %v513_v18, %v460_v63  ;;  %v645_v63 = vpop.permute.xlu1 %644 }
  0xec   : > { %v530_v26 = vadd.f32 %v529_v20, %v445_v19  ;;  %v583_v28 = vadd.f32 %v567_v24, %v538_v17  ;;  %v845_v30 = vpop.f32.mrf.mxu0 }
  0xed   : > { %v849_v32 = vpop.f32.mrf.mxu1  ;;  %v593_v34 = vadd.f32 %v781_v16, %v579_v23  ;;  %v577_v35 = vadd.f32 %v555_v14, %v514_v25  ;;  %v525_v37 = vadd.f32 %v845_v30, %v443_v4 }
  0xee   : > { %v581_v36 = vadd.f32 %v563_v29, %v530_v26  ;;  %v597_v38 = vadd.f32 %v781_v16, %v583_v28  ;;  %v541_v40 = vadd.f32 %v849_v32, %v451_v31  ;;  %v516_v41 = vpop.f32.mrf.mxu0 }
  0xef   : > { %v532_v43 = vpop.f32.mrf.mxu1  ;;  %v649_v46 = vmul.f32 %v992_v44, %v593_v34  ;;  %v591_v48 = vadd.f32 %v781_v16, %v577_v35  ;;  %v580_v51 = vadd.f32 %v561_v21, %v525_v37  ;;  %v517_v54 = vadd.f32 %v516_v41, %v439_v15 }
  0xf0   : > { %v595_v49 = vadd.f32 %v781_v16, %v581_v36  ;;  %v653_v52 = vmul.f32 %v640_v47, %v597_v38  ;;  %v584_v53 = vadd.f32 %v576_v27, %v541_v40  ;;  %v533_v55 = vadd.f32 %v532_v43, %v447_v42 }
  0xf1   : > { %v657_v56 = vmul.f32 5.656854, %v649_v46  ;;  %v647_v57 = vmul.f32 %v988_v39, %v591_v48  ;;  %v594_v58 = vadd.f32 %v781_v16, %v580_v51  ;;  %v578_v61 = vadd.f32 %v557_v22, %v517_v54 }
  0xf2   : > { %v651_v44 = vmul.f32 %v630_v11, %v595_v49  ;;  %v661_v59 = vmul.f32 5.656854, %v653_v52  ;;  %v598_v60 = vadd.f32 %v781_v16, %v584_v53  ;;  %v582_v62 = vadd.f32 %v565_v45, %v533_v55 }
  0xf3   : > { %666 = vst.msk [vmem:[%s1023_s21 + $0x10] sm:$0xff] %vm663_vm3, %v657_v56  ;;  %v655_v0 = vmul.f32 5.656854, %v647_v57  ;;  %v650_v3 = vmul.f32 %v998_v1, %v594_v58  ;;  %v592_v4 = vadd.f32 %v781_v16, %v578_v61 }
  0xf4   : > { %v659_v2 = vmul.f32 5.656854, %v651_v44  ;;  %670 = vst.msk [vmem:[%s1023_s21 + $0x30] sm:$0xff] %vm663_vm3, %v661_v59  ;;  %v654_v39 = vmul.f32 %v645_v63, %v598_v60  ;;  %v596_v5 = vadd.f32 %v781_v16, %v582_v62 }
  0xf5   : > { %664 = vst.msk [vmem:[%s1023_s21] sm:$0xff] %vm663_vm3, %v655_v0  ;;  %v658_v6 = vmul.f32 5.656854, %v650_v3  ;;  %v648_v8 = vmul.f32 %v994_v50, %v592_v4 }
  0xf6   : > { %668 = vst.msk [vmem:[%s1023_s21 + $0x20] sm:$0xff] %vm663_vm3, %v659_v2  ;;  %v662_v7 = vmul.f32 5.656854, %v654_v39  ;;  %v652_v9 = vmul.f32 %v635_v33, %v596_v5 }
  0xf7   : > { %667 = vst.msk [vmem:[%s1023_s21 + $0x18] sm:$0xff] %vm663_vm3, %v658_v6  ;;  %v656_v1 = vmul.f32 5.656854, %v648_v8 }
  0xf8   : > { %671 = vst.msk [vmem:[%s1023_s21 + $0x38] sm:$0xff] %vm663_vm3, %v662_v7  ;;  %v660_v10 = vmul.f32 5.656854, %v652_v9 }
  0xf9   : > { %665 = vst.msk [vmem:[%s1023_s21 + $0x8] sm:$0xff] %vm663_vm3, %v656_v1 }
  0xfa   : > { %669 = vst.msk [vmem:[%s1023_s21 + $0x28] sm:$0xff] %vm663_vm3, %v660_v10 }
  0xfb PF: > { %s14_s15 = sadd.s32 1, %s886_s15  }
  0xfc   : > { %p11_p4 = scmp.ge.s32.totalorder %s14_s15, 4  }
  0xfe   :  { %13 = sbr.rel (!%p11_p4) target bundleno = 1 (0x1), region = 71 }

// kernel: decoder_forward.5
= control target key start
LH: loop header
LB: loop body
LE: loop exit
PB: predicated region body
PF: predicated region fallthrough
CT: control target
= control target key end

     0   :  { %s4115_s27 = smov 0   ;;  %s5043_s0 = inlined_call_operand.vmem [shape: f32[2,64,32], index: 0, kind: input, shape index: {}]   ;;  %s5044_s1 = inlined_call_operand.vmem [shape: f32[2,1,64], index: 1, kind: input, shape index: {}]   ;;  %s5045_s2 = inlined_call_operand.vmem [shape: f32[4,32], index: 2, kind: input, shape index: {}]   ;;  %s5046_s3 = inlined_call_operand.vmem [shape: bf16[32,96], index: 3, kind: input, shape index: {}]   ;;  %s5047_s4 = inlined_call_operand.vmem [shape: f32[1,96], index: 4, kind: input, shape index: {}]   ;;  %s5048_s5 = inlined_call_operand.vmem [shape: f32[2,16], index: 5, kind: input, shape index: {}]   ;;  %s5049_s6 = inlined_call_operand.vmem [shape: f32[2,16], index: 6, kind: input, shape index: {}]   ;;  %s5050_s7 = inlined_call_operand.vmem [shape: bf16[2,16,32], index: 7, kind: input, shape index: {}]   ;;  %s5051_s8 = inlined_call_operand.vmem [shape: bf16[2,16,32], index: 8, kind: input, shape index: {}]   ;;  %s5052_s9 = inlined_call_operand.vmem [shape: f32[64,32], index: 9, kind: input, shape index: {}]   ;;  %s5053_s10 = inlined_call_operand.vmem [shape: f32[64,32], index: 10, kind: input, shape index: {}]   ;;  %s5054_s11 = inlined_call_operand.vmem [shape: bf16[64,32], index: 11, kind: input, shape index: {}]   ;;  %s5055_s12 = inlined_call_operand.vmem [shape: bf16[2,16,32], index: 12, kind: input, shape index: {}]   ;;  %s5056_s13 = inlined_call_operand.vmem [shape: f32[1,32], index: 13, kind: input, shape index: {}]   ;;  %s5057_s14 = inlined_call_operand.vmem [shape: bf16[3,32,64], index: 14, kind: input, shape index: {}]   ;;  %s5058_s15 = inlined_call_operand.vmem [shape: f32[1,64], index: 15, kind: input, shape index: {}]   ;;  %s5059_s16 = inlined_call_operand.vmem [shape: bf16[3,64,32], index: 16, kind: input, shape index: {}]   ;;  %s5060_s17 = inlined_call_operand.vmem [shape: f32[1,32], index: 17, kind: input, shape index: {}]   ;;  %s5061_s18 = inlined_call_operand.vmem [shape: f32[2,64,32], index: 18, kind: output, shape index: {}]  }
   0x1   :  { %5063 = sst [smem:[#allocation2_spill]] %s5043_s0 }
   0x2   :  { %5064 = sst [smem:[#allocation3_spill]] %s5044_s1 }
   0x3   :  { %5065 = sst [smem:[#allocation4_spill]] %s5045_s2 }
   0x4 LB: > { %s3299_s28 = sadd.s32 4294967295, %s4011_s27   ;;  %p3303_p0 = scmp.ge.s32.totalorder %s4011_s27, 1  ;;  %s4011_s27 = sphi %s4115_s27, %s28_s27  }
   0x5   : > { %p520_p1 = scmp.lt.s32.totalorder %s4011_s27, 3 }
   0x7   : > { %p521_p2 = pnand %p3303_p0, %p520_p1 }
   0x8   : > { %p577_p3 = scmp.lt.s32.totalorder (!%p521_p2), %s3299_s28, 1  ;;  %s5066_s19 = sld [smem:[#allocation2_spill]] (!%p521_p2) }
   0x9   : > { %524 = sbr.rel (%p521_p2) target bundleno = 3523 (0xdc3), region = 92  ;;  %s5067_s25 = sld [smem:[#allocation4_spill]] (!%p521_p2) }
   0xa   : > { %s4013_s26 = smov (!%p521_p2), 96   ;;  %s5068_s21 = sld [smem:[#allocation3_spill]] (!%p521_p2) }
   0xb   : > { %s4015_s2 = smov (!%p521_p2), 64   ;;  %s4017_s30 = smov (!%p521_p2), 112  }
   0xc   : > { %s4018_s20 = smov (!%p521_p2), 80  }
   0xe   : > { %s5070_s28 = smov (!%p577_p3, %s3299_s28), 1  ;;  %vm603_vm0 = vcmask 261120   ;;  %v3871_v56 = vld [vmem:[%s5046_s3 + $0x8] sm:$0xff]   ;;  %v3872_v57 = vld [vmem:[%s5046_s3] sm:$0xff]   ;;  %vm908_vm1 = vcmask 130048   ;;  %vm1311_vm4 = vcmask 523264  }
   0xf   : > { %s3458_s29 = sshll.u32 %s5070_s28, 6  ;;  %3586 = vmatprep.subr.bf16.mxu0 %v3871_v56  ;;  %vm2658_vm5 = vcmask 1040384   ;;  %vm2768_vm6 = vcmask 1046528  }
  0x10   : > { %s4131_s1 = scalar_lea.vmem %s5066_s19, %s3458_s29  ;;  %3587 = vmatpush3.bf16.msra.mxu0 %v3871_v56  ;;  %s584_s22 = scalar_lea.vmem %s5068_s21, %s5070_s28 }
  0x11   : > { %v591_v0 = vld [vmem:[%s4131_s1] sm:$0xff]  ;;  %v593_v1 = vld [vmem:[%s4131_s1 + $0x10] sm:$0xff]  ;;  %v592_v2 = vld [vmem:[%s4131_s1 + $0x8] sm:$0xff]  ;;  %3588 = vmatprep.subr.bf16.mxu0 %v3872_v57 }
  0x12   : > { %v604_v3 = vsel %vm603_vm0, %v591_v0, 0.0  ;;  %v610_v4 = vsel %vm603_vm0, %v593_v1, 0.0  ;;  %v594_v5 = vld [vmem:[%s4131_s1 + $0x18] sm:$0xff]  ;;  %v595_v6 = vld [vmem:[%s4131_s1 + $0x20] sm:$0xff]  ;;  %v596_v7 = vld [vmem:[%s4131_s1 + $0x28] sm:$0xff]  ;;  %v607_v10 = vsel %vm603_vm0, %v592_v2, 0.0 }
  0x13   : > { %605 = vadd.xlane.f32.xlu0 %v604_v3  ;;  %611 = vadd.xlane.f32.xlu1 %v610_v4  ;;  %v597_v8 = vld [vmem:[%s4131_s1 + $0x30] sm:$0xff]  ;;  %v598_v9 = vld [vmem:[%s4131_s1 + $0x38] sm:$0xff]  ;;  %v613_v11 = vsel %vm603_vm0, %v594_v5, 0.0  ;;  %v616_v12 = vsel %vm603_vm0, %v595_v6, 0.0  ;;  %v619_v13 = vsel %vm603_vm0, %v596_v7, 0.0 }
  0x14   : > { %v622_v14 = vsel %vm603_vm0, %v597_v8, 0.0  ;;  %v625_v15 = vsel %vm603_vm0, %v598_v9, 0.0  ;;  %3589 = vmatpush3.bf16.msra.mxu0 %v3872_v57 }
  0x17   : > { %608 = vadd.xlane.f32.xlu0 %v607_v10  ;;  %614 = vadd.xlane.f32.xlu1 %v613_v11 }
  0x1b   : > { %617 = vadd.xlane.f32.xlu0 %v616_v12  ;;  %620 = vadd.xlane.f32.xlu1 %v619_v13 }
  0x1f   : > { %623 = vadd.xlane.f32.xlu0 %v622_v14  ;;  %626 = vadd.xlane.f32.xlu1 %v625_v15 }
  0x9c   : > { %v606_v16 = vpop.xlane.xlu0 %605  ;;  %v612_v17 = vpop.xlane.xlu1 %611 }
  0x9d   : > { %v629_v18 = vmul.f32 0.03125, %v606_v16  ;;  %v631_v19 = vmul.f32 0.03125, %v612_v17 }
  0x9f   : > { %v4149_v20 = vsub.f32 %v591_v0, %v629_v18  ;;  %v4151_v21 = vsub.f32 %v593_v1, %v631_v19 }
  0xa0   : > { %v609_v22 = vpop.xlane.xlu0 %608  ;;  %v615_v23 = vpop.xlane.xlu1 %614 }
  0xa1   : > { %v630_v24 = vmul.f32 0.03125, %v609_v22  ;;  %v632_v25 = vmul.f32 0.03125, %v615_v23  ;;  %v645_v26 = vmul.f32 %v4149_v20, %v4149_v20  ;;  %v647_v27 = vmul.f32 %v4151_v21, %v4151_v21  ;;  %v3308_v22 = vld [vmem:[%s5067_s25] ss:$0 sm:$0xff] }
  0xa3   : > { %v4157_v28 = vsub.f32 %v592_v2, %v630_v24  ;;  %v4159_v29 = vsub.f32 %v594_v5, %v632_v25  ;;  %v653_v30 = vsel %vm603_vm0, %v645_v26, 0.0  ;;  %v659_v33 = vsel %vm603_vm0, %v647_v27, 0.0  ;;  %v3309_v27 = vld [vmem:[%s5067_s25 + $0x1] ss:$0 sm:$0xff] }
  0xa4   : > { %654 = vadd.xlane.f32.xlu0 %v653_v30  ;;  %v618_v31 = vpop.xlane.xlu0 %617  ;;  %v621_v32 = vpop.xlane.xlu1 %620 }
  0xa5   : > { %v633_v34 = vmul.f32 0.03125, %v618_v31  ;;  %v634_v35 = vmul.f32 0.03125, %v621_v32  ;;  %v646_v36 = vmul.f32 %v4157_v28, %v4157_v28  ;;  %v648_v37 = vmul.f32 %v4159_v29, %v4159_v29 }
  0xa7   : > { %v4167_v38 = vsub.f32 %v595_v6, %v633_v34  ;;  %v4169_v39 = vsub.f32 %v596_v7, %v634_v35  ;;  %v656_v40 = vsel %vm603_vm0, %v646_v36, 0.0  ;;  %v662_v43 = vsel %vm603_vm0, %v648_v37, 0.0 }
  0xa8   : > { %660 = vadd.xlane.f32.xlu0 %v659_v33  ;;  %657 = vadd.xlane.f32.xlu1 %v656_v40  ;;  %v624_v41 = vpop.xlane.xlu0 %623  ;;  %v627_v42 = vpop.xlane.xlu1 %626 }
  0xa9   : > { %v635_v44 = vmul.f32 0.03125, %v624_v41  ;;  %v636_v45 = vmul.f32 0.03125, %v627_v42  ;;  %v649_v46 = vmul.f32 %v4167_v38, %v4167_v38  ;;  %v650_v47 = vmul.f32 %v4169_v39, %v4169_v39 }
  0xab   : > { %v4177_v48 = vsub.f32 %v597_v8, %v635_v44  ;;  %v4179_v49 = vsub.f32 %v598_v9, %v636_v45  ;;  %v665_v50 = vsel %vm603_vm0, %v649_v46, 0.0  ;;  %v668_v51 = vsel %vm603_vm0, %v650_v47, 0.0 }
  0xac   : > { %663 = vadd.xlane.f32.xlu1 %v662_v43  ;;  %666 = vadd.xlane.f32.xlu0 %v665_v50 }
  0xad   : > { %v651_v52 = vmul.f32 %v4177_v48, %v4177_v48  ;;  %v652_v53 = vmul.f32 %v4179_v49, %v4179_v49 }
  0xaf   : > { %v671_v54 = vsel %vm603_vm0, %v651_v52, 0.0  ;;  %v674_v55 = vsel %vm603_vm0, %v652_v53, 0.0 }
  0xb0   : > { %669 = vadd.xlane.f32.xlu1 %v668_v51  ;;  %672 = vadd.xlane.f32.xlu0 %v671_v54 }
  0xb4   : > { %675 = vadd.xlane.f32.xlu1 %v674_v55 }
 0x12d   : > { %v655_v58 = vpop.xlane.xlu0 %654 }
 0x12e   : > { %v677_v59 = vmul.f32 0.03125, %v655_v58 }
 0x130   : > { %v685_v60 = vadd.f32 1e-12, %v677_v59 }
 0x131   : > { %v658_v61 = vpop.xlane.xlu1 %657  ;;  %v661_v62 = vpop.xlane.xlu0 %660 }
 0x132   : > { %3901 = vrsqrt.f32 %v685_v60  ;;  %v678_v63 = vmul.f32 0.03125, %v658_v61  ;;  %v679_v0 = vmul.f32 0.03125, %v661_v62  ;;  %v3310_v60 = vld [vmem:[%s5047_s4] ss:$0 sm:$0xff] }
 0x134   : > { %v686_v1 = vadd.f32 1e-12, %v678_v63  ;;  %v687_v2 = vadd.f32 1e-12, %v679_v0 }
 0x135   : > { %v664_v3 = vpop.xlane.xlu1 %663  ;;  %v667_v4 = vpop.xlane.xlu0 %666 }
 0x136   : > { %3903 = vrsqrt.f32 %v686_v1  ;;  %v680_v5 = vmul.f32 0.03125, %v664_v3  ;;  %v681_v6 = vmul.f32 0.03125, %v667_v4  ;;  %v3318_v3 = vld [vmem:[%s5049_s6] ss:$0 sm:$0xff] }
 0x137   : > { %3905 = vrsqrt.f32 %v687_v2 }
 0x138   : > { %v688_v7 = vadd.f32 1e-12, %v680_v5  ;;  %v689_v8 = vadd.f32 1e-12, %v681_v6 }
 0x139   : > { %v670_v9 = vpop.xlane.xlu1 %669  ;;  %v673_v10 = vpop.xlane.xlu0 %672 }
 0x13a   : > { %3907 = vrsqrt.f32 %v688_v7  ;;  %v682_v11 = vmul.f32 0.03125, %v670_v9  ;;  %v683_v12 = vmul.f32 0.03125, %v673_v10 }
 0x13b   : > { %3909 = vrsqrt.f32 %v689_v8 }
 0x13c   : > { %v690_v13 = vadd.f32 1e-12, %v682_v11  ;;  %v691_v14 = vadd.f32 1e-12, %v683_v12 }
 0x13d   : > { %v676_v15 = vpop.xlane.xlu1 %675 }
 0x13e   : > { %3911 = vrsqrt.f32 %v690_v13  ;;  %v684_v16 = vmul.f32 0.03125, %v676_v15 }
 0x13f   : > { %v3902_v17 = vpop.eup %3901  ;;  %3913 = vrsqrt.f32 %v691_v14 }
 0x140   : > { %v692_v18 = vadd.f32 1e-12, %v684_v16  ;;  %v701_v19 = vmul.f32 %v3902_v17, %v4149_v20 }
 0x142   : > { %3915 = vrsqrt.f32 %v692_v18  ;;  %v713_v26 = vmul.f32 %v3308_v22, %v701_v19 }
 0x143   : > { %v3904_v23 = vpop.eup %3903 }
 0x144   : > { %v3906_v24 = vpop.eup %3905  ;;  %v702_v25 = vmul.f32 %v3904_v23, %v4157_v28  ;;  %v725_v20 = vadd.f32 %v3309_v27, %v713_v26 }
 0x145   : > { %v703_v30 = vmul.f32 %v3906_v24, %v4151_v21 }
 0x146   : > { %v714_v31 = vmul.f32 %v3308_v22, %v702_v25 }
 0x147   : > { %v3908_v32 = vpop.eup %3907  ;;  %v715_v36 = vmul.f32 %v3308_v22, %v703_v30 }
 0x148   : > { %v3910_v33 = vpop.eup %3909  ;;  %v726_v34 = vadd.f32 %v3309_v27, %v714_v31  ;;  %v704_v35 = vmul.f32 %v3908_v32, %v4159_v29  ;;  %v3317_v32 = vld [vmem:[%s5048_s5] ss:$0 sm:$0xff] }
 0x149   : > { %v705_v37 = vmul.f32 %v3910_v33, %v4167_v38  ;;  %v727_v43 = vadd.f32 %v3309_v27, %v715_v36 }
 0x14a   : > { %v733_v40 = vpack.c.bf16 %v726_v34, %v725_v20  ;;  %v716_v41 = vmul.f32 %v3308_v22, %v704_v35  ;;  %v4286_v35 = vld [vmem:[%s5054_s11 + $0x18] sm:$0xff]  }
 0x14b   : > { %v3912_v28 = vpop.eup %3911  ;;  %v717_v45 = vmul.f32 %v3308_v22, %v705_v37  ;;  %3840 = vmatprep.subr.msk.bf16.mxu0 %vm603_vm0, %v4286_v35  ;;  %v4292_v36 = vsel %vm603_vm0, %v4286_v35, 0  ;;  %v4298_v37 = vld [vmem:[%s5054_s11 + $0x10] sm:$0xff]  }
 0x14c   : > { %v3914_v42 = vpop.eup %3913  ;;  %3590 = vmatprep.mubr.msk.bf16.mxu0 %vm603_vm0, %v733_v40  ;;  %v728_v44 = vadd.f32 %v3309_v27, %v716_v41  ;;  %v706_v21 = vmul.f32 %v3912_v28, %v4169_v39  ;;  %v4304_v40 = vsel %vm603_vm0, %v4298_v37, 0  ;;  %v4310_v41 = vld [vmem:[%s5054_s11 + $0x8] sm:$0xff]  }
 0x14d   : > { %v707_v46 = vmul.f32 %v3914_v42, %v4177_v48  ;;  %v729_v29 = vadd.f32 %v3309_v27, %v717_v45  ;;  %v3873_v48 = vld [vmem:[%s5050_s7] sm:$0xff]   ;;  %v4316_v28 = vsel %vm603_vm0, %v4310_v41, 0 }
 0x14e   : > { %v734_v47 = vpack.c.bf16 %v728_v44, %v727_v43  ;;  %v718_v50 = vmul.f32 %v3308_v22, %v706_v21  ;;  %3598 = vmatprep.subr.bf16.mxu1 %v3873_v48  ;;  %v4322_v42 = vld [vmem:[%s5054_s11] sm:$0xff]  }
 0x14f   : > { %v3916_v51 = vpop.eup %3915  ;;  %v719_v53 = vmul.f32 %v3308_v22, %v707_v46  ;;  %3599 = vmatpush3.bf16.msra.mxu1 %v3873_v48  ;;  %v4328_v43 = vsel %vm603_vm0, %v4322_v42, 0 }
 0x150   : > { %3591 = vmatmul.mubr.msk.bf16.vlgmr.msra.gmra.mxu0 %vm603_vm0, %v734_v47  ;;  %v730_v38 = vadd.f32 %v3309_v27, %v718_v50  ;;  %v708_v52 = vmul.f32 %v3916_v51, %v4179_v49  ;;  %v3874_v49 = vld [vmem:[%s5051_s8] sm:$0xff]  }
 0x151   : > { %v731_v56 = vadd.f32 %v3309_v27, %v719_v53  ;;  %3608 = vmatprep.subr.bf16.mxu1 %v3874_v49  ;;  %3619 = vmatpush3.bf16.xpose.msra.mxu0 %v4292_v36 }
 0x152   : > { %v735_v54 = vpack.c.bf16 %v730_v38, %v729_v29  ;;  %v720_v55 = vmul.f32 %v3308_v22, %v708_v52  ;;  %3841 = vmatprep.subr.msk.bf16.mxu0 %vm603_vm0, %v4298_v37 }
 0x154   : > { %3594 = vmatprep.mubr.msk.bf16.mxu0 %vm603_vm0, %v735_v54  ;;  %v732_v57 = vadd.f32 %v3309_v27, %v720_v55 }
 0x156   : > { %v736_v39 = vpack.c.bf16 %v732_v57, %v731_v56 }
 0x158   : > { %3595 = vmatmul.mubr.msk.bf16.gmra.mxu0 %vm603_vm0, %v736_v39 }
 0x159   : > { %3621 = vmatpush3.bf16.xpose.msra.mxu0 %v4304_v40 }
 0x15a   : > { %3842 = vmatprep.subr.msk.bf16.mxu0 %vm603_vm0, %v4310_v41 }
 0x161   : > { %3623 = vmatpush3.bf16.xpose.msra.mxu0 %v4316_v28 }
 0x162   : > { %3843 = vmatprep.subr.msk.bf16.mxu0 %vm603_vm0, %v4322_v42 }
 0x169   : > { %3625 = vmatpush3.bf16.xpose.msra.mxu0 %v4328_v43 }
 0x210   : > { %v3592_v58 = vpop.f32.mrf.mxu0 }
 0x211   : > { %v4226_v0 = vadd.f32 %v3592_v58, %v3310_v60 }
 0x212   : > { %v806_v59 = vpop.f32.mrf.mxu0 }
 0x213   : > { %v4222_v62 = vadd.f32 %v3310_v60, %v806_v59  ;;  %v886_v9 = vadd.f32 %v3318_v3, %v4226_v0  ;;  %v869_v53 = vadd.f32 %v3317_v32, %v4226_v0 }
 0x214   : > { %v3593_v61 = vpop.f32.mrf.mxu0 }
 0x215   : > { %v4224_v63 = vadd.f32 %v3593_v61, %v3310_v60  ;;  %v884_v6 = vadd.f32 %v3318_v3, %v4222_v62  ;;  %v867_v20 = vadd.f32 %v3317_v32, %v4222_v62 }
 0x216   : > { %v809_v1 = vpop.f32.mrf.mxu0 }
 0x217   : > { %v4228_v2 = vadd.f32 %v3310_v60, %v809_v1  ;;  %v887_v5 = vadd.f32 %v3318_v3, %v4224_v63  ;;  %v4264_v30 = vpack.c.bf16 %v4224_v63, %v4226_v0  ;;  %v870_v38 = vadd.f32 %v3317_v32, %v4224_v63 }
 0x218   : > { %v3596_v4 = vpop.f32.mrf.mxu0 }
 0x219   : > { %v885_v7 = vadd.f32 %v3318_v3, %v4228_v2  ;;  %v893_v12 = vpack.c.bf16 %v887_v5, %v886_v9  ;;  %v4237_v13 = vadd.f32 %v3596_v4, %v3310_v60  ;;  %v4271_v31 = vpack.c.bf16 %v4228_v2, %v4222_v62  ;;  %v4361_v9 = vld [vmem:[%s5052_s9 + $0x18] sm:$0xff] }
 0x21a   : > { %v822_v8 = vpop.f32.mrf.mxu0  ;;  %v868_v33 = vadd.f32 %v3317_v32, %v4228_v2  ;;  %v876_v55 = vpack.c.bf16 %v870_v38, %v869_v53  ;;  %v4404_v38 = vld [vmem:[%s5053_s10 + $0x38] sm:$0xff] }
 0x21b   : > { %v892_v10 = vpack.c.bf16 %v885_v7, %v884_v6  ;;  %v4239_v14 = vadd.f32 %v3310_v60, %v822_v8  ;;  %v890_v25 = vadd.f32 %v3318_v3, %v4237_v13  ;;  %v873_v39 = vadd.f32 %v3317_v32, %v4237_v13  ;;  %v4351_v6 = vld [vmem:[%s5053_s10] sm:$0xff]  ;;  %v4356_v8 = vld [vmem:[%s5053_s10 + $0x18] sm:$0xff] }
 0x21c   : > { %v3597_v11 = vpop.f32.mrf.mxu0  ;;  %v875_v34 = vpack.c.bf16 %v868_v33, %v867_v20 }
 0x21d   : > { %v4241_v15 = vadd.f32 %v3597_v11, %v3310_v60  ;;  %3600 = vmatprep.mubr.msk.bf16.mxu1 %vm908_vm1, %v892_v10  ;;  %v888_v23 = vadd.f32 %v3318_v3, %v4239_v14  ;;  %v871_v54 = vadd.f32 %v3317_v32, %v4239_v14  ;;  %v4371_v11 = vld [vmem:[%s5052_s9] sm:$0xff] }
 0x21e   : > { %v825_v16 = vpop.f32.mrf.mxu0  ;;  %3601 = vmatmul.mubr.msk.bf16.vlgmr.msra.gmra.mxu1 %vm908_vm1, %v893_v12 }
 0x21f   : > { %v4245_v17 = vadd.f32 %v3310_v60, %v825_v16  ;;  %3609 = vmatpush3.bf16.msra.mxu1 %v3874_v49  ;;  %v4249_v18 = vpack.c.bf16 %v4241_v15, %v4237_v13  ;;  %v891_v19 = vadd.f32 %v3318_v3, %v4241_v15  ;;  %v874_v57 = vadd.f32 %v3317_v32, %v4241_v15 }
 0x221   : > { %1206 = vrot.lane.b32.xlu0 %v4249_v18, %s4013_s26  ;;  %v4255_v22 = vpack.c.bf16 %v4245_v17, %v4239_v14  ;;  %v889_v24 = vadd.f32 %v3318_v3, %v4245_v17  ;;  %v895_v27 = vpack.c.bf16 %v891_v19, %v890_v25  ;;  %v872_v52 = vadd.f32 %v3317_v32, %v4245_v17  ;;  %v4381_v19 = vld [vmem:[%s5053_s10 + $0x8] sm:$0xff] }
 0x222   : > { %v878_v48 = vpack.c.bf16 %v874_v57, %v873_v39 }
 0x223   : > { %1204 = vrot.lane.b32.xlu1 %v4255_v22, %s4013_s26  ;;  %v894_v26 = vpack.c.bf16 %v889_v24, %v888_v23  ;;  %v877_v56 = vpack.c.bf16 %v872_v52, %v871_v54  ;;  %v4386_v23 = vld [vmem:[%s5052_s9 + $0x10] sm:$0xff]  ;;  %v4409_v52 = vld [vmem:[%s5052_s9 + $0x38] sm:$0xff] }
 0x224   : > { %v4414_v54 = vld [vmem:[%s5053_s10 + $0x30] sm:$0xff] }
 0x225   : > { %3604 = vmatprep.mubr.msk.bf16.mxu1 %vm908_vm1, %v894_v26 }
 0x226   : > { %3605 = vmatmul.mubr.msk.bf16.gmra.mxu1 %vm908_vm1, %v895_v27 }
 0x227   : > { %1202 = vrot.lane.b32.xlu1 %v4264_v30, %s4013_s26  ;;  %3610 = vmatprep.mubr.msk.bf16.mxu1 %vm908_vm1, %v892_v10  ;;  %v4366_v10 = vld [vmem:[%s5053_s10 + $0x10] sm:$0xff] }
 0x22b   : > { %1200 = vrot.lane.b32.xlu1 %v4271_v31, %s4013_s26  ;;  %s4016_s26 = smov 16  }
 0x22e   : > { %3611 = vmatmul.mubr.msk.bf16.vlgmr.msra.gmra.mxu1 %vm908_vm1, %v893_v12  ;;  %v4376_v12 = vld [vmem:[%s5052_s9 + $0x8] sm:$0xff] }
 0x22f   : > { %3614 = vmatprep.mubr.msk.bf16.mxu1 %vm908_vm1, %v894_v26 }
 0x236   : > { %3615 = vmatmul.mubr.msk.bf16.gmra.mxu1 %vm908_vm1, %v895_v27 }
 0x237   : > { %3642 = vmatprep.mubr.msk.bf16.mxu1 %vm908_vm1, %v875_v34 }
 0x293   : > { %v1207_v44 = vpop.permute.xlu0 %1206 }
 0x294   : > { %v1230_v21 = vsel %vm908_vm1, %v1207_v44, 0  ;;  %3844 = vmatprep.subr.msk.bf16.mxu1 %vm908_vm1, %v1207_v44 }
 0x295   : > { %v1205_v45 = vpop.permute.xlu1 %1204  ;;  %3635 = vmatpush3.bf16.xpose.msra.mxu1 %v1230_v21 }
 0x296   : > { %3845 = vmatprep.subr.msk.bf16.mxu1 %vm908_vm1, %v1205_v45  ;;  %v1227_v46 = vsel %vm908_vm1, %v1205_v45, 0 }
 0x299   : > { %v1203_v47 = vpop.permute.xlu1 %1202 }
 0x29a   : > { %v1224_v50 = vsel %vm908_vm1, %v1203_v47, 0 }
 0x29d   : > { %3637 = vmatpush3.bf16.xpose.msra.mxu1 %v1227_v46  ;;  %v1201_v51 = vpop.permute.xlu1 %1200 }
 0x29e   : > { %3846 = vmatprep.subr.msk.bf16.mxu1 %vm908_vm1, %v1203_v47  ;;  %v1221_v29 = vsel %vm908_vm1, %v1201_v51, 0 }
 0x2a5   : > { %3639 = vmatpush3.bf16.xpose.msra.mxu1 %v1224_v50 }
 0x2a6   : > { %3847 = vmatprep.subr.msk.bf16.mxu1 %vm908_vm1, %v1201_v51  ;;  %v4399_v51 = vld [vmem:[%s5053_s10 + $0x20] sm:$0xff] }
 0x2ad   : > { %3641 = vmatpush3.bf16.xpose.msra.mxu1 %v1221_v29 }
 0x2b4   : > { %3643 = vmatmul.mubr.msk.bf16.vlgmr.msra.gmra.mxu1 %vm908_vm1, %v876_v55  ;;  %v4419_v55 = vld [vmem:[%s5052_s9 + $0x20] sm:$0xff] }
 0x2b5   : > { %3646 = vmatprep.mubr.msk.bf16.mxu1 %vm908_vm1, %v877_v56  ;;  %v4424_v56 = vld [vmem:[%s5052_s9 + $0x28] sm:$0xff] }
 0x2bc   : > { %3647 = vmatmul.mubr.msk.bf16.gmra.mxu1 %vm908_vm1, %v878_v48  ;;  %v4429_v48 = vld [vmem:[%s5053_s10 + $0x28] sm:$0xff] }
 0x2de   : > { %v3602_v49 = vpop.f32.mrf.mxu1 }
 0x2df   : > { %v1061_v44 = vmul.f32 %v3602_v49, %v4386_v23  ;;  %v4434_v49 = vld [vmem:[%s5052_s9 + $0x30] sm:$0xff] }
 0x2e0   : > { %v955_v58 = vpop.f32.mrf.mxu1 }
 0x2e1   : > { %v1059_v33 = vmul.f32 %v955_v58, %v4371_v11 }
 0x2e2   : > { %v3603_v59 = vpop.f32.mrf.mxu1 }
 0x2e3   : > { %v1062_v26 = vmul.f32 %v3603_v59, %v4361_v9 }
 0x2e4   : > { %v958_v60 = vpop.f32.mrf.mxu1 }
 0x2e5   : > { %v1060_v20 = vmul.f32 %v958_v60, %v4376_v12 }
 0x2e6   : > { %v3606_v61 = vpop.f32.mrf.mxu1 }
 0x2e8   : > { %v971_v1 = vpop.f32.mrf.mxu1 }
 0x2ea   : > { %v3607_v3 = vpop.f32.mrf.mxu1 }
 0x2eb   : > { %v1066_v60 = vmul.f32 %v3607_v3, %v4409_v52 }
 0x2ec   : > { %v974_v4 = vpop.f32.mrf.mxu1 }
 0x2ee   : > { %v3612_v5 = vpop.f32.mrf.mxu1 }
 0x2ef   : > { %v1069_v27 = vmul.f32 %v3612_v5, %v4366_v10 }
 0x2f0   : > { %v1028_v7 = vpop.f32.mrf.mxu1 }
 0x2f1   : > { %v1067_v24 = vmul.f32 %v1028_v7, %v4351_v6  ;;  %v1077_v50 = vadd.f32 %v1069_v27, %v1061_v44 }
 0x2f2   : > { %v3613_v16 = vpop.f32.mrf.mxu1 }
 0x2f3   : > { %v1070_v25 = vmul.f32 %v3613_v16, %v4356_v8  ;;  %v1075_v46 = vadd.f32 %v1067_v24, %v1059_v33  ;;  %v1063_v16 = vmul.f32 %v971_v1, %v4419_v55  ;;  %v1064_v24 = vmul.f32 %v974_v4, %v4424_v56 }
 0x2f4   : > { %v1031_v32 = vpop.f32.mrf.mxu1  ;;  %v1298_v1 = vlaneseq }
 0x2f5   : > { %v1068_v34 = vmul.f32 %v1031_v32, %v4381_v19  ;;  %v1078_v21 = vadd.f32 %v1070_v25, %v1062_v26  ;;  %v1065_v26 = vmul.f32 %v3606_v61, %v4434_v49 }
 0x2f6   : > { %v3616_v45 = vpop.f32.mrf.mxu1 }
 0x2f7   : > { %v1076_v47 = vadd.f32 %v1068_v34, %v1060_v20  ;;  %v1084_v57 = vpack.c.bf16 %v1078_v21, %v1077_v50  ;;  %v1073_v5 = vmul.f32 %v3616_v45, %v4414_v54  ;;  %v599_v21 = vld [vmem:[%s584_s22] sm:$0x1]  ;;  %v1299_v45 = vshrl.u32 %v1298_v1, 7 }
 0x2f8   : > { %v1044_v29 = vpop.f32.mrf.mxu1  ;;  %vm600_vm2 = vcmp.eq.f32.partialorder %v599_v21, 0.0 }
 0x2f9   : > { %v1083_v53 = vpack.c.bf16 %v1076_v47, %v1075_v46  ;;  %v1071_v58 = vmul.f32 %v1044_v29, %v4399_v51  ;;  %v1081_v20 = vadd.f32 %v1073_v5, %v1065_v26  ;;  %v1300_v46 = vsub.s32 0, %v1299_v45 }
 0x2fa   : > { %v3617_v39 = vpop.f32.mrf.mxu1  ;;  %v4014_v47 = vmov 0  }
 0x2fb   : > { %v1074_v59 = vmul.f32 %v3617_v39, %v4404_v38  ;;  %3626 = vmatprep.mubr.msk.bf16.mxu0 %vm603_vm0, %v1083_v53  ;;  %v1079_v32 = vadd.f32 %v1071_v58, %v1063_v16  ;;  %v1297_v50 = vsel %vm600_vm2, 1, %v4014_v47 }
 0x2fc   : > { %v1047_v7 = vpop.f32.mrf.mxu1  ;;  %3627 = vmatmul.mubr.msk.bf16.vlgmr.msra.gmra.mxu0 %vm603_vm0, %v1084_v57  ;;  %v4452_v53 = vrot.slane %v1297_v50, %v1300_v46 }
 0x2fd   : > { %v1072_v25 = vmul.f32 %v1047_v7, %v4429_v48  ;;  %v1082_v27 = vadd.f32 %v1074_v59, %v1066_v60 }
 0x2fe   : > { %vm1302_vm3 = vcmp.eq.s32.totalorder %v4452_v53, 1 }
 0x2ff   : > { %v1080_v33 = vadd.f32 %v1072_v25, %v1064_v24  ;;  %v1086_v3 = vpack.c.bf16 %v1082_v27, %v1081_v20 }
 0x301   : > { %v1085_v34 = vpack.c.bf16 %v1080_v33, %v1079_v32 }
 0x303   : > { %3630 = vmatprep.mubr.msk.bf16.mxu0 %vm603_vm0, %v1085_v34 }
 0x304   : > { %3631 = vmatmul.mubr.msk.bf16.gmra.mxu0 %vm603_vm0, %v1086_v3 }
 0x374   : > { %v3644_v44 = vpop.f32.mrf.mxu1 }
 0x376   : > { %v1266_v4 = vpop.f32.mrf.mxu1 }
 0x378   : > { %v3645_v61 = vpop.f32.mrf.mxu1 }
 0x37a   : > { %v1269_v29 = vpop.f32.mrf.mxu1 }
 0x37c   : > { %v3648_v39 = vpop.f32.mrf.mxu1 }
 0x37e   : > { %v1282_v16 = vpop.f32.mrf.mxu1 }
 0x380   : > { %v3649_v34 = vpop.f32.mrf.mxu1 }
 0x3bc   : > { %v3628_v57 = vpop.f32.mrf.mxu0 }
 0x3bd   : > { %v1275_v59 = vadd.f32 %v3644_v44, %v3628_v57 }
 0x3be   : > { %v1165_v58 = vpop.f32.mrf.mxu0 }
 0x3bf   : > { %v1267_v60 = vadd.f32 %v1266_v4, %v1165_v58  ;;  %v1305_v32 = vsel %vm1302_vm3, -3.4028235e+38, %v1275_v59 }
 0x3c0   : > { %v3629_v5 = vpop.f32.mrf.mxu0  ;;  %v1318_v1 = vsel %vm1311_vm4, %v1305_v32, -inf }
 0x3c1   : > { %v1303_v7 = vsel %vm1302_vm3, -3.4028235e+38, %v1267_v60  ;;  %v1278_v26 = vadd.f32 %v3645_v61, %v3629_v5  ;;  %v1285_v61 = vpop.f32.mrf.mxu1 }
 0x3c2   : > { %v1168_v24 = vpop.f32.mrf.mxu0  ;;  %v1312_v25 = vsel %vm1311_vm4, %v1303_v7, -inf }
 0x3c3   : > { %v1270_v27 = vadd.f32 %v1269_v29, %v1168_v24  ;;  %1313 = vmax.xlane.f32.xlu0 %v1312_v25  ;;  %v1306_v21 = vsel %vm1302_vm3, -3.4028235e+38, %v1278_v26 }
 0x3c4   : > { %v3632_v33 = vpop.f32.mrf.mxu0  ;;  %v1321_v47 = vsel %vm1311_vm4, %v1306_v21, -inf }
 0x3c5   : > { %v1304_v20 = vsel %vm1302_vm3, -3.4028235e+38, %v1270_v27  ;;  %v1291_v50 = vadd.f32 %v3648_v39, %v3632_v33 }
 0x3c6   : > { %v1181_v3 = vpop.f32.mrf.mxu0  ;;  %v1315_v44 = vsel %vm1311_vm4, %v1304_v20, -inf }
 0x3c7   : > { %v1283_v4 = vadd.f32 %v1282_v16, %v1181_v3  ;;  %1316 = vmax.xlane.f32.xlu1 %v1315_v44  ;;  %1319 = vmax.xlane.f32.xlu0 %v1318_v1  ;;  %v1309_v16 = vsel %vm1302_vm3, -3.4028235e+38, %v1291_v50 }
 0x3c8   : > { %v3633_v45 = vpop.f32.mrf.mxu0  ;;  %v1330_v25 = vsel %vm1311_vm4, %v1309_v16, -inf }
 0x3c9   : > { %v1294_v29 = vadd.f32 %v3649_v34, %v3633_v45  ;;  %v1307_v58 = vsel %vm1302_vm3, -3.4028235e+38, %v1283_v4 }
 0x3ca   : > { %v1184_v46 = vpop.f32.mrf.mxu0  ;;  %v1324_v5 = vsel %vm1311_vm4, %v1307_v58, -inf }
 0x3cb   : > { %v1286_v57 = vadd.f32 %v1285_v61, %v1184_v46  ;;  %1322 = vmax.xlane.f32.xlu0 %v1321_v47  ;;  %v1310_v39 = vsel %vm1302_vm3, -3.4028235e+38, %v1294_v29 }
 0x3cc   : > { %v1333_v24 = vsel %vm1311_vm4, %v1310_v39, -inf }
 0x3cd   : > { %v4471_v59 = vsel %vm1302_vm3, -3.4028235e+38, %v1286_v57 }
 0x3ce   : > { %v1327_v60 = vsel %vm1311_vm4, %v4471_v59, -inf }
 0x3cf   : > { %1328 = vmax.xlane.f32.xlu1 %v1327_v60  ;;  %1325 = vmax.xlane.f32.xlu0 %v1324_v5 }
 0x3d3   : > { %1334 = vmax.xlane.f32.xlu1 %v1333_v24  ;;  %1331 = vmax.xlane.f32.xlu0 %v1330_v25 }
 0x44c   : > { %v1314_v26 = vpop.xlane.xlu0 %1313 }
 0x44d   : > { %v1336_v27 = vsub.f32 %v1303_v7, %v1314_v26 }
 0x44f   : > { %v1344_v4 = vmul.f32 1.442695, %v1336_v27 }
 0x450   : > { %v1317_v33 = vpop.xlane.xlu1 %1316  ;;  %v1320_v34 = vpop.xlane.xlu0 %1319 }
 0x451   : > { %v1338_v3 = vsub.f32 %v1305_v32, %v1320_v34  ;;  %v1337_v44 = vsub.f32 %v1304_v20, %v1317_v33 }
 0x453   : > { %v1348_v1 = vmul.f32 1.442695, %v1338_v3  ;;  %v1346_v46 = vmul.f32 1.442695, %v1337_v44 }
 0x454   : > { %v1323_v45 = vpop.xlane.xlu0 %1322 }
 0x455   : > { %v1339_v61 = vsub.f32 %v1306_v21, %v1323_v45  ;;  %3917 = vpow2.f32 %v1348_v1  ;;  %v3352_v45 = vld [vmem:[%s5049_s6 + $0x1] ss:$0 sm:$0xff] }
 0x456   : > { %3919 = vpow2.f32 %v1344_v4 }
 0x457   : > { %v1350_v47 = vmul.f32 1.442695, %v1339_v61 }
 0x458   : > { %v1326_v50 = vpop.xlane.xlu0 %1325  ;;  %v1329_v44 = vpop.xlane.xlu1 %1328 }
 0x459   : > { %3921 = vpow2.f32 %v1350_v47  ;;  %v1340_v29 = vsub.f32 %v1307_v58, %v1326_v50  ;;  %v1341_v61 = vsub.f32 %v4471_v59, %v1329_v44 }
 0x45a   : > { %3923 = vpow2.f32 %v1346_v46 }
 0x45b   : > { %v1352_v7 = vmul.f32 1.442695, %v1340_v29  ;;  %v1354_v47 = vmul.f32 1.442695, %v1341_v61 }
 0x45c   : > { %v1332_v57 = vpop.xlane.xlu0 %1331  ;;  %v1335_v1 = vpop.xlane.xlu1 %1334 }
 0x45d   : > { %v1342_v60 = vsub.f32 %v1309_v16, %v1332_v57  ;;  %v1343_v4 = vsub.f32 %v1310_v39, %v1335_v1 }
 0x45f   : > { %v1356_v5 = vmul.f32 1.442695, %v1342_v60  ;;  %v1358_v46 = vmul.f32 1.442695, %v1343_v4 }
 0x461   : > { %3925 = vpow2.f32 %v1356_v5 }
 0x462   : > { %v4482_v24 = vpop.eup %3917  ;;  %3927 = vpow2.f32 %v1352_v7 }
 0x463   : > { %v1366_v32 = vsel %vm1311_vm4, %v4482_v24, 0.0  ;;  %v3920_v20 = vpop.eup %3919  ;;  %3929 = vpow2.f32 %v1358_v46 }
 0x464   : > { %1367 = vadd.xlane.f32.xlu0 %v1366_v32  ;;  %v1360_v58 = vsel %vm1311_vm4, %v3920_v20, 0.0  ;;  %3931 = vpow2.f32 %v1354_v47 }
 0x466   : > { %v4486_v21 = vpop.eup %3921 }
 0x467   : > { %v1369_v25 = vsel %vm1311_vm4, %v4486_v21, 0.0  ;;  %v3924_v26 = vpop.eup %3923 }
 0x468   : > { %1370 = vadd.xlane.f32.xlu1 %v1369_v25  ;;  %1361 = vadd.xlane.f32.xlu0 %v1360_v58  ;;  %v1363_v16 = vsel %vm1311_vm4, %v3924_v26, 0.0 }
 0x46c   : > { %1364 = vadd.xlane.f32.xlu1 %v1363_v16 }
 0x46e   : > { %v4492_v27 = vpop.eup %3925 }
 0x46f   : > { %v1378_v33 = vsel %vm1311_vm4, %v4492_v27, 0.0  ;;  %v4496_v34 = vpop.eup %3927 }
 0x470   : > { %1379 = vadd.xlane.f32.xlu0 %v1378_v33  ;;  %v1372_v3 = vsel %vm1311_vm4, %v4496_v34, 0.0  ;;  %v4508_v50 = vpop.eup %3929 }
 0x471   : > { %v1381_v29 = vsel %vm1311_vm4, %v4508_v50, 0.0  ;;  %v4512_v57 = vpop.eup %3931 }
 0x472   : > { %v1375_v39 = vsel %vm1311_vm4, %v4512_v57, 0.0 }
 0x474   : > { %1373 = vadd.xlane.f32.xlu0 %v1372_v3 }
 0x47d   : > { %1416 = vrot.lane.b32.xlu1 %v4255_v22, %s4015_s2 }
 0x481   : > { %1414 = vrot.lane.b32.xlu1 %v4264_v30, %s4015_s2 }
 0x48a   : > { %1418 = vrot.lane.b32.xlu0 %v4249_v18, %s4015_s2 }
 0x48e   : > { %1631 = vrot.lane.b32.xlu0 %v3352_v45, %s4016_s26 }
 0x4a5   : > { %1382 = vadd.xlane.f32.xlu1 %v1381_v29 }
 0x4a9   : > { %1376 = vadd.xlane.f32.xlu1 %v1375_v39 }
 0x4ba   : > { %1412 = vrot.lane.b32.xlu1 %v4271_v31, %s4015_s2  ;;  %s4995_s2 = scalar_lea.vmem %s5061_s18, %s3458_s29 }
 0x4ed   : > { %v1368_v60 = vpop.xlane.xlu0 %1367 }
 0x4f1   : > { %v1371_v59 = vpop.xlane.xlu1 %1370  ;;  %v1362_v5 = vpop.xlane.xlu0 %1361 }
 0x4f2   : > { %3933 = vrcp.f32 %v1362_v5 }
 0x4f5   : > { %v1365_v7 = vpop.xlane.xlu1 %1364 }
 0x4f6   : > { %3935 = vrcp.f32 %v1365_v7 }
 0x4f7   : > { %3937 = vrcp.f32 %v1371_v59 }
 0x4f8   : > { %3939 = vrcp.f32 %v1368_v60 }
 0x4f9   : > { %v1380_v32 = vpop.xlane.xlu0 %1379  ;;  %v1417_v16 = vpop.permute.xlu1 %1416 }
 0x4fd   : > { %v1374_v25 = vpop.xlane.xlu0 %1373 }
 0x4fe   : > { %3941 = vrcp.f32 %v1374_v25 }
 0x4ff   : > { %v3934_v58 = vpop.eup %3933 }
 0x500   : > { %v1392_v3 = vmul.f32 %v3934_v58, %v3920_v20  ;;  %v1415_v20 = vpop.permute.xlu1 %1414 }
 0x501   : > { %v1419_v33 = vpop.permute.xlu0 %1418 }
 0x502   : > { %3650 = vmatprep.subr.bf16.mxu0 %v1419_v33  ;;  %v1400_v45 = vsel %vm1302_vm3, 0.0, %v1392_v3 }
 0x503   : > { %v3936_v44 = vpop.eup %3935  ;;  %3651 = vmatpush3.bf16.msra.mxu0 %v1419_v33 }
 0x504   : > { %v1393_v1 = vmul.f32 %v3936_v44, %v3924_v26  ;;  %3652 = vmatprep.subr.bf16.mxu0 %v1417_v16 }
 0x505   : > { %v1632_v4 = vpop.permute.xlu0 %1631 }
 0x506   : > { %v1401_v61 = vsel %vm1302_vm3, 0.0, %v1393_v1  ;;  %v1636_v47 = vadd.f32 %v1632_v4, %v4226_v0  ;;  %v1637_v29 = vadd.f32 %v1632_v4, %v4224_v63  ;;  %v1634_v39 = vadd.f32 %v1632_v4, %v4222_v62 }
 0x507   : > { %v1408_v46 = vpack.c.bf16 %v1401_v61, %v1400_v45  ;;  %3653 = vmatpush3.bf16.msra.mxu0 %v1417_v16  ;;  %v1635_v5 = vadd.f32 %v1632_v4, %v4228_v2  ;;  %v1640_v7 = vadd.f32 %v1632_v4, %v4237_v13  ;;  %v1641_v58 = vadd.f32 %v1632_v4, %v4241_v15  ;;  %v3351_v45 = vld [vmem:[%s5048_s5 + $0x1] ss:$0 sm:$0xff]  ;;  %v3938_v61 = vpop.eup %3937 }
 0x508   : > { %3654 = vmatprep.subr.bf16.mxu0 %v1415_v20  ;;  %v1643_v26 = vpack.c.bf16 %v1637_v29, %v1636_v47  ;;  %v1638_v3 = vadd.f32 %v1632_v4, %v4239_v14  ;;  %v1639_v44 = vadd.f32 %v1632_v4, %v4245_v17  ;;  %v1395_v47 = vmul.f32 %v3938_v61, %v4486_v21 }
 0x509   : > { %3658 = vmatprep.mubr.msk.bf16.mxu0 %vm1311_vm4, %v1408_v46  ;;  %v1642_v33 = vpack.c.bf16 %v1635_v5, %v1634_v39  ;;  %v1645_v16 = vpack.c.bf16 %v1641_v58, %v1640_v7  ;;  %v3940_v46 = vpop.eup %3939 }
 0x50a   : > { %1655 = vrot.lane.b32.xlu0 %v1643_v26, %s4017_s30  ;;  %v1644_v1 = vpack.c.bf16 %v1639_v44, %v1638_v3  ;;  %v1394_v39 = vmul.f32 %v3940_v46, %v4482_v24 }
 0x50b   : > { %1653 = vrot.lane.b32.xlu1 %v1642_v33, %s4017_s30  ;;  %3655 = vmatpush3.bf16.msra.mxu0 %v1415_v20  ;;  %v1403_v20 = vsel %vm1302_vm3, 0.0, %v1395_v47  ;;  %v3942_v25 = vpop.eup %3941 }
 0x50c   : > { %v1402_v60 = vsel %vm1302_vm3, 0.0, %v1394_v39  ;;  %v1396_v7 = vmul.f32 %v3942_v25, %v4496_v34  ;;  %v3879_v34 = vld [vmem:[%s5055_s12] sm:$0xff]  }
 0x50d   : > { %v1409_v59 = vpack.c.bf16 %v1403_v20, %v1402_v60  ;;  %3838 = vmatprep.subr.bf16.mxu1 %v3879_v34 }
 0x50e   : > { %1659 = vrot.lane.b32.xlu0 %v1645_v16, %s4017_s30  ;;  %v1404_v44 = vsel %vm1302_vm3, 0.0, %v1396_v7  ;;  %3839 = vmatpush3.bf16.msra.mxu1 %v3879_v34 }
 0x50f   : > { %1657 = vrot.lane.b32.xlu1 %v1644_v1, %s4017_s30 }
 0x512   : > { %1941 = vrot.lane.b32.xlu0 %v4249_v18, %s4018_s20 }
 0x513   : > { %1610 = vrot.lane.b32.xlu1 %v3351_v45, %s4016_s26 }
 0x516   : > { %1937 = vrot.lane.b32.xlu0 %v4264_v30, %s4018_s20 }
 0x517   : > { %1939 = vrot.lane.b32.xlu1 %v4255_v22, %s4018_s20 }
 0x51b   : > { %1935 = vrot.lane.b32.xlu1 %v4271_v31, %s4018_s20 }
 0x52e   : > { %v1383_v4 = vpop.xlane.xlu1 %1382 }
 0x52f   : > { %3943 = vrcp.f32 %v1383_v4 }
 0x530   : > { %3945 = vrcp.f32 %v1380_v32 }
 0x532   : > { %v1377_v29 = vpop.xlane.xlu1 %1376 }
 0x533   : > { %3947 = vrcp.f32 %v1377_v29 }
 0x536   : > { %v1413_v5 = vpop.permute.xlu1 %1412 }
 0x537   : > { %3656 = vmatprep.subr.bf16.mxu0 %v1413_v5 }
 0x538   : > { %3657 = vmatpush3.bf16.msra.mxu0 %v1413_v5 }
 0x539   : > { %3666 = vmatprep.subr.bf16.mxu0 %v3879_v34 }
 0x53b   : > { %3659 = vmatmul.mubr.msk.bf16.vlgmr.msra.gmra.mxu0 %vm1311_vm4, %v1409_v59 }
 0x53c   : > { %v3944_v32 = vpop.eup %3943  ;;  %3667 = vmatpush3.bf16.msra.mxu0 %v3879_v34 }
 0x53d   : > { %v3946_v26 = vpop.eup %3945  ;;  %v1399_v21 = vmul.f32 %v3944_v32, %v4508_v50 }
 0x53e   : > { %v1398_v58 = vmul.f32 %v3946_v26, %v4492_v27 }
 0x53f   : > { %v1407_v3 = vsel %vm1302_vm3, 0.0, %v1399_v21 }
 0x540   : > { %v3948_v24 = vpop.eup %3947  ;;  %v1406_v50 = vsel %vm1302_vm3, 0.0, %v1398_v58 }
 0x541   : > { %v1397_v33 = vmul.f32 %v3948_v24, %v4512_v57  ;;  %v1411_v45 = vpack.c.bf16 %v1407_v3, %v1406_v50 }
 0x543   : > { %v1405_v16 = vsel %vm1302_vm3, 0.0, %v1397_v33 }
 0x544   : > { %v1410_v1 = vpack.c.bf16 %v1405_v16, %v1404_v44 }
 0x546   : > { %3662 = vmatprep.mubr.msk.bf16.mxu0 %vm1311_vm4, %v1410_v1 }
 0x547   : > { %3663 = vmatmul.mubr.msk.bf16.gmra.mxu0 %vm1311_vm4, %v1411_v45 }
 0x57c   : > { %v1656_v21 = vpop.permute.xlu0 %1655 }
 0x57d   : > { %v1654_v27 = vpop.permute.xlu1 %1653 }
 0x580   : > { %v1660_v33 = vpop.permute.xlu0 %1659 }
 0x581   : > { %v1658_v57 = vpop.permute.xlu1 %1657 }
 0x585   : > { %v1611_v4 = vpop.permute.xlu1 %1610 }
 0x586   : > { %v1615_v61 = vadd.f32 %v1611_v4, %v4226_v0  ;;  %v1616_v46 = vadd.f32 %v1611_v4, %v4224_v63  ;;  %v1613_v47 = vadd.f32 %v1611_v4, %v4222_v62  ;;  %v1614_v29 = vadd.f32 %v1611_v4, %v4228_v2  ;;  %v3880_v0 = vld [vmem:[%s5050_s7 + $0x8] sm:$0xff]  }
 0x587   : > { %v1619_v39 = vadd.f32 %v1611_v4, %v4237_v13  ;;  %v1620_v20 = vadd.f32 %v1611_v4, %v4241_v15  ;;  %v1617_v59 = vadd.f32 %v1611_v4, %v4239_v14  ;;  %v1618_v25 = vadd.f32 %v1611_v4, %v4245_v17  ;;  %3676 = vmatprep.subr.bf16.mxu0 %v3880_v0  ;;  %v3881_v2 = vld [vmem:[%s5051_s8 + $0x8] sm:$0xff]  }
 0x588   : > { %v1622_v5 = vpack.c.bf16 %v1616_v46, %v1615_v61  ;;  %v1621_v60 = vpack.c.bf16 %v1614_v29, %v1613_v47  ;;  %3686 = vmatprep.subr.bf16.mxu1 %v3881_v2 }
 0x589   : > { %v1624_v62 = vpack.c.bf16 %v1620_v20, %v1619_v39  ;;  %v1623_v63 = vpack.c.bf16 %v1618_v25, %v1617_v59 }
 0x58a   : > { %1929 = vrot.lane.b32.xlu1 %v1622_v5, %s4017_s30  ;;  %1927 = vrot.lane.b32.xlu0 %v1621_v60, %s4017_s30 }
 0x58e   : > { %1933 = vrot.lane.b32.xlu1 %v1624_v62, %s4017_s30  ;;  %1931 = vrot.lane.b32.xlu0 %v1623_v63, %s4017_s30  ;;  %s4019_s30 = smov 48  }
 0x5fb   : > { %v3660_v13 = vpop.f32.mrf.mxu0 }
 0x5fd   : > { %v1470_v14 = vpop.f32.mrf.mxu0 }
 0x5ff   : > { %v3661_v15 = vpop.f32.mrf.mxu0 }
 0x600   : > { %v1502_v26 = vpack.c.bf16 %v3661_v15, %v3660_v13 }
 0x601   : > { %v1473_v17 = vpop.f32.mrf.mxu0 }
 0x602   : > { %v1501_v32 = vpack.c.bf16 %v1473_v17, %v1470_v14 }
 0x604   : > { %3668 = vmatprep.mubr.msk.bf16.mxu0 %vm908_vm1, %v1501_v32 }
 0x605   : > { %3669 = vmatmul.mubr.msk.bf16.vlgmr.msra.gmra.mxu0 %vm908_vm1, %v1502_v26 }
 0x606   : > { %3678 = vmatprep.mubr.msk.bf16.mxu0 %vm908_vm1, %v1654_v27  ;;  %3677 = vmatpush3.bf16.msra.mxu0 %v3880_v0 }
 0x607   : > { %v3664_v7 = vpop.f32.mrf.mxu0  ;;  %3848 = vmatprep.subr.msk.bf16.mxu0 %vm603_vm0, %v4286_v35  ;;  %v1942_v35 = vpop.permute.xlu0 %1941 }
 0x609   : > { %v1486_v24 = vpop.f32.mrf.mxu0 }
 0x60b   : > { %v3665_v58 = vpop.f32.mrf.mxu0  ;;  %v1938_v1 = vpop.permute.xlu0 %1937 }
 0x60c   : > { %v1504_v16 = vpack.c.bf16 %v3665_v58, %v3664_v7 }
 0x60d   : > { %v1489_v3 = vpop.f32.mrf.mxu0  ;;  %3679 = vmatmul.mubr.msk.bf16.vlgmr.msra.gmra.mxu0 %vm908_vm1, %v1656_v21 }
 0x60e   : > { %v1503_v44 = vpack.c.bf16 %v1489_v3, %v1486_v24  ;;  %3682 = vmatprep.mubr.msk.bf16.mxu0 %vm908_vm1, %v1658_v57  ;;  %3697 = vmatpush3.bf16.xpose.msra.mxu0 %v4292_v36  ;;  %v1965_v36 = vsel %vm908_vm1, %v1942_v35, 0 }
 0x60f   : > { %3849 = vmatprep.subr.msk.bf16.mxu0 %vm603_vm0, %v4298_v37  ;;  %v1940_v37 = vpop.permute.xlu1 %1939  ;;  %v1928_v50 = vpop.permute.xlu0 %1927 }
 0x610   : > { %3672 = vmatprep.mubr.msk.bf16.mxu1 %vm908_vm1, %v1503_v44 }
 0x611   : > { %3673 = vmatmul.mubr.msk.bf16.vlgmr.msra.gmra.mxu1 %vm908_vm1, %v1504_v16 }
 0x612   : > { %3687 = vmatpush3.bf16.msra.mxu1 %v3881_v2  ;;  %3688 = vmatprep.mubr.msk.bf16.mxu1 %vm908_vm1, %v1654_v27 }
 0x613   : > { %3852 = vmatprep.subr.msk.bf16.mxu1 %vm908_vm1, %v1942_v35  ;;  %v1936_v45 = vpop.permute.xlu1 %1935  ;;  %v1932_v27 = vpop.permute.xlu0 %1931 }
 0x615   : > { %3683 = vmatmul.mubr.msk.bf16.gmra.mxu0 %vm908_vm1, %v1660_v33 }
 0x616   : > { %3699 = vmatpush3.bf16.xpose.msra.mxu0 %v4304_v40  ;;  %v1962_v40 = vsel %vm908_vm1, %v1940_v37, 0 }
 0x617   : > { %3850 = vmatprep.subr.msk.bf16.mxu0 %vm603_vm0, %v4310_v41  ;;  %v1959_v41 = vsel %vm908_vm1, %v1938_v1, 0 }
 0x619   : > { %3689 = vmatmul.mubr.msk.bf16.vlgmr.msra.gmra.mxu1 %vm908_vm1, %v1656_v21 }
 0x61a   : > { %3713 = vmatpush3.bf16.xpose.msra.mxu1 %v1965_v36  ;;  %3692 = vmatprep.mubr.msk.bf16.mxu1 %vm908_vm1, %v1658_v57 }
 0x61b   : > { %3853 = vmatprep.subr.msk.bf16.mxu1 %vm908_vm1, %v1940_v37 }
 0x61e   : > { %3701 = vmatpush3.bf16.xpose.msra.mxu0 %v4316_v28  ;;  %v1956_v28 = vsel %vm908_vm1, %v1936_v45, 0 }
 0x61f   : > { %3851 = vmatprep.subr.msk.bf16.mxu0 %vm603_vm0, %v4322_v42  ;;  %v1930_v42 = vpop.permute.xlu1 %1929 }
 0x621   : > { %3693 = vmatmul.mubr.msk.bf16.gmra.mxu1 %vm908_vm1, %v1660_v33 }
 0x622   : > { %3715 = vmatpush3.bf16.xpose.msra.mxu1 %v1962_v40  ;;  %3720 = vmatprep.mubr.msk.bf16.mxu1 %vm908_vm1, %v1928_v50 }
 0x623   : > { %3854 = vmatprep.subr.msk.bf16.mxu1 %vm908_vm1, %v1938_v1  ;;  %v1934_v34 = vpop.permute.xlu1 %1933 }
 0x626   : > { %3703 = vmatpush3.bf16.xpose.msra.mxu0 %v4328_v43 }
 0x62a   : > { %3717 = vmatpush3.bf16.xpose.msra.mxu1 %v1959_v41 }
 0x62b   : > { %3855 = vmatprep.subr.msk.bf16.mxu1 %vm908_vm1, %v1936_v45 }
 0x632   : > { %3719 = vmatpush3.bf16.xpose.msra.mxu1 %v1956_v28 }
 0x639   : > { %3721 = vmatmul.mubr.msk.bf16.vlgmr.msra.gmra.mxu1 %vm908_vm1, %v1930_v42 }
 0x63a   : > { %3724 = vmatprep.mubr.msk.bf16.mxu1 %vm908_vm1, %v1932_v27 }
 0x641   : > { %3725 = vmatmul.mubr.msk.bf16.gmra.mxu1 %vm908_vm1, %v1934_v34 }
 0x6c5   : > { %v4620_v57 = vpop.f32.mrf.mxu0 }
 0x6c7   : > { %v4622_v43 = vpop.f32.mrf.mxu0 }
 0x6c9   : > { %v4624_v4 = vpop.f32.mrf.mxu0 }
 0x6cb   : > { %v4626_v61 = vpop.f32.mrf.mxu0 }
 0x6cd   : > { %v3680_v46 = vpop.f32.mrf.mxu0 }
 0x6ce   : > { %v1820_v24 = vmul.f32 %v3680_v46, %v4386_v23 }
 0x6cf   : > { %v1713_v47 = vpop.f32.mrf.mxu0 }
 0x6d0   : > { %v1818_v26 = vmul.f32 %v1713_v47, %v4371_v11 }
 0x6d1   : > { %v4628_v29 = vpop.f32.mrf.mxu1  ;;  %v3681_v39 = vpop.f32.mrf.mxu0 }
 0x6d2   : > { %v1821_v15 = vmul.f32 %v3681_v39, %v4361_v9 }
 0x6d3   : > { %v4630_v20 = vpop.f32.mrf.mxu1  ;;  %v1716_v5 = vpop.f32.mrf.mxu0 }
 0x6d4   : > { %v1819_v21 = vmul.f32 %v1716_v5, %v4376_v12 }
 0x6d5   : > { %v4632_v60 = vpop.f32.mrf.mxu1  ;;  %v3684_v25 = vpop.f32.mrf.mxu0 }
 0x6d6   : > { %v1824_v41 = vmul.f32 %v3684_v25, %v4434_v49 }
 0x6d7   : > { %v4634_v59 = vpop.f32.mrf.mxu1  ;;  %v1729_v63 = vpop.f32.mrf.mxu0 }
 0x6d8   : > { %v1822_v1 = vmul.f32 %v1729_v63, %v4419_v55 }
 0x6d9   : > { %v3690_v0 = vpop.f32.mrf.mxu1  ;;  %v3685_v58 = vpop.f32.mrf.mxu0 }
 0x6da   : > { %v1828_v17 = vmul.f32 %v3690_v0, %v4366_v10  ;;  %v1825_v12 = vmul.f32 %v3685_v58, %v4409_v52 }
 0x6db   : > { %v1787_v62 = vpop.f32.mrf.mxu1  ;;  %v1732_v9 = vpop.f32.mrf.mxu0 }
 0x6dc   : > { %v1826_v13 = vmul.f32 %v1787_v62, %v4351_v6  ;;  %v1836_v16 = vadd.f32 %v1828_v17, %v1820_v24  ;;  %v1823_v40 = vmul.f32 %v1732_v9, %v4424_v56 }
 0x6dd   : > { %v3691_v2 = vpop.f32.mrf.mxu1 }
 0x6de   : > { %v1829_v14 = vmul.f32 %v3691_v2, %v4356_v8  ;;  %v1834_v44 = vadd.f32 %v1826_v13, %v1818_v26 }
 0x6df   : > { %v1790_v32 = vpop.f32.mrf.mxu1 }
 0x6e0   : > { %v1827_v7 = vmul.f32 %v1790_v32, %v4381_v19  ;;  %v1837_v33 = vadd.f32 %v1829_v14, %v1821_v15 }
 0x6e1   : > { %v3694_v3 = vpop.f32.mrf.mxu1 }
 0x6e2   : > { %v1835_v6 = vadd.f32 %v1827_v7, %v1819_v21  ;;  %v1843_v36 = vpack.c.bf16 %v1837_v33, %v1836_v16  ;;  %v1832_v19 = vmul.f32 %v3694_v3, %v4414_v54 }
 0x6e3   : > { %v1803_v8 = vpop.f32.mrf.mxu1 }
 0x6e4   : > { %v1842_v35 = vpack.c.bf16 %v1835_v6, %v1834_v44  ;;  %v1830_v37 = vmul.f32 %v1803_v8, %v4399_v51  ;;  %v1840_v28 = vadd.f32 %v1832_v19, %v1824_v41 }
 0x6e5   : > { %v3695_v10 = vpop.f32.mrf.mxu1 }
 0x6e6   : > { %v1833_v11 = vmul.f32 %v3695_v10, %v4404_v38  ;;  %3704 = vmatprep.mubr.msk.bf16.mxu0 %vm603_vm0, %v1842_v35  ;;  %v1838_v45 = vadd.f32 %v1830_v37, %v1822_v1 }
 0x6e7   : > { %v1806_v23 = vpop.f32.mrf.mxu1  ;;  %3705 = vmatmul.mubr.msk.bf16.vlgmr.msra.gmra.mxu0 %vm603_vm0, %v1843_v36 }
 0x6e8   : > { %v1831_v50 = vmul.f32 %v1806_v23, %v4429_v48  ;;  %v1841_v51 = vadd.f32 %v1833_v11, %v1825_v12 }
 0x6ea   : > { %v1839_v38 = vadd.f32 %v1831_v50, %v1823_v40  ;;  %v1845_v27 = vpack.c.bf16 %v1841_v51, %v1840_v28 }
 0x6ec   : > { %v1844_v42 = vpack.c.bf16 %v1839_v38, %v1838_v45 }
 0x6ee   : > { %3708 = vmatprep.mubr.msk.bf16.mxu0 %vm603_vm0, %v1844_v42 }
 0x6ef   : > { %3709 = vmatmul.mubr.msk.bf16.gmra.mxu0 %vm603_vm0, %v1845_v27 }
 0x6f9   : > { %v3722_v52 = vpop.f32.mrf.mxu1 }
 0x6fb   : > { %v2001_v54 = vpop.f32.mrf.mxu1 }
 0x6fd   : > { %v3723_v34 = vpop.f32.mrf.mxu1 }
 0x6ff   : > { %v2004_v55 = vpop.f32.mrf.mxu1 }
 0x701   : > { %v3726_v56 = vpop.f32.mrf.mxu1 }
 0x703   : > { %v2017_v25 = vpop.f32.mrf.mxu1 }
 0x705   : > { %v3727_v17 = vpop.f32.mrf.mxu1 }
 0x707   : > { %v2020_v33 = vpop.f32.mrf.mxu1 }
 0x7a7   : > { %v3706_v46 = vpop.f32.mrf.mxu0 }
 0x7a8   : > { %v2010_v48 = vadd.f32 %v3722_v52, %v3706_v46 }
 0x7a9   : > { %v1892_v47 = vpop.f32.mrf.mxu0 }
 0x7aa   : > { %v2002_v39 = vadd.f32 %v2001_v54, %v1892_v47  ;;  %v2034_v13 = vsel %vm1302_vm3, -3.4028235e+38, %v2010_v48 }
 0x7ab   : > { %v3707_v49 = vpop.f32.mrf.mxu0  ;;  %v2046_v21 = vsel %vm1311_vm4, %v2034_v13, -inf }
 0x7ac   : > { %v2032_v5 = vsel %vm1302_vm3, -3.4028235e+38, %v2002_v39  ;;  %v2013_v63 = vadd.f32 %v3723_v34, %v3707_v49 }
 0x7ad   : > { %v1895_v0 = vpop.f32.mrf.mxu0  ;;  %v2040_v62 = vsel %vm1311_vm4, %v2032_v5, -inf }
 0x7ae   : > { %v2005_v2 = vadd.f32 %v2004_v55, %v1895_v0  ;;  %2041 = vmax.xlane.f32.xlu0 %v2040_v62  ;;  %v2035_v24 = vsel %vm1302_vm3, -3.4028235e+38, %v2013_v63 }
 0x7af   : > { %v3710_v14 = vpop.f32.mrf.mxu0  ;;  %v2049_v44 = vsel %vm1311_vm4, %v2035_v24, -inf }
 0x7b0   : > { %v2033_v15 = vsel %vm1302_vm3, -3.4028235e+38, %v2005_v2  ;;  %v2026_v6 = vadd.f32 %v3726_v56, %v3710_v14 }
 0x7b1   : > { %v1908_v32 = vpop.f32.mrf.mxu0  ;;  %v2043_v26 = vsel %vm1311_vm4, %v2033_v15, -inf }
 0x7b2   : > { %v2018_v7 = vadd.f32 %v2017_v25, %v1908_v32  ;;  %2044 = vmax.xlane.f32.xlu1 %v2043_v26  ;;  %2047 = vmax.xlane.f32.xlu0 %v2046_v21  ;;  %v2038_v11 = vsel %vm1302_vm3, -3.4028235e+38, %v2026_v6 }
 0x7b3   : > { %v3711_v58 = vpop.f32.mrf.mxu0  ;;  %v2058_v19 = vsel %vm1311_vm4, %v2038_v11, -inf }
 0x7b4   : > { %v2029_v16 = vadd.f32 %v3727_v17, %v3711_v58  ;;  %v2036_v35 = vsel %vm1302_vm3, -3.4028235e+38, %v2018_v7 }
 0x7b5   : > { %v1911_v3 = vpop.f32.mrf.mxu0  ;;  %v2052_v10 = vsel %vm1311_vm4, %v2036_v35, -inf }
 0x7b6   : > { %v2021_v8 = vadd.f32 %v2020_v33, %v1911_v3  ;;  %2050 = vmax.xlane.f32.xlu0 %v2049_v44  ;;  %v2039_v37 = vsel %vm1302_vm3, -3.4028235e+38, %v2029_v16 }
 0x7b7   : > { %v2061_v12 = vsel %vm1311_vm4, %v2039_v37, -inf }
 0x7b8   : > { %v2037_v9 = vsel %vm1302_vm3, -3.4028235e+38, %v2021_v8 }
 0x7b9   : > { %v2055_v36 = vsel %vm1311_vm4, %v2037_v9, -inf }
 0x7ba   : > { %2056 = vmax.xlane.f32.xlu1 %v2055_v36  ;;  %2053 = vmax.xlane.f32.xlu0 %v2052_v10 }
 0x7be   : > { %2062 = vmax.xlane.f32.xlu1 %v2061_v12  ;;  %2059 = vmax.xlane.f32.xlu0 %v2058_v19 }
 0x837   : > { %v2042_v23 = vpop.xlane.xlu0 %2041 }
 0x838   : > { %v2064_v1 = vsub.f32 %v2032_v5, %v2042_v23 }
 0x83a   : > { %v2072_v51 = vmul.f32 1.442695, %v2064_v1 }
 0x83b   : > { %v2048_v40 = vpop.xlane.xlu0 %2047  ;;  %v2045_v50 = vpop.xlane.xlu1 %2044 }
 0x83c   : > { %v2066_v41 = vsub.f32 %v2034_v13, %v2048_v40  ;;  %v2065_v38 = vsub.f32 %v2033_v15, %v2045_v50 }
 0x83e   : > { %v2076_v45 = vmul.f32 1.442695, %v2066_v41  ;;  %v2074_v27 = vmul.f32 1.442695, %v2065_v38 }
 0x83f   : > { %v2051_v28 = vpop.xlane.xlu0 %2050 }
 0x840   : > { %3949 = vpow2.f32 %v2076_v45  ;;  %v2067_v42 = vsub.f32 %v2035_v24, %v2051_v28 }
 0x841   : > { %3951 = vpow2.f32 %v2072_v51 }
 0x842   : > { %v2078_v52 = vmul.f32 1.442695, %v2067_v42 }
 0x843   : > { %v2054_v54 = vpop.xlane.xlu0 %2053  ;;  %v2057_v17 = vpop.xlane.xlu1 %2056 }
 0x844   : > { %3953 = vpow2.f32 %v2078_v52  ;;  %v2068_v34 = vsub.f32 %v2036_v35, %v2054_v54  ;;  %v2069_v21 = vsub.f32 %v2037_v9, %v2057_v17 }
 0x845   : > { %3955 = vpow2.f32 %v2074_v27 }
 0x846   : > { %v2080_v56 = vmul.f32 1.442695, %v2068_v34  ;;  %v2082_v24 = vmul.f32 1.442695, %v2069_v21 }
 0x847   : > { %v2060_v55 = vpop.xlane.xlu0 %2059  ;;  %v2063_v32 = vpop.xlane.xlu1 %2062 }
 0x848   : > { %v2070_v46 = vsub.f32 %v2038_v11, %v2060_v55  ;;  %v2071_v26 = vsub.f32 %v2039_v37, %v2063_v32 }
 0x84a   : > { %v2084_v47 = vmul.f32 1.442695, %v2070_v46  ;;  %v2086_v7 = vmul.f32 1.442695, %v2071_v26 }
 0x84c   : > { %3957 = vpow2.f32 %v2084_v47 }
 0x84d   : > { %v4680_v48 = vpop.eup %3949  ;;  %3959 = vpow2.f32 %v2080_v56 }
 0x84e   : > { %v2094_v39 = vsel %vm1311_vm4, %v4680_v48, 0.0  ;;  %v3952_v49 = vpop.eup %3951  ;;  %3961 = vpow2.f32 %v2086_v7 }
 0x84f   : > { %2095 = vadd.xlane.f32.xlu0 %v2094_v39  ;;  %v2088_v0 = vsel %vm1311_vm4, %v3952_v49, 0.0  ;;  %3963 = vpow2.f32 %v2082_v24 }
 0x851   : > { %v4684_v5 = vpop.eup %3953 }
 0x852   : > { %v2097_v25 = vsel %vm1311_vm4, %v4684_v5, 0.0  ;;  %v3956_v62 = vpop.eup %3955 }
 0x853   : > { %2098 = vadd.xlane.f32.xlu1 %v2097_v25  ;;  %2089 = vadd.xlane.f32.xlu0 %v2088_v0  ;;  %v2091_v63 = vsel %vm1311_vm4, %v3956_v62, 0.0 }
 0x857   : > { %2092 = vadd.xlane.f32.xlu1 %v2091_v63 }
 0x859   : > { %v4690_v2 = vpop.eup %3957 }
 0x85a   : > { %v2106_v13 = vsel %vm1311_vm4, %v4690_v2, 0.0  ;;  %v4694_v14 = vpop.eup %3959 }
 0x85b   : > { %2107 = vadd.xlane.f32.xlu0 %v2106_v13  ;;  %v2100_v15 = vsel %vm1311_vm4, %v4694_v14, 0.0  ;;  %v3962_v58 = vpop.eup %3961 }
 0x85c   : > { %v2109_v33 = vsel %vm1311_vm4, %v3962_v58, 0.0  ;;  %v3964_v3 = vpop.eup %3963 }
 0x85d   : > { %v2103_v44 = vsel %vm1311_vm4, %v3964_v3, 0.0 }
 0x85f   : > { %2101 = vadd.xlane.f32.xlu0 %v2100_v15 }
 0x868   : > { %2144 = vrot.lane.b32.xlu1 %v4255_v22, %s4019_s30 }
 0x86c   : > { %2142 = vrot.lane.b32.xlu1 %v4264_v30, %s4019_s30 }
 0x875   : > { %2146 = vrot.lane.b32.xlu0 %v4249_v18, %s4019_s30  ;;  %v3882_v18 = vld [vmem:[%s5055_s12 + $0x8] sm:$0xff]  }
 0x876   : > { %3744 = vmatprep.subr.bf16.mxu1 %v3882_v18 }
 0x877   : > { %3745 = vmatpush3.bf16.msra.mxu1 %v3882_v18 }
 0x890   : > { %2110 = vadd.xlane.f32.xlu1 %v2109_v33  ;;  %v3350_v33 = vld [vmem:[%s5056_s13] ss:$0 sm:$0xff] }
 0x891   : > { %v1596_v18 = vadd.f32 %v3350_v33, %v4622_v43 }
 0x894   : > { %2104 = vadd.xlane.f32.xlu1 %v2103_v44  ;;  %v1598_v44 = vadd.f32 %v4620_v57, %v3350_v33 }
 0x8a5   : > { %2140 = vrot.lane.b32.xlu1 %v4271_v31, %s4019_s30 }
 0x8d8   : > { %v2096_v22 = vpop.xlane.xlu0 %2095 }
 0x8dc   : > { %v2090_v30 = vpop.xlane.xlu0 %2089  ;;  %v2099_v6 = vpop.xlane.xlu1 %2098 }
 0x8dd   : > { %3965 = vrcp.f32 %v2090_v30 }
 0x8e0   : > { %v2093_v16 = vpop.xlane.xlu1 %2092 }
 0x8e1   : > { %3967 = vrcp.f32 %v2093_v16 }
 0x8e2   : > { %3969 = vrcp.f32 %v2099_v6 }
 0x8e3   : > { %3971 = vrcp.f32 %v2096_v22 }
 0x8e4   : > { %v2108_v8 = vpop.xlane.xlu0 %2107  ;;  %v2145_v36 = vpop.permute.xlu1 %2144 }
 0x8e8   : > { %v2102_v35 = vpop.xlane.xlu0 %2101  ;;  %v2143_v23 = vpop.permute.xlu1 %2142 }
 0x8e9   : > { %3973 = vrcp.f32 %v2102_v35  ;;  %v1597_v35 = vadd.f32 %v3350_v33, %v4626_v61 }
 0x8ea   : > { %v3966_v9 = vpop.eup %3965 }
 0x8eb   : > { %v2120_v37 = vmul.f32 %v3966_v9, %v3952_v49  ;;  %v3997_v9 = vld [vmem:[%s4131_s1] sm:$0xff] }
 0x8ec   : > { %v2147_v10 = vpop.permute.xlu0 %2146 }
 0x8ed   : > { %3728 = vmatprep.subr.bf16.mxu0 %v2147_v10  ;;  %v2128_v12 = vsel %vm1302_vm3, 0.0, %v2120_v37  ;;  %v3998_v37 = vld [vmem:[%s4131_s1 + $0x10] sm:$0xff] }
 0x8ee   : > { %v3968_v31 = vpop.eup %3967  ;;  %3729 = vmatpush3.bf16.msra.mxu0 %v2147_v10 }
 0x8ef   : > { %3730 = vmatprep.subr.bf16.mxu0 %v2145_v36  ;;  %v2121_v11 = vmul.f32 %v3968_v31, %v3956_v62  ;;  %v3970_v50 = vpop.eup %3969 }
 0x8f0   : > { %v3972_v41 = vpop.eup %3971  ;;  %v2123_v51 = vmul.f32 %v3970_v50, %v4684_v5  ;;  %v1602_v50 = vadd.f32 %v4628_v29, %v3350_v33 }
 0x8f1   : > { %v2129_v19 = vsel %vm1302_vm3, 0.0, %v2121_v11  ;;  %v2122_v38 = vmul.f32 %v3972_v41, %v4680_v48  ;;  %v1600_v41 = vadd.f32 %v3350_v33, %v4630_v20 }
 0x8f2   : > { %3731 = vmatpush3.bf16.msra.mxu0 %v2145_v36  ;;  %v2136_v1 = vpack.c.bf16 %v2129_v19, %v2128_v12  ;;  %v2131_v28 = vsel %vm1302_vm3, 0.0, %v2123_v51  ;;  %v3999_v12 = vld [vmem:[%s4131_s1 + $0x8] sm:$0xff] }
 0x8f3   : > { %3732 = vmatprep.subr.bf16.mxu0 %v2143_v23  ;;  %v2130_v27 = vsel %vm1302_vm3, 0.0, %v2122_v38 }
 0x8f4   : > { %3736 = vmatprep.mubr.msk.bf16.mxu0 %vm1311_vm4, %v2136_v1  ;;  %v2137_v52 = vpack.c.bf16 %v2131_v28, %v2130_v27  ;;  %v1603_v27 = vadd.f32 %v4632_v60, %v3350_v33 }
 0x8f6   : > { %3733 = vmatpush3.bf16.msra.mxu0 %v2143_v23  ;;  %v3974_v54 = vpop.eup %3973  ;;  %v4000_v23 = vld [vmem:[%s4131_s1 + $0x18] sm:$0xff] }
 0x8f7   : > { %v2124_v56 = vmul.f32 %v3974_v54, %v4694_v14  ;;  %v4001_v54 = vld [vmem:[%s4131_s1 + $0x20] sm:$0xff] }
 0x8f9   : > { %v2132_v5 = vsel %vm1302_vm3, 0.0, %v2124_v56 }
 0x919   : > { %v2111_v40 = vpop.xlane.xlu1 %2110 }
 0x91a   : > { %3975 = vrcp.f32 %v2111_v40 }
 0x91b   : > { %3977 = vrcp.f32 %v2108_v8  ;;  %v1599_v8 = vadd.f32 %v4624_v4, %v3350_v33 }
 0x91d   : > { %v2105_v45 = vpop.xlane.xlu1 %2104 }
 0x91e   : > { %3979 = vrcp.f32 %v2105_v45 }
 0x921   : > { %v2141_v42 = vpop.permute.xlu1 %2140 }
 0x922   : > { %3734 = vmatprep.subr.bf16.mxu0 %v2141_v42 }
 0x923   : > { %3735 = vmatpush3.bf16.msra.mxu0 %v2141_v42 }
 0x926   : > { %3737 = vmatmul.mubr.msk.bf16.vlgmr.msra.gmra.mxu0 %vm1311_vm4, %v2137_v52  ;;  %v1601_v52 = vadd.f32 %v3350_v33, %v4634_v59 }
 0x927   : > { %v3976_v34 = vpop.eup %3975 }
 0x928   : > { %v3978_v55 = vpop.eup %3977  ;;  %v2127_v46 = vmul.f32 %v3976_v34, %v3962_v58 }
 0x929   : > { %v2126_v48 = vmul.f32 %v3978_v55, %v4690_v2  ;;  %v4002_v55 = vld [vmem:[%s4131_s1 + $0x30] sm:$0xff] }
 0x92a   : > { %v2135_v49 = vsel %vm1302_vm3, 0.0, %v2127_v46 }
 0x92b   : > { %v3980_v47 = vpop.eup %3979  ;;  %v2134_v62 = vsel %vm1302_vm3, 0.0, %v2126_v48  ;;  %v4003_v48 = vld [vmem:[%s4131_s1 + $0x28] sm:$0xff] }
 0x92c   : > { %v2125_v39 = vmul.f32 %v3980_v47, %v3964_v3  ;;  %v2139_v63 = vpack.c.bf16 %v2135_v49, %v2134_v62  ;;  %v4004_v49 = vld [vmem:[%s4131_s1 + $0x38] sm:$0xff] }
 0x92e   : > { %v2133_v25 = vsel %vm1302_vm3, 0.0, %v2125_v39 }
 0x92f   : > { %v2138_v0 = vpack.c.bf16 %v2133_v25, %v2132_v5 }
 0x931   : > { %3740 = vmatprep.mubr.msk.bf16.mxu0 %vm1311_vm4, %v2138_v0 }
 0x932   : > { %3741 = vmatmul.mubr.msk.bf16.gmra.mxu0 %vm1311_vm4, %v2139_v63 }
 0x9e6   : > { %v3738_v2 = vpop.f32.mrf.mxu0 }
 0x9e8   : > { %v2198_v13 = vpop.f32.mrf.mxu0 }
 0x9ea   : > { %v3739_v14 = vpop.f32.mrf.mxu0 }
 0x9eb   : > { %v2230_v32 = vpack.c.bf16 %v3739_v14, %v3738_v2 }
 0x9ec   : > { %v2201_v15 = vpop.f32.mrf.mxu0 }
 0x9ed   : > { %v2229_v17 = vpack.c.bf16 %v2201_v15, %v2198_v13 }
 0x9ef   : > { %3746 = vmatprep.mubr.msk.bf16.mxu1 %vm908_vm1, %v2229_v17 }
 0x9f0   : > { %3747 = vmatmul.mubr.msk.bf16.vlgmr.msra.gmra.mxu1 %vm908_vm1, %v2230_v32 }
 0x9f2   : > { %v3742_v26 = vpop.f32.mrf.mxu0 }
 0x9f4   : > { %v2214_v21 = vpop.f32.mrf.mxu0 }
 0x9f6   : > { %v3743_v7 = vpop.f32.mrf.mxu0 }
 0x9f7   : > { %v2232_v58 = vpack.c.bf16 %v3743_v7, %v3742_v26 }
 0x9f8   : > { %v2217_v53 = vpop.f32.mrf.mxu0 }
 0x9f9   : > { %v2231_v24 = vpack.c.bf16 %v2217_v53, %v2214_v21 }
 0x9fb   : > { %3750 = vmatprep.mubr.msk.bf16.mxu1 %vm908_vm1, %v2231_v24 }
 0x9fc   : > { %3751 = vmatmul.mubr.msk.bf16.gmra.mxu1 %vm908_vm1, %v2232_v58 }
 0xab0   : > { %v3748_v3 = vpop.f32.mrf.mxu1 }
 0xab1   : > { %v2321_v30 = vadd.f32 %v3748_v3, %v1598_v44 }
 0xab2   : > { %v2288_v22 = vpop.f32.mrf.mxu1 }
 0xab3   : > { %v2319_v6 = vadd.f32 %v2288_v22, %v1596_v18  ;;  %v4746_v31 = vadd.f32 %v3998_v37, %v2321_v30 }
 0xab4   : > { %v3749_v16 = vpop.f32.mrf.mxu1 }
 0xab5   : > { %v4743_v36 = vadd.f32 %v3997_v9, %v2319_v6  ;;  %v2322_v57 = vadd.f32 %v3749_v16, %v1599_v8  ;;  %v2343_v61 = vsel %vm603_vm0, %v4746_v31, 0.0 }
 0xab6   : > { %v2291_v10 = vpop.f32.mrf.mxu1 }
 0xab7   : > { %v2320_v11 = vadd.f32 %v2291_v10, %v1597_v35  ;;  %v2337_v43 = vsel %vm603_vm0, %v4743_v36, 0.0  ;;  %v4754_v4 = vadd.f32 %v4000_v23, %v2322_v57 }
 0xab8   : > { %2338 = vadd.xlane.f32.xlu0 %v2337_v43 }
 0xab9   : > { %v4751_v19 = vadd.f32 %v3999_v12, %v2320_v11  ;;  %v2346_v28 = vsel %vm603_vm0, %v4754_v4, 0.0 }
 0xabb   : > { %v2340_v1 = vsel %vm603_vm0, %v4751_v19, 0.0 }
 0xabc   : > { %2344 = vadd.xlane.f32.xlu0 %v2343_v61  ;;  %2341 = vadd.xlane.f32.xlu1 %v2340_v1  ;;  %v3752_v40 = vpop.f32.mrf.mxu1 }
 0xabd   : > { %v2325_v45 = vadd.f32 %v3752_v40, %v1602_v50 }
 0xabe   : > { %v2304_v51 = vpop.f32.mrf.mxu1 }
 0xabf   : > { %v2323_v38 = vadd.f32 %v2304_v51, %v1600_v41  ;;  %v4770_v20 = vadd.f32 %v4002_v55, %v2325_v45 }
 0xac0   : > { %2347 = vadd.xlane.f32.xlu0 %v2346_v28  ;;  %v3753_v42 = vpop.f32.mrf.mxu1  ;;  %v3884_v28 = vld [vmem:[%s5057_s14 + $0x28] sm:$0xff]  }
 0xac1   : > { %v4767_v34 = vadd.f32 %v4001_v54, %v2323_v38  ;;  %v2326_v46 = vadd.f32 %v3753_v42, %v1603_v27  ;;  %v2355_v59 = vsel %vm603_vm0, %v4770_v20, 0.0  ;;  %v3883_v38 = vld [vmem:[%s5057_s14 + $0x8] sm:$0xff]   ;;  %v3885_v42 = vld [vmem:[%s5057_s14] sm:$0xff]   ;;  %3766 = vmatprep.subr.bf16.mxu1 %v3884_v28 }
 0xac2   : > { %v2307_v29 = vpop.f32.mrf.mxu1  ;;  %3754 = vmatprep.subr.bf16.mxu0 %v3883_v38  ;;  %3767 = vmatpush3.bf16.msra.mxu1 %v3884_v28  ;;  %v3886_v27 = vld [vmem:[%s5057_s14 + $0x20] sm:$0xff]  }
 0xac3   : > { %v2324_v56 = vadd.f32 %v2307_v29, %v1601_v52  ;;  %v2349_v47 = vsel %vm603_vm0, %v4767_v34, 0.0  ;;  %v4778_v60 = vadd.f32 %v4004_v49, %v2326_v46  ;;  %3755 = vmatpush3.bf16.msra.mxu0 %v3883_v38  ;;  %3768 = vmatprep.subr.bf16.mxu1 %v3886_v27  ;;  %v4849_v52 = vld [vmem:[%s5057_s14 + $0x18] sm:$0xff]   ;;  %v3888_v38 = vld [vmem:[%s5057_s14 + $0x10] sm:$0xff]  }
 0xac4   : > { %2350 = vadd.xlane.f32.xlu0 %v2349_v47  ;;  %3756 = vmatprep.subr.bf16.mxu0 %v3885_v42 }
 0xac5   : > { %v4775_v39 = vadd.f32 %v4003_v48, %v2324_v56  ;;  %v2358_v25 = vsel %vm603_vm0, %v4778_v60, 0.0 }
 0xac6   : > { %3769 = vmatpush3.bf16.msra.mxu1 %v3886_v27 }
 0xac7   : > { %v2352_v5 = vsel %vm603_vm0, %v4775_v39, 0.0  ;;  %3757 = vmatpush3.bf16.msra.mxu0 %v3885_v42 }
 0xac8   : > { %2356 = vadd.xlane.f32.xlu0 %v2355_v59  ;;  %2353 = vadd.xlane.f32.xlu1 %v2352_v5 }
 0xac9   : > { %3778 = vmatprep.subr.bf16.mxu0 %v4849_v52 }
 0xacc   : > { %2359 = vadd.xlane.f32.xlu1 %v2358_v25 }
 0xb41   : > { %v2339_v0 = vpop.xlane.xlu0 %2338 }
 0xb42   : > { %v2361_v62 = vmul.f32 0.03125, %v2339_v0 }
 0xb44   : > { %v4787_v63 = vsub.f32 %v4743_v36, %v2361_v62 }
 0xb45   : > { %v2345_v2 = vpop.xlane.xlu0 %2344  ;;  %v2342_v13 = vpop.xlane.xlu1 %2341 }
 0xb46   : > { %v2363_v14 = vmul.f32 0.03125, %v2345_v2  ;;  %v2362_v15 = vmul.f32 0.03125, %v2342_v13  ;;  %v2377_v17 = vmul.f32 %v4787_v63, %v4787_v63 }
 0xb48   : > { %v4792_v32 = vsub.f32 %v4746_v31, %v2363_v14  ;;  %v4795_v26 = vsub.f32 %v4751_v19, %v2362_v15  ;;  %v2385_v21 = vsel %vm603_vm0, %v2377_v17, 0.0 }
 0xb49   : > { %v2348_v7 = vpop.xlane.xlu0 %2347  ;;  %2386 = vadd.xlane.f32.xlu0 %v2385_v21 }
 0xb4a   : > { %v2364_v53 = vmul.f32 0.03125, %v2348_v7  ;;  %v2379_v24 = vmul.f32 %v4792_v32, %v4792_v32  ;;  %v2378_v58 = vmul.f32 %v4795_v26, %v4795_v26 }
 0xb4c   : > { %v4803_v33 = vsub.f32 %v4754_v4, %v2364_v53  ;;  %v2391_v3 = vsel %vm603_vm0, %v2379_v24, 0.0  ;;  %v2388_v44 = vsel %vm603_vm0, %v2378_v58, 0.0 }
 0xb4d   : > { %2392 = vadd.xlane.f32.xlu0 %v2391_v3  ;;  %v2351_v18 = vpop.xlane.xlu0 %2350  ;;  %2389 = vadd.xlane.f32.xlu1 %v2388_v44  ;;  %v3386_v44 = vld [vmem:[%s5067_s25 + $0x2] ss:$0 sm:$0xff] }
 0xb4e   : > { %v2365_v22 = vmul.f32 0.03125, %v2351_v18  ;;  %v2380_v30 = vmul.f32 %v4803_v33, %v4803_v33 }
 0xb50   : > { %v4810_v6 = vsub.f32 %v4767_v34, %v2365_v22  ;;  %v2394_v16 = vsel %vm603_vm0, %v2380_v30, 0.0 }
 0xb51   : > { %v2357_v8 = vpop.xlane.xlu0 %2356  ;;  %2395 = vadd.xlane.f32.xlu1 %v2394_v16  ;;  %v2354_v35 = vpop.xlane.xlu1 %2353 }
 0xb52   : > { %v2367_v9 = vmul.f32 0.03125, %v2357_v8  ;;  %v2366_v10 = vmul.f32 0.03125, %v2354_v35  ;;  %v2381_v37 = vmul.f32 %v4810_v6, %v4810_v6 }
 0xb54   : > { %v4816_v57 = vsub.f32 %v4770_v20, %v2367_v9  ;;  %v4819_v11 = vsub.f32 %v4775_v39, %v2366_v10  ;;  %v2397_v43 = vsel %vm603_vm0, %v2381_v37, 0.0 }
 0xb55   : > { %2398 = vadd.xlane.f32.xlu0 %v2397_v43  ;;  %v2360_v12 = vpop.xlane.xlu1 %2359 }
 0xb56   : > { %v2368_v23 = vmul.f32 0.03125, %v2360_v12  ;;  %v2383_v61 = vmul.f32 %v4816_v57, %v4816_v57  ;;  %v2382_v1 = vmul.f32 %v4819_v11, %v4819_v11 }
 0xb58   : > { %v4827_v40 = vsub.f32 %v4778_v60, %v2368_v23  ;;  %v2403_v50 = vsel %vm603_vm0, %v2383_v61, 0.0  ;;  %v2400_v41 = vsel %vm603_vm0, %v2382_v1, 0.0 }
 0xb59   : > { %2404 = vadd.xlane.f32.xlu0 %v2403_v50  ;;  %2401 = vadd.xlane.f32.xlu1 %v2400_v41 }
 0xb5a   : > { %v2384_v51 = vmul.f32 %v4827_v40, %v4827_v40 }
 0xb5c   : > { %v2406_v45 = vsel %vm603_vm0, %v2384_v51, 0.0 }
 0xb5d   : > { %2407 = vadd.xlane.f32.xlu1 %v2406_v45 }
 0xbd2   : > { %v2387_v54 = vpop.xlane.xlu0 %2386 }
 0xbd3   : > { %v2409_v29 = vmul.f32 0.03125, %v2387_v54 }
 0xbd5   : > { %v2417_v55 = vadd.f32 1e-12, %v2409_v29 }
 0xbd6   : > { %v2393_v46 = vpop.xlane.xlu0 %2392  ;;  %v2390_v56 = vpop.xlane.xlu1 %2389 }
 0xbd7   : > { %3981 = vrsqrt.f32 %v2417_v55  ;;  %v2411_v47 = vmul.f32 0.03125, %v2393_v46  ;;  %v2410_v48 = vmul.f32 0.03125, %v2390_v56 }
 0xbd9   : > { %v2419_v49 = vadd.f32 1e-12, %v2411_v47  ;;  %v2418_v59 = vadd.f32 1e-12, %v2410_v48 }
 0xbda   : > { %v2396_v5 = vpop.xlane.xlu1 %2395 }
 0xbdb   : > { %3983 = vrsqrt.f32 %v2419_v49  ;;  %v2412_v25 = vmul.f32 0.03125, %v2396_v5 }
 0xbdc   : > { %3985 = vrsqrt.f32 %v2418_v59 }
 0xbdd   : > { %v2420_v0 = vadd.f32 1e-12, %v2412_v25  ;;  %v3892_v25 = vld [vmem:[%s5059_s16 + $0x50] sm:$0xff]  }
 0xbde   : > { %v2399_v62 = vpop.xlane.xlu0 %2398 }
 0xbdf   : > { %3987 = vrsqrt.f32 %v2420_v0  ;;  %v2413_v2 = vmul.f32 0.03125, %v2399_v62  ;;  %v3893_v0 = vld [vmem:[%s5059_s16 + $0x8] sm:$0xff]  }
 0xbe0   : > { %v3894_v62 = vld [vmem:[%s5059_s16 + $0x48] sm:$0xff]  }
 0xbe1   : > { %v2421_v13 = vadd.f32 1e-12, %v2413_v2  ;;  %v3895_v2 = vld [vmem:[%s5059_s16] sm:$0xff]  }
 0xbe2   : > { %v2405_v14 = vpop.xlane.xlu0 %2404  ;;  %v2402_v15 = vpop.xlane.xlu1 %2401 }
 0xbe3   : > { %3989 = vrsqrt.f32 %v2421_v13  ;;  %v2415_v17 = vmul.f32 0.03125, %v2405_v14  ;;  %v2414_v21 = vmul.f32 0.03125, %v2402_v15  ;;  %v3896_v13 = vld [vmem:[%s5059_s16 + $0x40] sm:$0xff]   ;;  %v4909_v14 = vld [vmem:[%s5059_s16 + $0x38] sm:$0xff]  }
 0xbe4   : > { %v3982_v7 = vpop.eup %3981 }
 0xbe5   : > { %v2423_v53 = vadd.f32 1e-12, %v2415_v17  ;;  %v2422_v24 = vadd.f32 1e-12, %v2414_v21  ;;  %v2433_v3 = vmul.f32 %v3982_v7, %v4787_v63  ;;  %v3387_v63 = vld [vmem:[%s5067_s25 + $0x3] ss:$0 sm:$0xff] }
 0xbe6   : > { %v2408_v58 = vpop.xlane.xlu1 %2407 }
 0xbe7   : > { %3991 = vrsqrt.f32 %v2423_v53  ;;  %v2416_v18 = vmul.f32 0.03125, %v2408_v58  ;;  %v2445_v9 = vmul.f32 %v3386_v44, %v2433_v3 }
 0xbe8   : > { %v3984_v22 = vpop.eup %3983  ;;  %3993 = vrsqrt.f32 %v2422_v24 }
 0xbe9   : > { %v3986_v30 = vpop.eup %3985  ;;  %v2435_v16 = vmul.f32 %v3984_v22, %v4792_v32  ;;  %v2424_v8 = vadd.f32 1e-12, %v2416_v18  ;;  %v2457_v23 = vadd.f32 %v3387_v63, %v2445_v9 }
 0xbea   : > { %v2434_v35 = vmul.f32 %v3986_v30, %v4795_v26 }
 0xbeb   : > { %3995 = vrsqrt.f32 %v2424_v8  ;;  %v2447_v43 = vmul.f32 %v3386_v44, %v2435_v16 }
 0xbec   : > { %v3988_v10 = vpop.eup %3987  ;;  %v2446_v37 = vmul.f32 %v3386_v44, %v2434_v35 }
 0xbed   : > { %v2436_v12 = vmul.f32 %v3988_v10, %v4803_v33  ;;  %v2459_v32 = vadd.f32 %v3387_v63, %v2447_v43 }
 0xbee   : > { %v2458_v61 = vadd.f32 %v3387_v63, %v2446_v37 }
 0xbef   : > { %v2448_v1 = vmul.f32 %v3386_v44, %v2436_v12 }
 0xbf0   : > { %v3990_v50 = vpop.eup %3989  ;;  %v2465_v41 = vpack.c.bf16 %v2458_v61, %v2457_v23 }
 0xbf1   : > { %v2460_v51 = vadd.f32 %v3387_v63, %v2448_v1  ;;  %v2437_v26 = vmul.f32 %v3990_v50, %v4810_v6 }
 0xbf2   : > { %3758 = vmatprep.mubr.msk.bf16.mxu0 %vm603_vm0, %v2465_v41  ;;  %3770 = vmatprep.mubr.msk.bf16.mxu1 %vm603_vm0, %v2465_v41 }
 0xbf3   : > { %v2466_v45 = vpack.c.bf16 %v2460_v51, %v2459_v32  ;;  %v2449_v54 = vmul.f32 %v3386_v44, %v2437_v26 }
 0xbf4   : > { %v3992_v28 = vpop.eup %3991 }
 0xbf5   : > { %v3994_v33 = vpop.eup %3993  ;;  %3759 = vmatmul.mubr.msk.bf16.vlgmr.msra.gmra.mxu0 %vm603_vm0, %v2466_v45  ;;  %3771 = vmatmul.mubr.msk.bf16.vlgmr.msra.gmra.mxu1 %vm603_vm0, %v2466_v45  ;;  %v2439_v42 = vmul.f32 %v3992_v28, %v4816_v57  ;;  %v2461_v56 = vadd.f32 %v3387_v63, %v2449_v54 }
 0xbf6   : > { %3779 = vmatpush3.bf16.msra.mxu0 %v4849_v52  ;;  %v2438_v27 = vmul.f32 %v3994_v33, %v4819_v11  ;;  %v3889_v11 = vld [vmem:[%s5059_s16 + $0x18] sm:$0xff]   ;;  %v3891_v52 = vld [vmem:[%s5059_s16 + $0x10] sm:$0xff]  }
 0xbf7   : > { %3780 = vmatprep.subr.bf16.mxu0 %v3888_v38  ;;  %v2451_v46 = vmul.f32 %v3386_v44, %v2439_v42  ;;  %3790 = vmatprep.subr.bf16.mxu1 %v3889_v11 }
 0xbf8   : > { %v3996_v6 = vpop.eup %3995  ;;  %v2450_v29 = vmul.f32 %v3386_v44, %v2438_v27  ;;  %3791 = vmatpush3.bf16.msra.mxu1 %v3889_v11 }
 0xbf9   : > { %v2440_v55 = vmul.f32 %v3996_v6, %v4827_v40  ;;  %v2463_v59 = vadd.f32 %v3387_v63, %v2451_v46  ;;  %v3890_v40 = vld [vmem:[%s5059_s16 + $0x58] sm:$0xff]   ;;  %3792 = vmatprep.subr.bf16.mxu1 %v3891_v52 }
 0xbfa   : > { %v2462_v47 = vadd.f32 %v3387_v63, %v2450_v29  ;;  %3781 = vmatpush3.bf16.msra.mxu0 %v3888_v38 }
 0xbfb   : > { %v2452_v48 = vmul.f32 %v3386_v44, %v2440_v55  ;;  %3806 = vmatprep.subr.bf16.mxu0 %v3890_v40 }
 0xbfc   : > { %v2467_v49 = vpack.c.bf16 %v2462_v47, %v2461_v56  ;;  %3793 = vmatpush3.bf16.msra.mxu1 %v3891_v52 }
 0xbfd   : > { %v2464_v5 = vadd.f32 %v3387_v63, %v2452_v48  ;;  %3794 = vmatprep.subr.bf16.mxu1 %v3893_v0 }
 0xbfe   : > { %3762 = vmatprep.mubr.msk.bf16.mxu0 %vm603_vm0, %v2467_v49  ;;  %3774 = vmatprep.mubr.msk.bf16.mxu1 %vm603_vm0, %v2467_v49 }
 0xbff   : > { %v2468_v57 = vpack.c.bf16 %v2464_v5, %v2463_v59  ;;  %v3414_v59 = vld [vmem:[%s5058_s15] ss:$0 sm:$0xff] }
 0xc00   : > { %3795 = vmatpush3.bf16.msra.mxu1 %v3893_v0 }
 0xc01   : > { %3763 = vmatmul.mubr.msk.bf16.gmra.mxu0 %vm603_vm0, %v2468_v57  ;;  %3775 = vmatmul.mubr.msk.bf16.gmra.mxu1 %vm603_vm0, %v2468_v57 }
 0xc02   : > { %3782 = vmatprep.mubr.msk.bf16.mxu0 %vm603_vm0, %v2465_v41  ;;  %3796 = vmatprep.subr.bf16.mxu1 %v3895_v2 }
 0xc04   : > { %3797 = vmatpush3.bf16.msra.mxu1 %v3895_v2 }
 0xc05   : > { %3822 = vmatprep.subr.bf16.mxu1 %v4909_v14 }
 0xc09   : > { %3783 = vmatmul.mubr.msk.bf16.vlgmr.msra.gmra.mxu0 %vm603_vm0, %v2466_v45 }
 0xc0a   : > { %3786 = vmatprep.mubr.msk.bf16.mxu0 %vm603_vm0, %v2467_v49  ;;  %3807 = vmatpush3.bf16.msra.mxu0 %v3890_v40 }
 0xc0b   : > { %3808 = vmatprep.subr.bf16.mxu0 %v3892_v25 }
 0xc0e   : > { %3809 = vmatpush3.bf16.msra.mxu0 %v3892_v25 }
 0xc0f   : > { %3810 = vmatprep.subr.bf16.mxu0 %v3894_v62 }
 0xc11   : > { %3787 = vmatmul.mubr.msk.bf16.gmra.mxu0 %vm603_vm0, %v2468_v57 }
 0xc12   : > { %3811 = vmatpush3.bf16.msra.mxu0 %v3894_v62 }
 0xc13   : > { %3812 = vmatprep.subr.bf16.mxu0 %v3896_v13 }
 0xc16   : > { %3813 = vmatpush3.bf16.msra.mxu0 %v3896_v13 }
 0xcb5   : > { %v3760_v15 = vpop.f32.mrf.mxu0  ;;  %v3772_v17 = vpop.f32.mrf.mxu1 }
 0xcb6   : > { %v2662_v63 = vrot.slane %v3760_v15, 7  ;;  %v2772_v26 = vrot.slane %v3772_v17, 1 }
 0xcb7   : > { %v2532_v21 = vpop.f32.mrf.mxu0  ;;  %v2619_v7 = vpop.f32.mrf.mxu1 }
 0xcb8   : > { %v2659_v35 = vrot.slane %v2532_v21, 7  ;;  %v2769_v1 = vrot.slane %v2619_v7, 1 }
 0xcb9   : > { %v3761_v53 = vpop.f32.mrf.mxu0  ;;  %v3773_v24 = vpop.f32.mrf.mxu1 }
 0xcba   : > { %v2664_v10 = vrot.slane %v3761_v53, 7  ;;  %v2774_v12 = vrot.slane %v3773_v24, 1  ;;  %v2682_v32 = vsel %vm2658_vm5, 0.0, %v2659_v35 }
 0xcbb   : > { %v2535_v58 = vpop.f32.mrf.mxu0  ;;  %v2622_v3 = vpop.f32.mrf.mxu1 }
 0xcbc   : > { %v2660_v16 = vrot.slane %v2535_v58, 7  ;;  %v2770_v37 = vrot.slane %v2622_v3, 1  ;;  %v2665_v28 = vsel %vm2658_vm5, %v2662_v63, %v2664_v10  ;;  %v2775_v54 = vsel %vm2768_vm6, %v2772_v26, %v2774_v12 }
 0xcbe   : > { %v2663_v61 = vsel %vm2658_vm5, %v2660_v16, %v2662_v63  ;;  %v2771_v38 = vsel %vm2768_vm6, %v2769_v1, %v2770_v37  ;;  %v2661_v47 = vsel %vm2658_vm5, %v2659_v35, %v2660_v16  ;;  %v2773_v25 = vsel %vm2768_vm6, %v2770_v37, %v2772_v26 }
 0xcc1   : > { %v4912_v44 = vpop.f32.mrf.mxu0  ;;  %v4914_v18 = vpop.f32.mrf.mxu1 }
 0xcc2   : > { %v2670_v49 = vrot.slane %v4912_v44, 7  ;;  %v2780_v17 = vrot.slane %v4914_v18, 1 }
 0xcc3   : > { %v4916_v22 = vpop.f32.mrf.mxu0  ;;  %v2635_v8 = vpop.f32.mrf.mxu1 }
 0xcc4   : > { %v2776_v50 = vrot.slane %v2635_v8, 1  ;;  %v2666_v55 = vrot.slane %v4916_v22, 7 }
 0xcc5   : > { %v4918_v30 = vpop.f32.mrf.mxu0  ;;  %v3777_v23 = vpop.f32.mrf.mxu1 }
 0xcc6   : > { %v2777_v56 = vsel %vm2768_vm6, %v2774_v12, %v2776_v50  ;;  %v2672_v11 = vrot.slane %v4918_v30, 7  ;;  %v2782_v40 = vrot.slane %v3777_v23, 1  ;;  %v2667_v53 = vsel %vm2658_vm5, %v2664_v10, %v2666_v55 }
 0xcc7   : > { %v4920_v9 = vpop.f32.mrf.mxu0  ;;  %v2638_v27 = vpop.f32.mrf.mxu1 }
 0xcc8   : > { %v2668_v42 = vrot.slane %v4920_v9, 7  ;;  %v2778_v52 = vrot.slane %v2638_v27, 1  ;;  %v2783_v22 = vsel %vm2768_vm6, %v2780_v17, %v2782_v40  ;;  %v2673_v63 = vsel %vm2658_vm5, %v2670_v49, %v2672_v11  ;;  %v3899_v27 = vld [vmem:[%s5059_s16 + $0x28] sm:$0xff]  }
 0xcc9   : > { %v3784_v43 = vpop.f32.mrf.mxu0  ;;  %v2792_v23 = vsel %vm2768_vm6, %v2782_v40, 0.0 }
 0xcca   : > { %v2738_v41 = vadd.f32 %v3784_v43, %v2663_v61  ;;  %v2671_v15 = vsel %vm2658_vm5, %v2668_v42, %v2670_v49  ;;  %v2779_v30 = vsel %vm2768_vm6, %v2776_v50, %v2778_v52  ;;  %v2669_v12 = vsel %vm2658_vm5, %v2666_v55, %v2668_v42 }
 0xccb   : > { %v2729_v51 = vpop.f32.mrf.mxu0  ;;  %v2781_v50 = vsel %vm2768_vm6, %v2778_v52, %v2780_v17 }
 0xccc   : > { %v2730_v45 = vadd.f32 %v2729_v51, %v2682_v32  ;;  %v2795_v46 = vadd.f32 %v2775_v54, %v2738_v41  ;;  %v3898_v51 = vld [vmem:[%s5059_s16 + $0x30] sm:$0xff]  }
 0xccd   : > { %v3785_v33 = vpop.f32.mrf.mxu0 }
 0xcce   : > { %v2793_v6 = vadd.f32 %v2771_v38, %v2730_v45  ;;  %v2741_v29 = vadd.f32 %v3785_v33, %v2665_v28  ;;  %v2809_v21 = vadd.f32 %v3414_v59, %v2795_v46 }
 0xccf   : > { %v2732_v48 = vpop.f32.mrf.mxu0 }
 0xcd0   : > { %v2796_v5 = vadd.f32 %v2777_v56, %v2741_v29  ;;  %v2733_v57 = vadd.f32 %v2732_v48, %v2661_v47  ;;  %v2807_v62 = vadd.f32 %v3414_v59, %v2793_v6  ;;  %v2817_v37 = vmax.f32 %v2809_v21, 0.0  ;;  %v3900_v56 = vld [vmem:[%s5059_s16 + $0x20] sm:$0xff]  }
 0xcd1   : > { %v3788_v0 = vpop.f32.mrf.mxu0 }
 0xcd2   : > { %v2810_v2 = vadd.f32 %v3414_v59, %v2796_v5  ;;  %v2794_v13 = vadd.f32 %v2773_v25, %v2733_v57  ;;  %v2754_v7 = vadd.f32 %v3788_v0, %v2671_v15  ;;  %v2815_v8 = vmax.f32 %v2807_v62, 0.0 }
 0xcd3   : > { %v2745_v24 = vpop.f32.mrf.mxu0 }
 0xcd4   : > { %v2808_v58 = vadd.f32 %v3414_v59, %v2794_v13  ;;  %v2746_v3 = vadd.f32 %v2745_v24, %v2667_v53  ;;  %v2818_v44 = vmax.f32 %v2810_v2, 0.0  ;;  %v2799_v18 = vadd.f32 %v2783_v22, %v2754_v7 }
 0xcd5   : > { %v3789_v16 = vpop.f32.mrf.mxu0 }
 0xcd6   : > { %v2816_v35 = vmax.f32 %v2808_v58, 0.0  ;;  %v2797_v9 = vadd.f32 %v2779_v30, %v2746_v3  ;;  %v2757_v43 = vadd.f32 %v3789_v16, %v2673_v63  ;;  %v2824_v41 = vpack.c.bf16 %v2818_v44, %v2817_v37 }
 0xcd7   : > { %v2748_v10 = vpop.f32.mrf.mxu0  ;;  %v2813_v38 = vadd.f32 %v3414_v59, %v2799_v18 }
 0xcd8   : > { %v2823_v61 = vpack.c.bf16 %v2816_v35, %v2815_v8  ;;  %v2749_v1 = vadd.f32 %v2748_v10, %v2669_v12  ;;  %v2800_v32 = vadd.f32 %v2792_v23, %v2757_v43  ;;  %v2811_v26 = vadd.f32 %v3414_v59, %v2797_v9  ;;  %v4980_v8 = vld [vmem:[%s5060_s17] ss:$0 sm:$0xff] }
 0xcd9   : > { %v2821_v29 = vmax.f32 %v2813_v38, 0.0 }
 0xcda   : > { %v2798_v45 = vadd.f32 %v2781_v50, %v2749_v1  ;;  %3798 = vmatprep.mubr.msk.bf16.mxu1 %vm1311_vm4, %v2823_v61  ;;  %3814 = vmatprep.mubr.msk.bf16.mxu0 %vm1311_vm4, %v2823_v61  ;;  %v2814_v28 = vadd.f32 %v3414_v59, %v2800_v32  ;;  %v2819_v54 = vmax.f32 %v2811_v26, 0.0 }
 0xcdb   : > { %3799 = vmatmul.mubr.msk.bf16.vlgmr.msra.gmra.mxu1 %vm1311_vm4, %v2824_v41  ;;  %3815 = vmatmul.mubr.msk.bf16.vlgmr.msra.gmra.mxu0 %vm1311_vm4, %v2824_v41 }
 0xcdc   : > { %v2812_v33 = vadd.f32 %v3414_v59, %v2798_v45  ;;  %3823 = vmatpush3.bf16.msra.mxu1 %v4909_v14  ;;  %v2822_v42 = vmax.f32 %v2814_v28, 0.0 }
 0xcdd   : > { %3824 = vmatprep.subr.bf16.mxu1 %v3898_v51 }
 0xcde   : > { %v2820_v6 = vmax.f32 %v2812_v33, 0.0  ;;  %v2826_v46 = vpack.c.bf16 %v2822_v42, %v2821_v29 }
 0xce0   : > { %v2825_v55 = vpack.c.bf16 %v2820_v6, %v2819_v54  ;;  %3825 = vmatpush3.bf16.msra.mxu1 %v3898_v51 }
 0xce1   : > { %3826 = vmatprep.subr.bf16.mxu1 %v3899_v27 }
 0xce2   : > { %3802 = vmatprep.mubr.msk.bf16.mxu1 %vm1311_vm4, %v2825_v55  ;;  %3818 = vmatprep.mubr.msk.bf16.mxu0 %vm1311_vm4, %v2825_v55 }
 0xce3   : > { %3803 = vmatmul.mubr.msk.bf16.gmra.mxu1 %vm1311_vm4, %v2826_v46  ;;  %3819 = vmatmul.mubr.msk.bf16.gmra.mxu0 %vm1311_vm4, %v2826_v46 }
 0xce4   : > { %3827 = vmatpush3.bf16.msra.mxu1 %v3899_v27  ;;  %3830 = vmatprep.mubr.msk.bf16.mxu1 %vm1311_vm4, %v2823_v61 }
 0xce5   : > { %3828 = vmatprep.subr.bf16.mxu1 %v3900_v56 }
 0xce8   : > { %3829 = vmatpush3.bf16.msra.mxu1 %v3900_v56 }
 0xceb   : > { %3831 = vmatmul.mubr.msk.bf16.vlgmr.msra.gmra.mxu1 %vm1311_vm4, %v2824_v41 }
 0xcec   : > { %3834 = vmatprep.mubr.msk.bf16.mxu1 %vm1311_vm4, %v2825_v55 }
 0xcf3   : > { %3835 = vmatmul.mubr.msk.bf16.gmra.mxu1 %vm1311_vm4, %v2826_v46 }
 0xd9b   : > { %v3800_v14 = vpop.f32.mrf.mxu1  ;;  %v3816_v47 = vpop.f32.mrf.mxu0 }
 0xd9c   : > { %v3055_v13 = vrot.slane %v3800_v14, 7  ;;  %v3176_v7 = vrot.slane %v3816_v47, 1 }
 0xd9d   : > { %v2906_v48 = vpop.f32.mrf.mxu1  ;;  %v3013_v49 = vpop.f32.mrf.mxu0 }
 0xd9e   : > { %v3052_v15 = vrot.slane %v2906_v48, 7  ;;  %v3173_v30 = vrot.slane %v3013_v49, 1 }
 0xd9f   : > { %v3801_v59 = vpop.f32.mrf.mxu1  ;;  %v3817_v5 = vpop.f32.mrf.mxu0 }
 0xda0   : > { %v3178_v17 = vrot.slane %v3817_v5, 1  ;;  %v3057_v53 = vrot.slane %v3801_v59, 7  ;;  %v3075_v9 = vsel %vm2658_vm5, 0.0, %v3052_v15 }
 0xda1   : > { %v2909_v57 = vpop.f32.mrf.mxu1  ;;  %v3016_v11 = vpop.f32.mrf.mxu0 }
 0xda2   : > { %v3053_v0 = vrot.slane %v2909_v57, 7  ;;  %v3174_v24 = vrot.slane %v3016_v11, 1  ;;  %v3179_v35 = vsel %vm2768_vm6, %v3176_v7, %v3178_v17  ;;  %v3058_v23 = vsel %vm2658_vm5, %v3055_v13, %v3057_v53 }
 0xda3   : > { %v4968_v40 = vpop.f32.mrf.mxu1  ;;  %v4970_v52 = vpop.f32.mrf.mxu0 }
 0xda4   : > { %v3056_v58 = vsel %vm2658_vm5, %v3053_v0, %v3055_v13  ;;  %v3063_v43 = vrot.slane %v4968_v40, 7  ;;  %v3175_v10 = vsel %vm2768_vm6, %v3173_v30, %v3174_v24  ;;  %v3184_v1 = vrot.slane %v4970_v52, 1 }
 0xda5   : > { %v4972_v25 = vpop.f32.mrf.mxu1  ;;  %v3029_v2 = vpop.f32.mrf.mxu0  ;;  %v3054_v28 = vsel %vm2658_vm5, %v3052_v15, %v3053_v0  ;;  %v3177_v46 = vsel %vm2768_vm6, %v3174_v24, %v3176_v7 }
 0xda6   : > { %v3180_v16 = vrot.slane %v3029_v2, 1  ;;  %v3059_v26 = vrot.slane %v4972_v25, 7 }
 0xda7   : > { %v3805_v62 = vpop.f32.mrf.mxu1  ;;  %v3821_v44 = vpop.f32.mrf.mxu0 }
 0xda8   : > { %v3186_v45 = vrot.slane %v3821_v44, 1  ;;  %v3181_v38 = vsel %vm2768_vm6, %v3178_v17, %v3180_v16  ;;  %v3065_v29 = vrot.slane %v3805_v62, 7  ;;  %v3060_v5 = vsel %vm2658_vm5, %v3057_v53, %v3059_v26 }
 0xda9   : > { %v4974_v21 = vpop.f32.mrf.mxu1  ;;  %v3032_v41 = vpop.f32.mrf.mxu0 }
 0xdaa   : > { %v3061_v12 = vrot.slane %v4974_v21, 7  ;;  %v3182_v55 = vrot.slane %v3032_v41, 1  ;;  %v3187_v59 = vsel %vm2768_vm6, %v3184_v1, %v3186_v45  ;;  %v3066_v0 = vsel %vm2658_vm5, %v3063_v43, %v3065_v29 }
 0xdab   : > { %v3832_v3 = vpop.f32.mrf.mxu1 }
 0xdac   : > { %v3143_v22 = vadd.f32 %v3832_v3, %v3056_v58  ;;  %v3064_v56 = vsel %vm2658_vm5, %v3061_v12, %v3063_v43  ;;  %v3062_v21 = vsel %vm2658_vm5, %v3059_v26, %v3061_v12  ;;  %v3185_v3 = vsel %vm2768_vm6, %v3182_v55, %v3184_v1 }
 0xdad   : > { %v3134_v63 = vpop.f32.mrf.mxu1 }
 0xdae   : > { %v3199_v37 = vadd.f32 %v3179_v35, %v3143_v22  ;;  %v3135_v18 = vadd.f32 %v3134_v63, %v3075_v9 }
 0xdaf   : > { %v3833_v61 = vpop.f32.mrf.mxu1 }
 0xdb0   : > { %v3213_v32 = vadd.f32 %v4980_v8, %v3199_v37  ;;  %v3197_v50 = vadd.f32 %v3175_v10, %v3135_v18  ;;  %v3146_v51 = vadd.f32 %v3833_v61, %v3058_v23 }
 0xdb1   : > { %v3137_v33 = vpop.f32.mrf.mxu1 }
 0xdb2   : > { %v3221_v42 = vadd.f32 %v3213_v32, %v4746_v31  ;;  %v3211_v27 = vadd.f32 %v4980_v8, %v3197_v50  ;;  %v3200_v54 = vadd.f32 %v3181_v38, %v3146_v51  ;;  %v3138_v6 = vadd.f32 %v3137_v33, %v3054_v28 }
 0xdb3   : > { %v3836_v14 = vpop.f32.mrf.mxu1 }
 0xdb4   : > { %3229 = vst.msk [vmem:[%s4995_s2 + $0x10] sm:$0xff] %vm603_vm0, %v3221_v42  ;;  %v3219_v47 = vadd.f32 %v3211_v27, %v4743_v36  ;;  %v3214_v48 = vadd.f32 %v4980_v8, %v3200_v54  ;;  %v3198_v31 = vadd.f32 %v3177_v46, %v3138_v6  ;;  %v3159_v49 = vadd.f32 %v3836_v14, %v3064_v56 }
 0xdb5   : > { %v3150_v57 = vpop.f32.mrf.mxu1  ;;  %v3183_v36 = vsel %vm2768_vm6, %v3180_v16, %v3182_v55 }
 0xdb6   : > { %3227 = vst.msk [vmem:[%s4995_s2] sm:$0xff] %vm603_vm0, %v3219_v47  ;;  %v3222_v11 = vadd.f32 %v3214_v48, %v4754_v4  ;;  %v3212_v40 = vadd.f32 %v4980_v8, %v3198_v31  ;;  %v3203_v52 = vadd.f32 %v3187_v59, %v3159_v49  ;;  %v3151_v25 = vadd.f32 %v3150_v57, %v3060_v5 }
 0xdb7   : > { %v3837_v62 = vpop.f32.mrf.mxu1  ;;  %v3196_v4 = vsel %vm2768_vm6, %v3186_v45, 0.0 }
 0xdb8   : > { %3230 = vst.msk [vmem:[%s4995_s2 + $0x18] sm:$0xff] %vm603_vm0, %v3222_v11  ;;  %v3220_v2 = vadd.f32 %v3212_v40, %v4751_v19  ;;  %v3217_v13 = vadd.f32 %v4980_v8, %v3203_v52  ;;  %v3201_v15 = vadd.f32 %v3183_v36, %v3151_v25  ;;  %v3162_v17 = vadd.f32 %v3837_v62, %v3066_v0 }
 0xdb9   : > { %v3153_v7 = vpop.f32.mrf.mxu1 }
 0xdba   : > { %3228 = vst.msk [vmem:[%s4995_s2 + $0x8] sm:$0xff] %vm603_vm0, %v3220_v2  ;;  %v3225_v53 = vadd.f32 %v3217_v13, %v4770_v20  ;;  %v3215_v24 = vadd.f32 %v4980_v8, %v3201_v15  ;;  %v3204_v58 = vadd.f32 %v3196_v4, %v3162_v17  ;;  %v3154_v19 = vadd.f32 %v3153_v7, %v3062_v21 }
 0xdbc   : > { %3233 = vst.msk [vmem:[%s4995_s2 + $0x30] sm:$0xff] %vm603_vm0, %v3225_v53  ;;  %v3223_v44 = vadd.f32 %v3215_v24, %v4767_v34  ;;  %v3218_v22 = vadd.f32 %v4980_v8, %v3204_v58  ;;  %v3202_v30 = vadd.f32 %v3185_v3, %v3154_v19 }
 0xdbe   : > { %3231 = vst.msk [vmem:[%s4995_s2 + $0x20] sm:$0xff] %vm603_vm0, %v3223_v44  ;;  %v3226_v16 = vadd.f32 %v3218_v22, %v4778_v60  ;;  %v3216_v35 = vadd.f32 %v4980_v8, %v3202_v30 }
 0xdc0   : > { %3234 = vst.msk [vmem:[%s4995_s2 + $0x38] sm:$0xff] %vm603_vm0, %v3226_v16  ;;  %v3224_v20 = vadd.f32 %v3216_v35, %v4775_v39 }
 0xdc2   : > { %3232 = vst.msk [vmem:[%s4995_s2 + $0x28] sm:$0xff] %vm603_vm0, %v3224_v20 }
 0xdc3 PF: > { %s28_s27 = sadd.s32 1, %s4011_s27  }
 0xdc4   : > { %p25_p4 = scmp.ge.s32.totalorder %s28_s27, 4  }
 0xdc6   :  { %27 = sbr.rel (!%p25_p4) target bundleno = 4 (0x4), region = 132 }

</bundles_post_ra>
